<compile_context>
chip_gen: v7x
topology: tpu7x:2x2x1
jax: 0.10.0
libtpu: 0.0.40
codegen_flags: <defaults>
</compile_context>

<pallas_src>
import functools
import math

import jax
import jax.numpy as jnp
from jax import lax
from jax.experimental import pallas as pl
from jax.experimental.pallas import tpu as pltpu

N_EMBED = 384
N_HEADS = 8


def _attention_kernel(x_ref, wqkv_ref, bqkv_ref, wp_ref, bp_ref, o_ref, y_ref,
                      *, seq_len: int, n_heads: int):
    # x_ref block: (Bb*T, C) rows of flattened (B*T, C) input.
    Rb, C = x_ref.shape
    T = seq_len
    bb = Rb // T
    D = C // n_heads

    # Fused Q/K/V projection: one bf16 MXU pass, f32 accumulation, f32 bias.
    xb = x_ref[...].astype(jnp.bfloat16)
    qkv = jnp.dot(xb, wqkv_ref[...],
                  preferred_element_type=jnp.float32) + bqkv_ref[0]

    # Lane-aligned (multiples of 384 = 3*128) splits; 1/sqrt(D) already folded
    # into the q columns of W_qkv and b_qkv.
    q = qkv[:, 0 * C:1 * C].astype(jnp.bfloat16)
    k = qkv[:, 1 * C:2 * C].astype(jnp.bfloat16)
    v = qkv[:, 2 * C:3 * C].astype(jnp.bfloat16)

    # Additive causal bias, hoisted outside the sequence/head loops.
    row = lax.broadcasted_iota(jnp.int32, (T, T), 0)
    col = lax.broadcasted_iota(jnp.int32, (T, T), 1)
    mask_bias = jnp.where(col <= row, 0.0, -1e30).astype(jnp.float32)

    # Per-sequence, per-head attention with static lane slices (D = 48).
    for s in range(bb):
        r0, r1 = s * T, (s + 1) * T
        for h in range(n_heads):
            c0, c1 = h * D, (h + 1) * D
            q_sh = q[r0:r1, c0:c1]                      # (T, D) bf16 (scaled)
            k_sh = k[r0:r1, c0:c1]                      # (T, D) bf16
            v_sh = v[r0:r1, c0:c1]                      # (T, D) bf16

            logits = jnp.einsum('td,sd->ts', q_sh, k_sh,
                                preferred_element_type=jnp.float32)
            logits = logits + mask_bias                 # (T, T) f32

            m = jnp.max(logits, axis=-1, keepdims=True)
            p = jnp.exp(logits - m)                     # f32 softmax
            denom = jnp.sum(p, axis=-1, keepdims=True)
            att = p * pl.reciprocal(denom, approx=True)

            y_sh = jnp.dot(att.astype(jnp.bfloat16), v_sh,
                           preferred_element_type=jnp.float32)
            y_ref[r0:r1, c0:c1] = y_sh.astype(jnp.bfloat16)

    # Output projection over the whole block (lane-dense 384-wide output).
    out = jnp.dot(y_ref[...], wp_ref[...],
                  preferred_element_type=jnp.float32) + bp_ref[0]
    o_ref[...] = out.astype(o_ref.dtype)


def _pick_block_b(B: int, T: int, target_rows: int = 256) -> int:
    """Pack enough sequences per grid step to fill the MXU M dimension."""
    bb = max(1, min(B, -(-target_rows // T)))
    while B % bb:
        bb -= 1
    return bb


def self_attention_pallas(x, params, n_heads=N_HEADS):
    """x: (B, T, C) f32; params: fused bf16 weights + f32 biases (see main)."""
    B, T, C = x.shape
    D = C // n_heads
    bb = _pick_block_b(B, T)
    Rb = bb * T
    grid = (B // bb,)

    x2d = x.reshape(B * T, C)
    kernel = functools.partial(_attention_kernel, seq_len=T, n_heads=n_heads)

    cost = pl.CostEstimate(
        flops=int(2 * B * T * C * 3 * C          # fused QKV projection
                  + 2 * B * T * C * C            # output projection
                  + 4 * B * n_heads * T * T * D),  # scores + att@v
        transcendentals=int(B * n_heads * T * T),
        bytes_accessed=int(x2d.size * 4 * 2
                           + params['w_qkv'].size * 2 + params['w_p'].size * 2
                           + params['b_qkv'].size * 4 + params['b_p'].size * 4),
    )

    out2d = pl.pallas_call(
        kernel,
        out_shape=jax.ShapeDtypeStruct((B * T, C), x.dtype),
        grid=grid,
        in_specs=[
            pl.BlockSpec((Rb, C), lambda b: (b, 0)),        # x rows
            pl.BlockSpec((C, 3 * C), lambda b: (0, 0)),     # fused W_qkv (bf16)
            pl.BlockSpec((1, 3 * C), lambda b: (0, 0)),     # fused b_qkv (f32)
            pl.BlockSpec((C, C), lambda b: (0, 0)),         # W_proj (bf16)
            pl.BlockSpec((1, C), lambda b: (0, 0)),         # b_proj (f32)
        ],
        out_specs=pl.BlockSpec((Rb, C), lambda b: (b, 0)),
        scratch_shapes=[pltpu.VMEM((Rb, C), jnp.bfloat16)],  # merged heads
        compiler_params=pltpu.CompilerParams(
            dimension_semantics=("parallel",)),
        cost_estimate=cost,
    )(x2d, params['w_qkv'], params['b_qkv'], params['w_p'], params['b_p'])

    return out2d.reshape(B, T, C)


def _init_linear(key, fan_in, fan_out):
    """PyTorch nn.Linear default init: U(-1/sqrt(fan_in), 1/sqrt(fan_in))."""
    kw, kb = jax.random.split(key)
    bound = 1.0 / math.sqrt(fan_in)
    w = jax.random.uniform(kw, (fan_out, fan_in), jnp.float32, -bound, bound)
    b = jax.random.uniform(kb, (fan_out,), jnp.float32, -bound, bound)
    return w, b


def _reference(x, raw, n_heads=N_HEADS):
    """Pure-JAX f32 reference mirroring the PyTorch forward (eval mode)."""
    B, T, C = x.shape
    D = C // n_heads

    def lin(z, w, b):
        return z @ w.T + b

    def split(z):  # (B,T,C) -> (B,H,T,D)
        return z.reshape(B, T, n_heads, D).transpose(0, 2, 1, 3)

    q = split(lin(x, raw['wq'], raw['bq']))
    k = split(lin(x, raw['wk'], raw['bk']))
    v = split(lin(x, raw['wv'], raw['bv']))
    att = (q @ k.transpose(0, 1, 3, 2)) / math.sqrt(D)
    mask = jnp.tril(jnp.ones((T, T)))
    att = jnp.where(mask == 0, -jnp.inf, att)
    att = jax.nn.softmax(att, axis=-1)
    y = (att @ v).transpose(0, 2, 1, 3).reshape(B, T, C)
    return lin(y, raw['wp'], raw['bp'])


if __name__ == "__main__":
    B, T, C = 2, 8, N_EMBED
    H = N_HEADS
    D = C // H

    key = jax.random.PRNGKey(0)
    kx, kq, kk, kv, kp = jax.random.split(key, 5)

    x = jax.random.normal(kx, (B, T, C), jnp.float32)

    wq, bq = _init_linear(kq, C, C)
    wk, bk = _init_linear(kk, C, C)
    wv, bv = _init_linear(kv, C, C)
    wp, bp = _init_linear(kp, C, C)

    raw = dict(wq=wq, bq=bq, wk=wk, bk=bk, wv=wv, bv=bv, wp=wp, bp=bp)

    # Host-side parameter prep: fuse QKV, fold 1/sqrt(D) into the q slice,
    # cast weights to bf16 (f32 biases are added after f32 MXU accumulation).
    scale = 1.0 / math.sqrt(D)
    w_qkv = jnp.concatenate(
        [(wq * scale).T, wk.T, wv.T], axis=1).astype(jnp.bfloat16)   # (C, 3C)
    b_qkv = jnp.concatenate(
        [bq * scale, bk, bv]).reshape(1, 3 * C).astype(jnp.float32)  # (1, 3C)
    params = dict(
        w_qkv=w_qkv, b_qkv=b_qkv,
        w_p=wp.T.astype(jnp.bfloat16),                               # (C, C)
        b_p=bp.reshape(1, C).astype(jnp.float32),                    # (1, C)
    )

    out = self_attention_pallas(x, params)
    out = jax.block_until_ready(out)

    ref = _reference(x, raw)
    assert out.shape == (B, T, C)
    max_diff = jnp.max(jnp.abs(out - ref))
    assert jnp.allclose(out, ref, atol=3e-2, rtol=3e-2), \
        f"max abs diff {max_diff}"

    print("KERNEL_OK")
</pallas_src>

<mosaic_0001>
module attributes {stable_mosaic.version = 11 : i64} {
  func.func @_attention_kernel(%arg0: i32, %arg1: memref<16x384xf32, #tpu.memory_space<vmem>>, %arg2: memref<384x1152xbf16, #tpu.memory_space<vmem>>, %arg3: memref<1x1152xf32, #tpu.memory_space<vmem>>, %arg4: memref<384x384xbf16, #tpu.memory_space<vmem>>, %arg5: memref<1x384xf32, #tpu.memory_space<vmem>>, %arg6: memref<16x384xf32, #tpu.memory_space<vmem>>, %arg7: memref<16x384xbf16, #tpu.memory_space<vmem>>) attributes {dimension_semantics = [#tpu.dimension_semantics<parallel>], iteration_bounds = array<i64: 1>, scalar_prefetch = 0 : i64, scratch_operands = 1 : i64, tpu.core_type = #tpu.core_type<tc>, window_params = [{transform_indices = @transform_0, window_bounds = array<i64: 16, 384>}, {pipeline_mode = #tpu.pipeline_mode<synchronous>, transform_indices = @transform_1, window_bounds = array<i64: 384, 1152>}, {pipeline_mode = #tpu.pipeline_mode<synchronous>, transform_indices = @transform_2, window_bounds = array<i64: 1, 1152>}, {pipeline_mode = #tpu.pipeline_mode<synchronous>, transform_indices = @transform_3, window_bounds = array<i64: 384, 384>}, {pipeline_mode = #tpu.pipeline_mode<synchronous>, transform_indices = @transform_4, window_bounds = array<i64: 1, 384>}, {transform_indices = @transform_5, window_bounds = array<i64: 16, 384>}]} {
    %c0 = arith.constant 0 : index
    %c0_0 = arith.constant 0 : index
    %0 = vector.load %arg1[%c0, %c0_0] : memref<16x384xf32, #tpu.memory_space<vmem>>, vector<16x384xf32>
    %1 = arith.truncf %0 : vector<16x384xf32> to vector<16x384xbf16>
    %c0_1 = arith.constant 0 : index
    %c0_2 = arith.constant 0 : index
    %2 = vector.load %arg2[%c0_1, %c0_2] : memref<384x1152xbf16, #tpu.memory_space<vmem>>, vector<384x1152xbf16>
    %cst = arith.constant dense<0.000000e+00> : vector<16x1152xf32>
    %3 = tpu.matmul %1, %2, %cst {dimension_numbers = #tpu.dot_dimension_numbers<[1], [0], [0], [1], [0, 0, 1, 1], [], []>} : vector<16x384xbf16>, vector<384x1152xbf16>, vector<16x1152xf32> -> vector<16x1152xf32>
    %c0_3 = arith.constant 0 : index
    %c0_4 = arith.constant 0 : index
    %4 = vector.load %arg3[%c0_3, %c0_4] : memref<1x1152xf32, #tpu.memory_space<vmem>>, vector<1x1152xf32>
    %5 = vector.shape_cast %4 : vector<1x1152xf32> to vector<1152xf32>
    %6 = vector.shape_cast %5 : vector<1152xf32> to vector<1x1152xf32>
    %7 = vector.broadcast %6 : vector<1x1152xf32> to vector<16x1152xf32>
    %8 = arith.addf %3, %7 : vector<16x1152xf32>
    %9 = vector.extract_strided_slice %8 {offsets = [0, 0], sizes = [16, 384], strides = [1, 1]} : vector<16x1152xf32> to vector<16x384xf32>
    %10 = arith.truncf %9 : vector<16x384xf32> to vector<16x384xbf16>
    %11 = vector.extract_strided_slice %8 {offsets = [0, 384], sizes = [16, 384], strides = [1, 1]} : vector<16x1152xf32> to vector<16x384xf32>
    %12 = arith.truncf %11 : vector<16x384xf32> to vector<16x384xbf16>
    %13 = vector.extract_strided_slice %8 {offsets = [0, 768], sizes = [16, 384], strides = [1, 1]} : vector<16x1152xf32> to vector<16x384xf32>
    %14 = arith.truncf %13 : vector<16x384xf32> to vector<16x384xbf16>
    %15 = tpu.iota {dimensions = array<i32: 0>} : vector<8x8xi32>
    %16 = tpu.iota {dimensions = array<i32: 1>} : vector<8x8xi32>
    %17 = arith.cmpi sle, %16, %15 : vector<8x8xi32>
    %cst_5 = arith.constant 0.000000e+00 : f32
    %cst_6 = arith.constant -1.000000e+30 : f32
    %18 = vector.broadcast %cst_5 : f32 to vector<8x8xf32>
    %19 = vector.broadcast %cst_6 : f32 to vector<8x8xf32>
    %20 = arith.select %17, %18, %19 : vector<8x8xi1>, vector<8x8xf32>
    %21 = vector.extract_strided_slice %10 {offsets = [0, 0], sizes = [8, 48], strides = [1, 1]} : vector<16x384xbf16> to vector<8x48xbf16>
    %22 = vector.extract_strided_slice %12 {offsets = [0, 0], sizes = [8, 48], strides = [1, 1]} : vector<16x384xbf16> to vector<8x48xbf16>
    %23 = vector.extract_strided_slice %14 {offsets = [0, 0], sizes = [8, 48], strides = [1, 1]} : vector<16x384xbf16> to vector<8x48xbf16>
    "tpu.trace_start"() <{level = 10 : i32, message = "td,sd->ts"}> : () -> ()
    %cst_7 = arith.constant dense<0.000000e+00> : vector<8x8xf32>
    %24 = tpu.matmul %21, %22, %cst_7 {dimension_numbers = #tpu.dot_dimension_numbers<[1], [1], [0], [0], [0, 0, 1, 0], [], []>} : vector<8x48xbf16>, vector<8x48xbf16>, vector<8x8xf32> -> vector<8x8xf32>
    "tpu.trace_stop"() : () -> ()
    %25 = arith.addf %24, %20 : vector<8x8xf32>
    %cst_8 = arith.constant dense<0xFF800000> : vector<8xf32>
    %26 = vector.multi_reduction <maximumf>, %25, %cst_8 [1] : vector<8x8xf32> to vector<8xf32>
    %27 = vector.shape_cast %26 : vector<8xf32> to vector<8x1xf32>
    %28 = vector.broadcast %27 : vector<8x1xf32> to vector<8x8xf32>
    %29 = arith.subf %25, %28 : vector<8x8xf32>
    %30 = math.exp %29 : vector<8x8xf32>
    %cst_9 = arith.constant dense<0.000000e+00> : vector<8xf32>
    %31 = vector.multi_reduction <add>, %30, %cst_9 [1] : vector<8x8xf32> to vector<8xf32>
    %32 = vector.shape_cast %31 : vector<8xf32> to vector<8x1xf32>
    %33 = tpu.reciprocal %32 {approx = true} : vector<8x1xf32> -> vector<8x1xf32>
    %34 = vector.broadcast %33 : vector<8x1xf32> to vector<8x8xf32>
    %35 = arith.mulf %30, %34 : vector<8x8xf32>
    %36 = arith.truncf %35 : vector<8x8xf32> to vector<8x8xbf16>
    %cst_10 = arith.constant dense<0.000000e+00> : vector<8x48xf32>
    %37 = tpu.matmul %36, %23, %cst_10 {dimension_numbers = #tpu.dot_dimension_numbers<[1], [0], [0], [1], [0, 0, 1, 1], [], []>} : vector<8x8xbf16>, vector<8x48xbf16>, vector<8x48xf32> -> vector<8x48xf32>
    %38 = arith.truncf %37 : vector<8x48xf32> to vector<8x48xbf16>
    %c0_11 = arith.constant 0 : index
    %c0_12 = arith.constant 0 : index
    %39 = vector.load %arg7[%c0_11, %c0_12] : memref<16x384xbf16, #tpu.memory_space<vmem>>, vector<8x48xbf16>
    tpu.vector_store %arg7[%c0_11, %c0_12], %38 {strides = array<i32>} : memref<16x384xbf16, #tpu.memory_space<vmem>>, vector<8x48xbf16>,
    %40 = vector.extract_strided_slice %10 {offsets = [0, 48], sizes = [8, 48], strides = [1, 1]} : vector<16x384xbf16> to vector<8x48xbf16>
    %41 = vector.extract_strided_slice %12 {offsets = [0, 48], sizes = [8, 48], strides = [1, 1]} : vector<16x384xbf16> to vector<8x48xbf16>
    %42 = vector.extract_strided_slice %14 {offsets = [0, 48], sizes = [8, 48], strides = [1, 1]} : vector<16x384xbf16> to vector<8x48xbf16>
    "tpu.trace_start"() <{level = 10 : i32, message = "td,sd->ts"}> : () -> ()
    %cst_13 = arith.constant dense<0.000000e+00> : vector<8x8xf32>
    %43 = tpu.matmul %40, %41, %cst_13 {dimension_numbers = #tpu.dot_dimension_numbers<[1], [1], [0], [0], [0, 0, 1, 0], [], []>} : vector<8x48xbf16>, vector<8x48xbf16>, vector<8x8xf32> -> vector<8x8xf32>
    "tpu.trace_stop"() : () -> ()
    %44 = arith.addf %43, %20 : vector<8x8xf32>
    %cst_14 = arith.constant dense<0xFF800000> : vector<8xf32>
    %45 = vector.multi_reduction <maximumf>, %44, %cst_14 [1] : vector<8x8xf32> to vector<8xf32>
    %46 = vector.shape_cast %45 : vector<8xf32> to vector<8x1xf32>
    %47 = vector.broadcast %46 : vector<8x1xf32> to vector<8x8xf32>
    %48 = arith.subf %44, %47 : vector<8x8xf32>
    %49 = math.exp %48 : vector<8x8xf32>
    %cst_15 = arith.constant dense<0.000000e+00> : vector<8xf32>
    %50 = vector.multi_reduction <add>, %49, %cst_15 [1] : vector<8x8xf32> to vector<8xf32>
    %51 = vector.shape_cast %50 : vector<8xf32> to vector<8x1xf32>
    %52 = tpu.reciprocal %51 {approx = true} : vector<8x1xf32> -> vector<8x1xf32>
    %53 = vector.broadcast %52 : vector<8x1xf32> to vector<8x8xf32>
    %54 = arith.mulf %49, %53 : vector<8x8xf32>
    %55 = arith.truncf %54 : vector<8x8xf32> to vector<8x8xbf16>
    %cst_16 = arith.constant dense<0.000000e+00> : vector<8x48xf32>
    %56 = tpu.matmul %55, %42, %cst_16 {dimension_numbers = #tpu.dot_dimension_numbers<[1], [0], [0], [1], [0, 0, 1, 1], [], []>} : vector<8x8xbf16>, vector<8x48xbf16>, vector<8x48xf32> -> vector<8x48xf32>
    %57 = arith.truncf %56 : vector<8x48xf32> to vector<8x48xbf16>
    %c0_17 = arith.constant 0 : index
    %c48 = arith.constant 48 : index
    %58 = vector.load %arg7[%c0_17, %c48] : memref<16x384xbf16, #tpu.memory_space<vmem>>, vector<8x48xbf16>
    tpu.vector_store %arg7[%c0_17, %c48], %57 {strides = array<i32>} : memref<16x384xbf16, #tpu.memory_space<vmem>>, vector<8x48xbf16>,
    %59 = vector.extract_strided_slice %10 {offsets = [0, 96], sizes = [8, 48], strides = [1, 1]} : vector<16x384xbf16> to vector<8x48xbf16>
    %60 = vector.extract_strided_slice %12 {offsets = [0, 96], sizes = [8, 48], strides = [1, 1]} : vector<16x384xbf16> to vector<8x48xbf16>
    %61 = vector.extract_strided_slice %14 {offsets = [0, 96], sizes = [8, 48], strides = [1, 1]} : vector<16x384xbf16> to vector<8x48xbf16>
    "tpu.trace_start"() <{level = 10 : i32, message = "td,sd->ts"}> : () -> ()
    %cst_18 = arith.constant dense<0.000000e+00> : vector<8x8xf32>
    %62 = tpu.matmul %59, %60, %cst_18 {dimension_numbers = #tpu.dot_dimension_numbers<[1], [1], [0], [0], [0, 0, 1, 0], [], []>} : vector<8x48xbf16>, vector<8x48xbf16>, vector<8x8xf32> -> vector<8x8xf32>
    "tpu.trace_stop"() : () -> ()
    %63 = arith.addf %62, %20 : vector<8x8xf32>
    %cst_19 = arith.constant dense<0xFF800000> : vector<8xf32>
    %64 = vector.multi_reduction <maximumf>, %63, %cst_19 [1] : vector<8x8xf32> to vector<8xf32>
    %65 = vector.shape_cast %64 : vector<8xf32> to vector<8x1xf32>
    %66 = vector.broadcast %65 : vector<8x1xf32> to vector<8x8xf32>
    %67 = arith.subf %63, %66 : vector<8x8xf32>
    %68 = math.exp %67 : vector<8x8xf32>
    %cst_20 = arith.constant dense<0.000000e+00> : vector<8xf32>
    %69 = vector.multi_reduction <add>, %68, %cst_20 [1] : vector<8x8xf32> to vector<8xf32>
    %70 = vector.shape_cast %69 : vector<8xf32> to vector<8x1xf32>
    %71 = tpu.reciprocal %70 {approx = true} : vector<8x1xf32> -> vector<8x1xf32>
    %72 = vector.broadcast %71 : vector<8x1xf32> to vector<8x8xf32>
    %73 = arith.mulf %68, %72 : vector<8x8xf32>
    %74 = arith.truncf %73 : vector<8x8xf32> to vector<8x8xbf16>
    %cst_21 = arith.constant dense<0.000000e+00> : vector<8x48xf32>
    %75 = tpu.matmul %74, %61, %cst_21 {dimension_numbers = #tpu.dot_dimension_numbers<[1], [0], [0], [1], [0, 0, 1, 1], [], []>} : vector<8x8xbf16>, vector<8x48xbf16>, vector<8x48xf32> -> vector<8x48xf32>
    %76 = arith.truncf %75 : vector<8x48xf32> to vector<8x48xbf16>
    %c0_22 = arith.constant 0 : index
    %c96 = arith.constant 96 : index
    %77 = vector.load %arg7[%c0_22, %c96] : memref<16x384xbf16, #tpu.memory_space<vmem>>, vector<8x48xbf16>
    tpu.vector_store %arg7[%c0_22, %c96], %76 {strides = array<i32>} : memref<16x384xbf16, #tpu.memory_space<vmem>>, vector<8x48xbf16>,
    %78 = vector.extract_strided_slice %10 {offsets = [0, 144], sizes = [8, 48], strides = [1, 1]} : vector<16x384xbf16> to vector<8x48xbf16>
    %79 = vector.extract_strided_slice %12 {offsets = [0, 144], sizes = [8, 48], strides = [1, 1]} : vector<16x384xbf16> to vector<8x48xbf16>
    %80 = vector.extract_strided_slice %14 {offsets = [0, 144], sizes = [8, 48], strides = [1, 1]} : vector<16x384xbf16> to vector<8x48xbf16>
    "tpu.trace_start"() <{level = 10 : i32, message = "td,sd->ts"}> : () -> ()
    %cst_23 = arith.constant dense<0.000000e+00> : vector<8x8xf32>
    %81 = tpu.matmul %78, %79, %cst_23 {dimension_numbers = #tpu.dot_dimension_numbers<[1], [1], [0], [0], [0, 0, 1, 0], [], []>} : vector<8x48xbf16>, vector<8x48xbf16>, vector<8x8xf32> -> vector<8x8xf32>
    "tpu.trace_stop"() : () -> ()
    %82 = arith.addf %81, %20 : vector<8x8xf32>
    %cst_24 = arith.constant dense<0xFF800000> : vector<8xf32>
    %83 = vector.multi_reduction <maximumf>, %82, %cst_24 [1] : vector<8x8xf32> to vector<8xf32>
    %84 = vector.shape_cast %83 : vector<8xf32> to vector<8x1xf32>
    %85 = vector.broadcast %84 : vector<8x1xf32> to vector<8x8xf32>
    %86 = arith.subf %82, %85 : vector<8x8xf32>
    %87 = math.exp %86 : vector<8x8xf32>
    %cst_25 = arith.constant dense<0.000000e+00> : vector<8xf32>
    %88 = vector.multi_reduction <add>, %87, %cst_25 [1] : vector<8x8xf32> to vector<8xf32>
    %89 = vector.shape_cast %88 : vector<8xf32> to vector<8x1xf32>
    %90 = tpu.reciprocal %89 {approx = true} : vector<8x1xf32> -> vector<8x1xf32>
    %91 = vector.broadcast %90 : vector<8x1xf32> to vector<8x8xf32>
    %92 = arith.mulf %87, %91 : vector<8x8xf32>
    %93 = arith.truncf %92 : vector<8x8xf32> to vector<8x8xbf16>
    %cst_26 = arith.constant dense<0.000000e+00> : vector<8x48xf32>
    %94 = tpu.matmul %93, %80, %cst_26 {dimension_numbers = #tpu.dot_dimension_numbers<[1], [0], [0], [1], [0, 0, 1, 1], [], []>} : vector<8x8xbf16>, vector<8x48xbf16>, vector<8x48xf32> -> vector<8x48xf32>
    %95 = arith.truncf %94 : vector<8x48xf32> to vector<8x48xbf16>
    %c0_27 = arith.constant 0 : index
    %c144 = arith.constant 144 : index
    %96 = vector.load %arg7[%c0_27, %c144] : memref<16x384xbf16, #tpu.memory_space<vmem>>, vector<8x48xbf16>
    tpu.vector_store %arg7[%c0_27, %c144], %95 {strides = array<i32>} : memref<16x384xbf16, #tpu.memory_space<vmem>>, vector<8x48xbf16>,
    %97 = vector.extract_strided_slice %10 {offsets = [0, 192], sizes = [8, 48], strides = [1, 1]} : vector<16x384xbf16> to vector<8x48xbf16>
    %98 = vector.extract_strided_slice %12 {offsets = [0, 192], sizes = [8, 48], strides = [1, 1]} : vector<16x384xbf16> to vector<8x48xbf16>
    %99 = vector.extract_strided_slice %14 {offsets = [0, 192], sizes = [8, 48], strides = [1, 1]} : vector<16x384xbf16> to vector<8x48xbf16>
    "tpu.trace_start"() <{level = 10 : i32, message = "td,sd->ts"}> : () -> ()
    %cst_28 = arith.constant dense<0.000000e+00> : vector<8x8xf32>
    %100 = tpu.matmul %97, %98, %cst_28 {dimension_numbers = #tpu.dot_dimension_numbers<[1], [1], [0], [0], [0, 0, 1, 0], [], []>} : vector<8x48xbf16>, vector<8x48xbf16>, vector<8x8xf32> -> vector<8x8xf32>
    "tpu.trace_stop"() : () -> ()
    %101 = arith.addf %100, %20 : vector<8x8xf32>
    %cst_29 = arith.constant dense<0xFF800000> : vector<8xf32>
    %102 = vector.multi_reduction <maximumf>, %101, %cst_29 [1] : vector<8x8xf32> to vector<8xf32>
    %103 = vector.shape_cast %102 : vector<8xf32> to vector<8x1xf32>
    %104 = vector.broadcast %103 : vector<8x1xf32> to vector<8x8xf32>
    %105 = arith.subf %101, %104 : vector<8x8xf32>
    %106 = math.exp %105 : vector<8x8xf32>
    %cst_30 = arith.constant dense<0.000000e+00> : vector<8xf32>
    %107 = vector.multi_reduction <add>, %106, %cst_30 [1] : vector<8x8xf32> to vector<8xf32>
    %108 = vector.shape_cast %107 : vector<8xf32> to vector<8x1xf32>
    %109 = tpu.reciprocal %108 {approx = true} : vector<8x1xf32> -> vector<8x1xf32>
    %110 = vector.broadcast %109 : vector<8x1xf32> to vector<8x8xf32>
    %111 = arith.mulf %106, %110 : vector<8x8xf32>
    %112 = arith.truncf %111 : vector<8x8xf32> to vector<8x8xbf16>
    %cst_31 = arith.constant dense<0.000000e+00> : vector<8x48xf32>
    %113 = tpu.matmul %112, %99, %cst_31 {dimension_numbers = #tpu.dot_dimension_numbers<[1], [0], [0], [1], [0, 0, 1, 1], [], []>} : vector<8x8xbf16>, vector<8x48xbf16>, vector<8x48xf32> -> vector<8x48xf32>
    %114 = arith.truncf %113 : vector<8x48xf32> to vector<8x48xbf16>
    %c0_32 = arith.constant 0 : index
    %c192 = arith.constant 192 : index
    %115 = vector.load %arg7[%c0_32, %c192] : memref<16x384xbf16, #tpu.memory_space<vmem>>, vector<8x48xbf16>
    tpu.vector_store %arg7[%c0_32, %c192], %114 {strides = array<i32>} : memref<16x384xbf16, #tpu.memory_space<vmem>>, vector<8x48xbf16>,
    %116 = vector.extract_strided_slice %10 {offsets = [0, 240], sizes = [8, 48], strides = [1, 1]} : vector<16x384xbf16> to vector<8x48xbf16>
    %117 = vector.extract_strided_slice %12 {offsets = [0, 240], sizes = [8, 48], strides = [1, 1]} : vector<16x384xbf16> to vector<8x48xbf16>
    %118 = vector.extract_strided_slice %14 {offsets = [0, 240], sizes = [8, 48], strides = [1, 1]} : vector<16x384xbf16> to vector<8x48xbf16>
    "tpu.trace_start"() <{level = 10 : i32, message = "td,sd->ts"}> : () -> ()
    %cst_33 = arith.constant dense<0.000000e+00> : vector<8x8xf32>
    %119 = tpu.matmul %116, %117, %cst_33 {dimension_numbers = #tpu.dot_dimension_numbers<[1], [1], [0], [0], [0, 0, 1, 0], [], []>} : vector<8x48xbf16>, vector<8x48xbf16>, vector<8x8xf32> -> vector<8x8xf32>
    "tpu.trace_stop"() : () -> ()
    %120 = arith.addf %119, %20 : vector<8x8xf32>
    %cst_34 = arith.constant dense<0xFF800000> : vector<8xf32>
    %121 = vector.multi_reduction <maximumf>, %120, %cst_34 [1] : vector<8x8xf32> to vector<8xf32>
    %122 = vector.shape_cast %121 : vector<8xf32> to vector<8x1xf32>
    %123 = vector.broadcast %122 : vector<8x1xf32> to vector<8x8xf32>
    %124 = arith.subf %120, %123 : vector<8x8xf32>
    %125 = math.exp %124 : vector<8x8xf32>
    %cst_35 = arith.constant dense<0.000000e+00> : vector<8xf32>
    %126 = vector.multi_reduction <add>, %125, %cst_35 [1] : vector<8x8xf32> to vector<8xf32>
    %127 = vector.shape_cast %126 : vector<8xf32> to vector<8x1xf32>
    %128 = tpu.reciprocal %127 {approx = true} : vector<8x1xf32> -> vector<8x1xf32>
    %129 = vector.broadcast %128 : vector<8x1xf32> to vector<8x8xf32>
    %130 = arith.mulf %125, %129 : vector<8x8xf32>
    %131 = arith.truncf %130 : vector<8x8xf32> to vector<8x8xbf16>
    %cst_36 = arith.constant dense<0.000000e+00> : vector<8x48xf32>
    %132 = tpu.matmul %131, %118, %cst_36 {dimension_numbers = #tpu.dot_dimension_numbers<[1], [0], [0], [1], [0, 0, 1, 1], [], []>} : vector<8x8xbf16>, vector<8x48xbf16>, vector<8x48xf32> -> vector<8x48xf32>
    %133 = arith.truncf %132 : vector<8x48xf32> to vector<8x48xbf16>
    %c0_37 = arith.constant 0 : index
    %c240 = arith.constant 240 : index
    %134 = vector.load %arg7[%c0_37, %c240] : memref<16x384xbf16, #tpu.memory_space<vmem>>, vector<8x48xbf16>
    tpu.vector_store %arg7[%c0_37, %c240], %133 {strides = array<i32>} : memref<16x384xbf16, #tpu.memory_space<vmem>>, vector<8x48xbf16>,
    %135 = vector.extract_strided_slice %10 {offsets = [0, 288], sizes = [8, 48], strides = [1, 1]} : vector<16x384xbf16> to vector<8x48xbf16>
    %136 = vector.extract_strided_slice %12 {offsets = [0, 288], sizes = [8, 48], strides = [1, 1]} : vector<16x384xbf16> to vector<8x48xbf16>
    %137 = vector.extract_strided_slice %14 {offsets = [0, 288], sizes = [8, 48], strides = [1, 1]} : vector<16x384xbf16> to vector<8x48xbf16>
    "tpu.trace_start"() <{level = 10 : i32, message = "td,sd->ts"}> : () -> ()
    %cst_38 = arith.constant dense<0.000000e+00> : vector<8x8xf32>
    %138 = tpu.matmul %135, %136, %cst_38 {dimension_numbers = #tpu.dot_dimension_numbers<[1], [1], [0], [0], [0, 0, 1, 0], [], []>} : vector<8x48xbf16>, vector<8x48xbf16>, vector<8x8xf32> -> vector<8x8xf32>
    "tpu.trace_stop"() : () -> ()
    %139 = arith.addf %138, %20 : vector<8x8xf32>
    %cst_39 = arith.constant dense<0xFF800000> : vector<8xf32>
    %140 = vector.multi_reduction <maximumf>, %139, %cst_39 [1] : vector<8x8xf32> to vector<8xf32>
    %141 = vector.shape_cast %140 : vector<8xf32> to vector<8x1xf32>
    %142 = vector.broadcast %141 : vector<8x1xf32> to vector<8x8xf32>
    %143 = arith.subf %139, %142 : vector<8x8xf32>
    %144 = math.exp %143 : vector<8x8xf32>
    %cst_40 = arith.constant dense<0.000000e+00> : vector<8xf32>
    %145 = vector.multi_reduction <add>, %144, %cst_40 [1] : vector<8x8xf32> to vector<8xf32>
    %146 = vector.shape_cast %145 : vector<8xf32> to vector<8x1xf32>
    %147 = tpu.reciprocal %146 {approx = true} : vector<8x1xf32> -> vector<8x1xf32>
    %148 = vector.broadcast %147 : vector<8x1xf32> to vector<8x8xf32>
    %149 = arith.mulf %144, %148 : vector<8x8xf32>
    %150 = arith.truncf %149 : vector<8x8xf32> to vector<8x8xbf16>
    %cst_41 = arith.constant dense<0.000000e+00> : vector<8x48xf32>
    %151 = tpu.matmul %150, %137, %cst_41 {dimension_numbers = #tpu.dot_dimension_numbers<[1], [0], [0], [1], [0, 0, 1, 1], [], []>} : vector<8x8xbf16>, vector<8x48xbf16>, vector<8x48xf32> -> vector<8x48xf32>
    %152 = arith.truncf %151 : vector<8x48xf32> to vector<8x48xbf16>
    %c0_42 = arith.constant 0 : index
    %c288 = arith.constant 288 : index
    %153 = vector.load %arg7[%c0_42, %c288] : memref<16x384xbf16, #tpu.memory_space<vmem>>, vector<8x48xbf16>
    tpu.vector_store %arg7[%c0_42, %c288], %152 {strides = array<i32>} : memref<16x384xbf16, #tpu.memory_space<vmem>>, vector<8x48xbf16>,
    %154 = vector.extract_strided_slice %10 {offsets = [0, 336], sizes = [8, 48], strides = [1, 1]} : vector<16x384xbf16> to vector<8x48xbf16>
    %155 = vector.extract_strided_slice %12 {offsets = [0, 336], sizes = [8, 48], strides = [1, 1]} : vector<16x384xbf16> to vector<8x48xbf16>
    %156 = vector.extract_strided_slice %14 {offsets = [0, 336], sizes = [8, 48], strides = [1, 1]} : vector<16x384xbf16> to vector<8x48xbf16>
    "tpu.trace_start"() <{level = 10 : i32, message = "td,sd->ts"}> : () -> ()
    %cst_43 = arith.constant dense<0.000000e+00> : vector<8x8xf32>
    %157 = tpu.matmul %154, %155, %cst_43 {dimension_numbers = #tpu.dot_dimension_numbers<[1], [1], [0], [0], [0, 0, 1, 0], [], []>} : vector<8x48xbf16>, vector<8x48xbf16>, vector<8x8xf32> -> vector<8x8xf32>
    "tpu.trace_stop"() : () -> ()
    %158 = arith.addf %157, %20 : vector<8x8xf32>
    %cst_44 = arith.constant dense<0xFF800000> : vector<8xf32>
    %159 = vector.multi_reduction <maximumf>, %158, %cst_44 [1] : vector<8x8xf32> to vector<8xf32>
    %160 = vector.shape_cast %159 : vector<8xf32> to vector<8x1xf32>
    %161 = vector.broadcast %160 : vector<8x1xf32> to vector<8x8xf32>
    %162 = arith.subf %158, %161 : vector<8x8xf32>
    %163 = math.exp %162 : vector<8x8xf32>
    %cst_45 = arith.constant dense<0.000000e+00> : vector<8xf32>
    %164 = vector.multi_reduction <add>, %163, %cst_45 [1] : vector<8x8xf32> to vector<8xf32>
    %165 = vector.shape_cast %164 : vector<8xf32> to vector<8x1xf32>
    %166 = tpu.reciprocal %165 {approx = true} : vector<8x1xf32> -> vector<8x1xf32>
    %167 = vector.broadcast %166 : vector<8x1xf32> to vector<8x8xf32>
    %168 = arith.mulf %163, %167 : vector<8x8xf32>
    %169 = arith.truncf %168 : vector<8x8xf32> to vector<8x8xbf16>
    %cst_46 = arith.constant dense<0.000000e+00> : vector<8x48xf32>
    %170 = tpu.matmul %169, %156, %cst_46 {dimension_numbers = #tpu.dot_dimension_numbers<[1], [0], [0], [1], [0, 0, 1, 1], [], []>} : vector<8x8xbf16>, vector<8x48xbf16>, vector<8x48xf32> -> vector<8x48xf32>
    %171 = arith.truncf %170 : vector<8x48xf32> to vector<8x48xbf16>
    %c0_47 = arith.constant 0 : index
    %c336 = arith.constant 336 : index
    %172 = vector.load %arg7[%c0_47, %c336] : memref<16x384xbf16, #tpu.memory_space<vmem>>, vector<8x48xbf16>
    tpu.vector_store %arg7[%c0_47, %c336], %171 {strides = array<i32>} : memref<16x384xbf16, #tpu.memory_space<vmem>>, vector<8x48xbf16>,
    %173 = vector.extract_strided_slice %10 {offsets = [8, 0], sizes = [8, 48], strides = [1, 1]} : vector<16x384xbf16> to vector<8x48xbf16>
    %174 = vector.extract_strided_slice %12 {offsets = [8, 0], sizes = [8, 48], strides = [1, 1]} : vector<16x384xbf16> to vector<8x48xbf16>
    %175 = vector.extract_strided_slice %14 {offsets = [8, 0], sizes = [8, 48], strides = [1, 1]} : vector<16x384xbf16> to vector<8x48xbf16>
    "tpu.trace_start"() <{level = 10 : i32, message = "td,sd->ts"}> : () -> ()
    %cst_48 = arith.constant dense<0.000000e+00> : vector<8x8xf32>
    %176 = tpu.matmul %173, %174, %cst_48 {dimension_numbers = #tpu.dot_dimension_numbers<[1], [1], [0], [0], [0, 0, 1, 0], [], []>} : vector<8x48xbf16>, vector<8x48xbf16>, vector<8x8xf32> -> vector<8x8xf32>
    "tpu.trace_stop"() : () -> ()
    %177 = arith.addf %176, %20 : vector<8x8xf32>
    %cst_49 = arith.constant dense<0xFF800000> : vector<8xf32>
    %178 = vector.multi_reduction <maximumf>, %177, %cst_49 [1] : vector<8x8xf32> to vector<8xf32>
    %179 = vector.shape_cast %178 : vector<8xf32> to vector<8x1xf32>
    %180 = vector.broadcast %179 : vector<8x1xf32> to vector<8x8xf32>
    %181 = arith.subf %177, %180 : vector<8x8xf32>
    %182 = math.exp %181 : vector<8x8xf32>
    %cst_50 = arith.constant dense<0.000000e+00> : vector<8xf32>
    %183 = vector.multi_reduction <add>, %182, %cst_50 [1] : vector<8x8xf32> to vector<8xf32>
    %184 = vector.shape_cast %183 : vector<8xf32> to vector<8x1xf32>
    %185 = tpu.reciprocal %184 {approx = true} : vector<8x1xf32> -> vector<8x1xf32>
    %186 = vector.broadcast %185 : vector<8x1xf32> to vector<8x8xf32>
    %187 = arith.mulf %182, %186 : vector<8x8xf32>
    %188 = arith.truncf %187 : vector<8x8xf32> to vector<8x8xbf16>
    %cst_51 = arith.constant dense<0.000000e+00> : vector<8x48xf32>
    %189 = tpu.matmul %188, %175, %cst_51 {dimension_numbers = #tpu.dot_dimension_numbers<[1], [0], [0], [1], [0, 0, 1, 1], [], []>} : vector<8x8xbf16>, vector<8x48xbf16>, vector<8x48xf32> -> vector<8x48xf32>
    %190 = arith.truncf %189 : vector<8x48xf32> to vector<8x48xbf16>
    %c8 = arith.constant 8 : index
    %c0_52 = arith.constant 0 : index
    %191 = vector.load %arg7[%c8, %c0_52] : memref<16x384xbf16, #tpu.memory_space<vmem>>, vector<8x48xbf16>
    tpu.vector_store %arg7[%c8, %c0_52], %190 {strides = array<i32>} : memref<16x384xbf16, #tpu.memory_space<vmem>>, vector<8x48xbf16>,
    %192 = vector.extract_strided_slice %10 {offsets = [8, 48], sizes = [8, 48], strides = [1, 1]} : vector<16x384xbf16> to vector<8x48xbf16>
    %193 = vector.extract_strided_slice %12 {offsets = [8, 48], sizes = [8, 48], strides = [1, 1]} : vector<16x384xbf16> to vector<8x48xbf16>
    %194 = vector.extract_strided_slice %14 {offsets = [8, 48], sizes = [8, 48], strides = [1, 1]} : vector<16x384xbf16> to vector<8x48xbf16>
    "tpu.trace_start"() <{level = 10 : i32, message = "td,sd->ts"}> : () -> ()
    %cst_53 = arith.constant dense<0.000000e+00> : vector<8x8xf32>
    %195 = tpu.matmul %192, %193, %cst_53 {dimension_numbers = #tpu.dot_dimension_numbers<[1], [1], [0], [0], [0, 0, 1, 0], [], []>} : vector<8x48xbf16>, vector<8x48xbf16>, vector<8x8xf32> -> vector<8x8xf32>
    "tpu.trace_stop"() : () -> ()
    %196 = arith.addf %195, %20 : vector<8x8xf32>
    %cst_54 = arith.constant dense<0xFF800000> : vector<8xf32>
    %197 = vector.multi_reduction <maximumf>, %196, %cst_54 [1] : vector<8x8xf32> to vector<8xf32>
    %198 = vector.shape_cast %197 : vector<8xf32> to vector<8x1xf32>
    %199 = vector.broadcast %198 : vector<8x1xf32> to vector<8x8xf32>
    %200 = arith.subf %196, %199 : vector<8x8xf32>
    %201 = math.exp %200 : vector<8x8xf32>
    %cst_55 = arith.constant dense<0.000000e+00> : vector<8xf32>
    %202 = vector.multi_reduction <add>, %201, %cst_55 [1] : vector<8x8xf32> to vector<8xf32>
    %203 = vector.shape_cast %202 : vector<8xf32> to vector<8x1xf32>
    %204 = tpu.reciprocal %203 {approx = true} : vector<8x1xf32> -> vector<8x1xf32>
    %205 = vector.broadcast %204 : vector<8x1xf32> to vector<8x8xf32>
    %206 = arith.mulf %201, %205 : vector<8x8xf32>
    %207 = arith.truncf %206 : vector<8x8xf32> to vector<8x8xbf16>
    %cst_56 = arith.constant dense<0.000000e+00> : vector<8x48xf32>
    %208 = tpu.matmul %207, %194, %cst_56 {dimension_numbers = #tpu.dot_dimension_numbers<[1], [0], [0], [1], [0, 0, 1, 1], [], []>} : vector<8x8xbf16>, vector<8x48xbf16>, vector<8x48xf32> -> vector<8x48xf32>
    %209 = arith.truncf %208 : vector<8x48xf32> to vector<8x48xbf16>
    %c8_57 = arith.constant 8 : index
    %c48_58 = arith.constant 48 : index
    %210 = vector.load %arg7[%c8_57, %c48_58] : memref<16x384xbf16, #tpu.memory_space<vmem>>, vector<8x48xbf16>
    tpu.vector_store %arg7[%c8_57, %c48_58], %209 {strides = array<i32>} : memref<16x384xbf16, #tpu.memory_space<vmem>>, vector<8x48xbf16>,
    %211 = vector.extract_strided_slice %10 {offsets = [8, 96], sizes = [8, 48], strides = [1, 1]} : vector<16x384xbf16> to vector<8x48xbf16>
    %212 = vector.extract_strided_slice %12 {offsets = [8, 96], sizes = [8, 48], strides = [1, 1]} : vector<16x384xbf16> to vector<8x48xbf16>
    %213 = vector.extract_strided_slice %14 {offsets = [8, 96], sizes = [8, 48], strides = [1, 1]} : vector<16x384xbf16> to vector<8x48xbf16>
    "tpu.trace_start"() <{level = 10 : i32, message = "td,sd->ts"}> : () -> ()
    %cst_59 = arith.constant dense<0.000000e+00> : vector<8x8xf32>
    %214 = tpu.matmul %211, %212, %cst_59 {dimension_numbers = #tpu.dot_dimension_numbers<[1], [1], [0], [0], [0, 0, 1, 0], [], []>} : vector<8x48xbf16>, vector<8x48xbf16>, vector<8x8xf32> -> vector<8x8xf32>
    "tpu.trace_stop"() : () -> ()
    %215 = arith.addf %214, %20 : vector<8x8xf32>
    %cst_60 = arith.constant dense<0xFF800000> : vector<8xf32>
    %216 = vector.multi_reduction <maximumf>, %215, %cst_60 [1] : vector<8x8xf32> to vector<8xf32>
    %217 = vector.shape_cast %216 : vector<8xf32> to vector<8x1xf32>
    %218 = vector.broadcast %217 : vector<8x1xf32> to vector<8x8xf32>
    %219 = arith.subf %215, %218 : vector<8x8xf32>
    %220 = math.exp %219 : vector<8x8xf32>
    %cst_61 = arith.constant dense<0.000000e+00> : vector<8xf32>
    %221 = vector.multi_reduction <add>, %220, %cst_61 [1] : vector<8x8xf32> to vector<8xf32>
    %222 = vector.shape_cast %221 : vector<8xf32> to vector<8x1xf32>
    %223 = tpu.reciprocal %222 {approx = true} : vector<8x1xf32> -> vector<8x1xf32>
    %224 = vector.broadcast %223 : vector<8x1xf32> to vector<8x8xf32>
    %225 = arith.mulf %220, %224 : vector<8x8xf32>
    %226 = arith.truncf %225 : vector<8x8xf32> to vector<8x8xbf16>
    %cst_62 = arith.constant dense<0.000000e+00> : vector<8x48xf32>
    %227 = tpu.matmul %226, %213, %cst_62 {dimension_numbers = #tpu.dot_dimension_numbers<[1], [0], [0], [1], [0, 0, 1, 1], [], []>} : vector<8x8xbf16>, vector<8x48xbf16>, vector<8x48xf32> -> vector<8x48xf32>
    %228 = arith.truncf %227 : vector<8x48xf32> to vector<8x48xbf16>
    %c8_63 = arith.constant 8 : index
    %c96_64 = arith.constant 96 : index
    %229 = vector.load %arg7[%c8_63, %c96_64] : memref<16x384xbf16, #tpu.memory_space<vmem>>, vector<8x48xbf16>
    tpu.vector_store %arg7[%c8_63, %c96_64], %228 {strides = array<i32>} : memref<16x384xbf16, #tpu.memory_space<vmem>>, vector<8x48xbf16>,
    %230 = vector.extract_strided_slice %10 {offsets = [8, 144], sizes = [8, 48], strides = [1, 1]} : vector<16x384xbf16> to vector<8x48xbf16>
    %231 = vector.extract_strided_slice %12 {offsets = [8, 144], sizes = [8, 48], strides = [1, 1]} : vector<16x384xbf16> to vector<8x48xbf16>
    %232 = vector.extract_strided_slice %14 {offsets = [8, 144], sizes = [8, 48], strides = [1, 1]} : vector<16x384xbf16> to vector<8x48xbf16>
    "tpu.trace_start"() <{level = 10 : i32, message = "td,sd->ts"}> : () -> ()
    %cst_65 = arith.constant dense<0.000000e+00> : vector<8x8xf32>
    %233 = tpu.matmul %230, %231, %cst_65 {dimension_numbers = #tpu.dot_dimension_numbers<[1], [1], [0], [0], [0, 0, 1, 0], [], []>} : vector<8x48xbf16>, vector<8x48xbf16>, vector<8x8xf32> -> vector<8x8xf32>
    "tpu.trace_stop"() : () -> ()
    %234 = arith.addf %233, %20 : vector<8x8xf32>
    %cst_66 = arith.constant dense<0xFF800000> : vector<8xf32>
    %235 = vector.multi_reduction <maximumf>, %234, %cst_66 [1] : vector<8x8xf32> to vector<8xf32>
    %236 = vector.shape_cast %235 : vector<8xf32> to vector<8x1xf32>
    %237 = vector.broadcast %236 : vector<8x1xf32> to vector<8x8xf32>
    %238 = arith.subf %234, %237 : vector<8x8xf32>
    %239 = math.exp %238 : vector<8x8xf32>
    %cst_67 = arith.constant dense<0.000000e+00> : vector<8xf32>
    %240 = vector.multi_reduction <add>, %239, %cst_67 [1] : vector<8x8xf32> to vector<8xf32>
    %241 = vector.shape_cast %240 : vector<8xf32> to vector<8x1xf32>
    %242 = tpu.reciprocal %241 {approx = true} : vector<8x1xf32> -> vector<8x1xf32>
    %243 = vector.broadcast %242 : vector<8x1xf32> to vector<8x8xf32>
    %244 = arith.mulf %239, %243 : vector<8x8xf32>
    %245 = arith.truncf %244 : vector<8x8xf32> to vector<8x8xbf16>
    %cst_68 = arith.constant dense<0.000000e+00> : vector<8x48xf32>
    %246 = tpu.matmul %245, %232, %cst_68 {dimension_numbers = #tpu.dot_dimension_numbers<[1], [0], [0], [1], [0, 0, 1, 1], [], []>} : vector<8x8xbf16>, vector<8x48xbf16>, vector<8x48xf32> -> vector<8x48xf32>
    %247 = arith.truncf %246 : vector<8x48xf32> to vector<8x48xbf16>
    %c8_69 = arith.constant 8 : index
    %c144_70 = arith.constant 144 : index
    %248 = vector.load %arg7[%c8_69, %c144_70] : memref<16x384xbf16, #tpu.memory_space<vmem>>, vector<8x48xbf16>
    tpu.vector_store %arg7[%c8_69, %c144_70], %247 {strides = array<i32>} : memref<16x384xbf16, #tpu.memory_space<vmem>>, vector<8x48xbf16>,
    %249 = vector.extract_strided_slice %10 {offsets = [8, 192], sizes = [8, 48], strides = [1, 1]} : vector<16x384xbf16> to vector<8x48xbf16>
    %250 = vector.extract_strided_slice %12 {offsets = [8, 192], sizes = [8, 48], strides = [1, 1]} : vector<16x384xbf16> to vector<8x48xbf16>
    %251 = vector.extract_strided_slice %14 {offsets = [8, 192], sizes = [8, 48], strides = [1, 1]} : vector<16x384xbf16> to vector<8x48xbf16>
    "tpu.trace_start"() <{level = 10 : i32, message = "td,sd->ts"}> : () -> ()
    %cst_71 = arith.constant dense<0.000000e+00> : vector<8x8xf32>
    %252 = tpu.matmul %249, %250, %cst_71 {dimension_numbers = #tpu.dot_dimension_numbers<[1], [1], [0], [0], [0, 0, 1, 0], [], []>} : vector<8x48xbf16>, vector<8x48xbf16>, vector<8x8xf32> -> vector<8x8xf32>
    "tpu.trace_stop"() : () -> ()
    %253 = arith.addf %252, %20 : vector<8x8xf32>
    %cst_72 = arith.constant dense<0xFF800000> : vector<8xf32>
    %254 = vector.multi_reduction <maximumf>, %253, %cst_72 [1] : vector<8x8xf32> to vector<8xf32>
    %255 = vector.shape_cast %254 : vector<8xf32> to vector<8x1xf32>
    %256 = vector.broadcast %255 : vector<8x1xf32> to vector<8x8xf32>
    %257 = arith.subf %253, %256 : vector<8x8xf32>
    %258 = math.exp %257 : vector<8x8xf32>
    %cst_73 = arith.constant dense<0.000000e+00> : vector<8xf32>
    %259 = vector.multi_reduction <add>, %258, %cst_73 [1] : vector<8x8xf32> to vector<8xf32>
    %260 = vector.shape_cast %259 : vector<8xf32> to vector<8x1xf32>
    %261 = tpu.reciprocal %260 {approx = true} : vector<8x1xf32> -> vector<8x1xf32>
    %262 = vector.broadcast %261 : vector<8x1xf32> to vector<8x8xf32>
    %263 = arith.mulf %258, %262 : vector<8x8xf32>
    %264 = arith.truncf %263 : vector<8x8xf32> to vector<8x8xbf16>
    %cst_74 = arith.constant dense<0.000000e+00> : vector<8x48xf32>
    %265 = tpu.matmul %264, %251, %cst_74 {dimension_numbers = #tpu.dot_dimension_numbers<[1], [0], [0], [1], [0, 0, 1, 1], [], []>} : vector<8x8xbf16>, vector<8x48xbf16>, vector<8x48xf32> -> vector<8x48xf32>
    %266 = arith.truncf %265 : vector<8x48xf32> to vector<8x48xbf16>
    %c8_75 = arith.constant 8 : index
    %c192_76 = arith.constant 192 : index
    %267 = vector.load %arg7[%c8_75, %c192_76] : memref<16x384xbf16, #tpu.memory_space<vmem>>, vector<8x48xbf16>
    tpu.vector_store %arg7[%c8_75, %c192_76], %266 {strides = array<i32>} : memref<16x384xbf16, #tpu.memory_space<vmem>>, vector<8x48xbf16>,
    %268 = vector.extract_strided_slice %10 {offsets = [8, 240], sizes = [8, 48], strides = [1, 1]} : vector<16x384xbf16> to vector<8x48xbf16>
    %269 = vector.extract_strided_slice %12 {offsets = [8, 240], sizes = [8, 48], strides = [1, 1]} : vector<16x384xbf16> to vector<8x48xbf16>
    %270 = vector.extract_strided_slice %14 {offsets = [8, 240], sizes = [8, 48], strides = [1, 1]} : vector<16x384xbf16> to vector<8x48xbf16>
    "tpu.trace_start"() <{level = 10 : i32, message = "td,sd->ts"}> : () -> ()
    %cst_77 = arith.constant dense<0.000000e+00> : vector<8x8xf32>
    %271 = tpu.matmul %268, %269, %cst_77 {dimension_numbers = #tpu.dot_dimension_numbers<[1], [1], [0], [0], [0, 0, 1, 0], [], []>} : vector<8x48xbf16>, vector<8x48xbf16>, vector<8x8xf32> -> vector<8x8xf32>
    "tpu.trace_stop"() : () -> ()
    %272 = arith.addf %271, %20 : vector<8x8xf32>
    %cst_78 = arith.constant dense<0xFF800000> : vector<8xf32>
    %273 = vector.multi_reduction <maximumf>, %272, %cst_78 [1] : vector<8x8xf32> to vector<8xf32>
    %274 = vector.shape_cast %273 : vector<8xf32> to vector<8x1xf32>
    %275 = vector.broadcast %274 : vector<8x1xf32> to vector<8x8xf32>
    %276 = arith.subf %272, %275 : vector<8x8xf32>
    %277 = math.exp %276 : vector<8x8xf32>
    %cst_79 = arith.constant dense<0.000000e+00> : vector<8xf32>
    %278 = vector.multi_reduction <add>, %277, %cst_79 [1] : vector<8x8xf32> to vector<8xf32>
    %279 = vector.shape_cast %278 : vector<8xf32> to vector<8x1xf32>
    %280 = tpu.reciprocal %279 {approx = true} : vector<8x1xf32> -> vector<8x1xf32>
    %281 = vector.broadcast %280 : vector<8x1xf32> to vector<8x8xf32>
    %282 = arith.mulf %277, %281 : vector<8x8xf32>
    %283 = arith.truncf %282 : vector<8x8xf32> to vector<8x8xbf16>
    %cst_80 = arith.constant dense<0.000000e+00> : vector<8x48xf32>
    %284 = tpu.matmul %283, %270, %cst_80 {dimension_numbers = #tpu.dot_dimension_numbers<[1], [0], [0], [1], [0, 0, 1, 1], [], []>} : vector<8x8xbf16>, vector<8x48xbf16>, vector<8x48xf32> -> vector<8x48xf32>
    %285 = arith.truncf %284 : vector<8x48xf32> to vector<8x48xbf16>
    %c8_81 = arith.constant 8 : index
    %c240_82 = arith.constant 240 : index
    %286 = vector.load %arg7[%c8_81, %c240_82] : memref<16x384xbf16, #tpu.memory_space<vmem>>, vector<8x48xbf16>
    tpu.vector_store %arg7[%c8_81, %c240_82], %285 {strides = array<i32>} : memref<16x384xbf16, #tpu.memory_space<vmem>>, vector<8x48xbf16>,
    %287 = vector.extract_strided_slice %10 {offsets = [8, 288], sizes = [8, 48], strides = [1, 1]} : vector<16x384xbf16> to vector<8x48xbf16>
    %288 = vector.extract_strided_slice %12 {offsets = [8, 288], sizes = [8, 48], strides = [1, 1]} : vector<16x384xbf16> to vector<8x48xbf16>
    %289 = vector.extract_strided_slice %14 {offsets = [8, 288], sizes = [8, 48], strides = [1, 1]} : vector<16x384xbf16> to vector<8x48xbf16>
    "tpu.trace_start"() <{level = 10 : i32, message = "td,sd->ts"}> : () -> ()
    %cst_83 = arith.constant dense<0.000000e+00> : vector<8x8xf32>
    %290 = tpu.matmul %287, %288, %cst_83 {dimension_numbers = #tpu.dot_dimension_numbers<[1], [1], [0], [0], [0, 0, 1, 0], [], []>} : vector<8x48xbf16>, vector<8x48xbf16>, vector<8x8xf32> -> vector<8x8xf32>
    "tpu.trace_stop"() : () -> ()
    %291 = arith.addf %290, %20 : vector<8x8xf32>
    %cst_84 = arith.constant dense<0xFF800000> : vector<8xf32>
    %292 = vector.multi_reduction <maximumf>, %291, %cst_84 [1] : vector<8x8xf32> to vector<8xf32>
    %293 = vector.shape_cast %292 : vector<8xf32> to vector<8x1xf32>
    %294 = vector.broadcast %293 : vector<8x1xf32> to vector<8x8xf32>
    %295 = arith.subf %291, %294 : vector<8x8xf32>
    %296 = math.exp %295 : vector<8x8xf32>
    %cst_85 = arith.constant dense<0.000000e+00> : vector<8xf32>
    %297 = vector.multi_reduction <add>, %296, %cst_85 [1] : vector<8x8xf32> to vector<8xf32>
    %298 = vector.shape_cast %297 : vector<8xf32> to vector<8x1xf32>
    %299 = tpu.reciprocal %298 {approx = true} : vector<8x1xf32> -> vector<8x1xf32>
    %300 = vector.broadcast %299 : vector<8x1xf32> to vector<8x8xf32>
    %301 = arith.mulf %296, %300 : vector<8x8xf32>
    %302 = arith.truncf %301 : vector<8x8xf32> to vector<8x8xbf16>
    %cst_86 = arith.constant dense<0.000000e+00> : vector<8x48xf32>
    %303 = tpu.matmul %302, %289, %cst_86 {dimension_numbers = #tpu.dot_dimension_numbers<[1], [0], [0], [1], [0, 0, 1, 1], [], []>} : vector<8x8xbf16>, vector<8x48xbf16>, vector<8x48xf32> -> vector<8x48xf32>
    %304 = arith.truncf %303 : vector<8x48xf32> to vector<8x48xbf16>
    %c8_87 = arith.constant 8 : index
    %c288_88 = arith.constant 288 : index
    %305 = vector.load %arg7[%c8_87, %c288_88] : memref<16x384xbf16, #tpu.memory_space<vmem>>, vector<8x48xbf16>
    tpu.vector_store %arg7[%c8_87, %c288_88], %304 {strides = array<i32>} : memref<16x384xbf16, #tpu.memory_space<vmem>>, vector<8x48xbf16>,
    %306 = vector.extract_strided_slice %10 {offsets = [8, 336], sizes = [8, 48], strides = [1, 1]} : vector<16x384xbf16> to vector<8x48xbf16>
    %307 = vector.extract_strided_slice %12 {offsets = [8, 336], sizes = [8, 48], strides = [1, 1]} : vector<16x384xbf16> to vector<8x48xbf16>
    %308 = vector.extract_strided_slice %14 {offsets = [8, 336], sizes = [8, 48], strides = [1, 1]} : vector<16x384xbf16> to vector<8x48xbf16>
    "tpu.trace_start"() <{level = 10 : i32, message = "td,sd->ts"}> : () -> ()
    %cst_89 = arith.constant dense<0.000000e+00> : vector<8x8xf32>
    %309 = tpu.matmul %306, %307, %cst_89 {dimension_numbers = #tpu.dot_dimension_numbers<[1], [1], [0], [0], [0, 0, 1, 0], [], []>} : vector<8x48xbf16>, vector<8x48xbf16>, vector<8x8xf32> -> vector<8x8xf32>
    "tpu.trace_stop"() : () -> ()
    %310 = arith.addf %309, %20 : vector<8x8xf32>
    %cst_90 = arith.constant dense<0xFF800000> : vector<8xf32>
    %311 = vector.multi_reduction <maximumf>, %310, %cst_90 [1] : vector<8x8xf32> to vector<8xf32>
    %312 = vector.shape_cast %311 : vector<8xf32> to vector<8x1xf32>
    %313 = vector.broadcast %312 : vector<8x1xf32> to vector<8x8xf32>
    %314 = arith.subf %310, %313 : vector<8x8xf32>
    %315 = math.exp %314 : vector<8x8xf32>
    %cst_91 = arith.constant dense<0.000000e+00> : vector<8xf32>
    %316 = vector.multi_reduction <add>, %315, %cst_91 [1] : vector<8x8xf32> to vector<8xf32>
    %317 = vector.shape_cast %316 : vector<8xf32> to vector<8x1xf32>
    %318 = tpu.reciprocal %317 {approx = true} : vector<8x1xf32> -> vector<8x1xf32>
    %319 = vector.broadcast %318 : vector<8x1xf32> to vector<8x8xf32>
    %320 = arith.mulf %315, %319 : vector<8x8xf32>
    %321 = arith.truncf %320 : vector<8x8xf32> to vector<8x8xbf16>
    %cst_92 = arith.constant dense<0.000000e+00> : vector<8x48xf32>
    %322 = tpu.matmul %321, %308, %cst_92 {dimension_numbers = #tpu.dot_dimension_numbers<[1], [0], [0], [1], [0, 0, 1, 1], [], []>} : vector<8x8xbf16>, vector<8x48xbf16>, vector<8x48xf32> -> vector<8x48xf32>
    %323 = arith.truncf %322 : vector<8x48xf32> to vector<8x48xbf16>
    %c8_93 = arith.constant 8 : index
    %c336_94 = arith.constant 336 : index
    %324 = vector.load %arg7[%c8_93, %c336_94] : memref<16x384xbf16, #tpu.memory_space<vmem>>, vector<8x48xbf16>
    tpu.vector_store %arg7[%c8_93, %c336_94], %323 {strides = array<i32>} : memref<16x384xbf16, #tpu.memory_space<vmem>>, vector<8x48xbf16>,
    %c0_95 = arith.constant 0 : index
    %c0_96 = arith.constant 0 : index
    %325 = vector.load %arg7[%c0_95, %c0_96] : memref<16x384xbf16, #tpu.memory_space<vmem>>, vector<16x384xbf16>
    %c0_97 = arith.constant 0 : index
    %c0_98 = arith.constant 0 : index
    %326 = vector.load %arg4[%c0_97, %c0_98] : memref<384x384xbf16, #tpu.memory_space<vmem>>, vector<384x384xbf16>
    %cst_99 = arith.constant dense<0.000000e+00> : vector<16x384xf32>
    %327 = tpu.matmul %325, %326, %cst_99 {dimension_numbers = #tpu.dot_dimension_numbers<[1], [0], [0], [1], [0, 0, 1, 1], [], []>} : vector<16x384xbf16>, vector<384x384xbf16>, vector<16x384xf32> -> vector<16x384xf32>
    %c0_100 = arith.constant 0 : index
    %c0_101 = arith.constant 0 : index
    %328 = vector.load %arg5[%c0_100, %c0_101] : memref<1x384xf32, #tpu.memory_space<vmem>>, vector<1x384xf32>
    %329 = vector.shape_cast %328 : vector<1x384xf32> to vector<384xf32>
    %330 = vector.shape_cast %329 : vector<384xf32> to vector<1x384xf32>
    %331 = vector.broadcast %330 : vector<1x384xf32> to vector<16x384xf32>
    %332 = arith.addf %327, %331 : vector<16x384xf32>
    %c0_102 = arith.constant 0 : index
    %c0_103 = arith.constant 0 : index
    %333 = vector.load %arg6[%c0_102, %c0_103] : memref<16x384xf32, #tpu.memory_space<vmem>>, vector<16x384xf32>
    tpu.vector_store %arg6[%c0_102, %c0_103], %332 {strides = array<i32>} : memref<16x384xf32, #tpu.memory_space<vmem>>, vector<16x384xf32>,
    return
  }
  func.func @transform_0(%arg0: i32) -> (i32, i32) {
    %c0_i32 = arith.constant 0 : i32
    %c0_i32_0 = arith.constant 0 : i32
    return %arg0, %c0_i32 : i32, i32
  }
  func.func @transform_1(%arg0: i32) -> (i32, i32) {
    %c0_i32 = arith.constant 0 : i32
    %c0_i32_0 = arith.constant 0 : i32
    %c0_i32_1 = arith.constant 0 : i32
    return %c0_i32, %c0_i32_0 : i32, i32
  }
  func.func @transform_2(%arg0: i32) -> (i32, i32) {
    %c0_i32 = arith.constant 0 : i32
    %c0_i32_0 = arith.constant 0 : i32
    %c0_i32_1 = arith.constant 0 : i32
    return %c0_i32, %c0_i32_0 : i32, i32
  }
  func.func @transform_3(%arg0: i32) -> (i32, i32) {
    %c0_i32 = arith.constant 0 : i32
    %c0_i32_0 = arith.constant 0 : i32
    %c0_i32_1 = arith.constant 0 : i32
    return %c0_i32, %c0_i32_0 : i32, i32
  }
  func.func @transform_4(%arg0: i32) -> (i32, i32) {
    %c0_i32 = arith.constant 0 : i32
    %c0_i32_0 = arith.constant 0 : i32
    %c0_i32_1 = arith.constant 0 : i32
    return %c0_i32, %c0_i32_0 : i32, i32
  }
  func.func @transform_5(%arg0: i32) -> (i32, i32) {
    %c0_i32 = arith.constant 0 : i32
    %c0_i32_0 = arith.constant 0 : i32
    return %arg0, %c0_i32 : i32, i32
  }
}

</mosaic_0001>

<bundles_post_ra>
// kernel: tpu_custom_call.1
= control target key start
LH: loop header
LB: loop body
LE: loop exit
PB: predicated region body
PF: predicated region fallthrough
CT: control target
= control target key end

     0   :  { %10 = vsyncpa [#allocation4], 0  ;;  %s6579_s0 = inlined_call_operand.hbm [shape: f32[16,384], index: 0, kind: input, shape index: {}]   ;;  %s6580_s1 = inlined_call_operand.hbm [shape: bf16[384,1152], index: 1, kind: input, shape index: {}]   ;;  %s6581_s2 = inlined_call_operand.hbm [shape: f32[1,1152], index: 2, kind: input, shape index: {}]   ;;  %s6582_s3 = inlined_call_operand.hbm [shape: bf16[384,384], index: 3, kind: input, shape index: {}]   ;;  %s6583_s4 = inlined_call_operand.vmem [shape: f32[1,384], index: 4, kind: input, shape index: {}]   ;;  %s6584_s5 = inlined_call_operand.hbm [shape: f32[16,384], index: 5, kind: output, shape index: {}]  }
   0x1   :  { %11 = vsyncpa [#allocation7], 0 }
   0x2   :  { %12 = vsyncpa [#allocation10], 0 }
   0x3   :  { %13 = vsyncpa [#allocation5], 0  ;;  %s5871_s18 = smov [#allocation6]   ;;  %s5753_s22 = scalar_lea.hbm %s6580_s1, 27648 }
   0x4   :  { %s31_s19 = sshll.u32 %s5871_s18, 4  ;;  %p5754_p0 = scmp.ne.s32.totalorder %s6580_s1, %s5753_s22  ;;  %s32_s19 = int_to_ptr.vmem [resolvable:$true] %s31_s19 }
   0x5   :  { %p5757_p1 = scmp.lt.u32.totalorder %s5753_s22, %s6580_s1 }
   0x7   :  { %p5759_p2 = pnand %p5757_p1, %p5754_p0 }
   0x9   :  { %5762 = shalt.err (!%p5759_p2)
}
   0xa   :  { %s5763_s27 = scalar_lea.vmem %s32_s19, 27648  ;;  %p5768_p4 = scmp.lt.s32.totalorder %s32_s19, %s32_s19 }
   0xb   :  { %p5764_p3 = scmp.ne.s32.totalorder %s32_s19, %s5763_s27  ;;  %p5769_p5 = scmp.lt.s32.totalorder %s5763_s27, %s5763_s27 }
   0xd   :  { %p5770_p6 = por %p5769_p5, %p5768_p4 }
   0xf   :  { %p5771_p7 = pnand %p5770_p6, %p5764_p3 }
  0x11   :  { %5774 = shalt.err (!%p5771_p7)
}
  0x12   :  { %s5872_s28 = smov 576   ;;  %s5873_s29 = smov 36  }
  0x13   :  { %37 = dma.hbm_to_vmem [thread:$0]  %s6580_s1, 27648, %s32_s19, [#allocation7], %s5872_s28, %s5872_s28, %s5873_s29  }
  0x14   :  { %s5874_s7 = smov [#allocation3]   ;;  %s5775_s11 = scalar_lea.hbm %s6579_s0, 768 }
  0x15   :  { %s19_s8 = sshll.u32 %s5874_s7, 4  ;;  %p5776_p8 = scmp.ne.s32.totalorder %s6579_s0, %s5775_s11  ;;  %s20_s8 = int_to_ptr.vmem [resolvable:$true] %s19_s8 }
  0x16   :  { %p5779_p9 = scmp.lt.u32.totalorder %s5775_s11, %s6579_s0 }
  0x18   :  { %p5781_p10 = pnand %p5779_p9, %p5776_p8 }
  0x1a   :  { %5784 = shalt.err (!%p5781_p10)
}
  0x1b   :  { %s5785_s16 = scalar_lea.vmem %s20_s8, 768  ;;  %p5790_p12 = scmp.lt.s32.totalorder %s20_s8, %s20_s8 }
  0x1c   :  { %p5786_p11 = scmp.ne.s32.totalorder %s20_s8, %s5785_s16  ;;  %p5791_p13 = scmp.lt.s32.totalorder %s5785_s16, %s5785_s16 }
  0x1e   :  { %p5792_p0 = por %p5791_p13, %p5790_p12 }
  0x20   :  { %p5793_p1 = pnand %p5792_p0, %p5786_p11 }
  0x22   :  { %5796 = shalt.err (!%p5793_p1)
}
  0x23   :  { %s5875_s1 = smov 384   ;;  %s5876_s17 = smov 24  }
  0x24   :  { %25 = dma.hbm_to_vmem [thread:$0]  %s6579_s0, 768, %s20_s8, [#allocation4], %s5875_s1, %s5875_s1, %s5876_s17  }
  0x25   :  { %s5877_s20 = smov [#allocation8]   ;;  %s5878_s22 = smov [#allocation9]  }
  0x26   :  { %s44_s21 = sshll.u32 %s5877_s20, 4  ;;  %s53_s23 = sshll.u32 %s5878_s22, 4  ;;  %s45_s21 = int_to_ptr.vmem [resolvable:$true] %s44_s21  ;;  %s5950_s23 = int_to_ptr.vmem [resolvable:$true] %s53_s23 }
  0x27   :  { %s5797_s26 = scalar_lea.hbm %s6581_s2, 144 }
  0x28   :  { %p5798_p2 = scmp.ne.s32.totalorder %s6581_s2, %s5797_s26  ;;  %p5801_p3 = scmp.lt.u32.totalorder %s5797_s26, %s6581_s2 }
  0x2a   :  { %p5803_p4 = pnand %p5801_p3, %p5798_p2 }
  0x2c   :  { %5806 = shalt.err (!%p5803_p4)
}
  0x2d   :  { %s5807_s0 = scalar_lea.vmem %s45_s21, 144  ;;  %s5811_s6 = scalar_lea.vmem %s45_s21, 160 }
  0x2e   :  { %p5808_p5 = scmp.ne.s32.totalorder %s45_s21, %s5807_s0  ;;  %p5812_p6 = scmp.lt.s32.totalorder %s45_s21, %s45_s21 }
  0x2f   :  { %p5813_p7 = scmp.lt.s32.totalorder %s5811_s6, %s5807_s0 }
  0x31   :  { %p5814_p8 = por %p5813_p7, %p5812_p6 }
  0x33   :  { %p5815_p9 = pnand %p5814_p8, %p5808_p5 }
  0x35   :  { %5818 = shalt.err (!%p5815_p9)
}
  0x36   :  { %47 = dma.hbm_to_vmem [thread:$0]  %s6581_s2, 144, %s45_s21, [#allocation7]  }
  0x37   :  { %s5819_s11 = scalar_lea.hbm %s6582_s3, 9216 }
  0x38   :  { %p5820_p10 = scmp.ne.s32.totalorder %s6582_s3, %s5819_s11  ;;  %p5823_p11 = scmp.lt.u32.totalorder %s5819_s11, %s6582_s3 }
  0x3a   :  { %p5825_p12 = pnand %p5823_p11, %p5820_p10 }
  0x3c   :  { %5828 = shalt.err (!%p5825_p12)
}
  0x3d   :  { %s5829_s16 = scalar_lea.vmem %s5950_s23, 9216  ;;  %p5834_p0 = scmp.lt.s32.totalorder %s5950_s23, %s5950_s23 }
  0x3e   :  { %p5830_p13 = scmp.ne.s32.totalorder %s5950_s23, %s5829_s16  ;;  %p5835_p1 = scmp.lt.s32.totalorder %s5829_s16, %s5829_s16 }
  0x40   :  { %p5836_p2 = por %p5835_p1, %p5834_p0 }
  0x42   :  { %p5837_p3 = pnand %p5836_p2, %p5830_p13 }
  0x44   :  { %5840 = shalt.err (!%p5837_p3)
}
  0x45   :  { %s5879_s2 = smov 192   ;;  %s5880_s18 = smov 12  }
  0x46   :  { %59 = dma.hbm_to_vmem [thread:$0]  %s6582_s3, 9216, %s5950_s23, [#allocation10], %s5879_s2, %s5879_s2, %s5880_s18  }
  0x47   :  { %5863 = dma.done.wait [#allocation4], 768  }
  0x48   :  { %5864 = vsyncadd [#allocation4], 4294966528 }
  0x49   :  { %5865 = dma.done.wait [#allocation7], 27792  }
  0x4a   :  { %5866 = vsyncadd [#allocation7], 4294939504 }
  0x4b   :  { %5867 = dma.done.wait [#allocation10], 9216  }
  0x4c   :  { %5868 = vsyncadd [#allocation10], 4294958080  ;;  %v5281_v0 = vld [vmem:[#allocation6 + $0x4] ss:$36 sps:$4 sm:$0xff]   ;;  %v5283_v1 = vld [vmem:[#allocation6 + $0xc] ss:$36 sps:$4 sm:$0xff]  }
  0x4d   :  { %1477 = vmatprep.subr.bf16.mxu0 %v5281_v0  ;;  %v5285_v2 = vld [vmem:[#allocation6] ss:$36 sps:$4 sm:$0xff]   ;;  %v5286_v3 = vld [vmem:[#allocation6 + $0x8] ss:$36 sps:$4 sm:$0xff]   ;;  %1563 = vmatprep.subr.bf16.mxu1 %v5283_v1  ;;  %v5289_v5 = vld [vmem:[#allocation6 + $0x54] ss:$36 sps:$4 sm:$0xff]  }
  0x4e   :  { %v5287_v4 = vld [vmem:[#allocation6 + $0x4c] ss:$36 sps:$4 sm:$0xff]   ;;  %1478 = vmatpush1.bf16.msra.mxu0 %v5285_v2  ;;  %1564 = vmatpush1.bf16.msra.mxu1 %v5286_v3  ;;  %v5293_v8 = vld [vmem:[#allocation6 + $0x94] ss:$36 sps:$4 sm:$0xff]   ;;  %v5295_v9 = vld [vmem:[#allocation6 + $0x9c] ss:$36 sps:$4 sm:$0xff]  }
  0x4f   :  { %v5291_v6 = vld [vmem:[#allocation6 + $0x48] ss:$36 sps:$4 sm:$0xff]   ;;  %1479 = vmatprep.subr.bf16.mxu0 %v5287_v4  ;;  %v5292_v7 = vld [vmem:[#allocation6 + $0x50] ss:$36 sps:$4 sm:$0xff]   ;;  %1565 = vmatprep.subr.bf16.mxu1 %v5289_v5  ;;  %v5298_v11 = vld [vmem:[#allocation6 + $0x98] ss:$36 sps:$4 sm:$0xff]  }
  0x50   :  { %v5297_v10 = vld [vmem:[#allocation6 + $0x90] ss:$36 sps:$4 sm:$0xff]   ;;  %v5299_v12 = vld [vmem:[#allocation6 + $0xdc] ss:$36 sps:$4 sm:$0xff]   ;;  %v5301_v13 = vld [vmem:[#allocation6 + $0xe4] ss:$36 sps:$4 sm:$0xff]  }
  0x51   :  { %v5303_v14 = vld [vmem:[#allocation6 + $0xd8] ss:$36 sps:$4 sm:$0xff]   ;;  %v5304_v15 = vld [vmem:[#allocation6 + $0xe0] ss:$36 sps:$4 sm:$0xff]   ;;  %v5307_v17 = vld [vmem:[#allocation6 + $0x12c] ss:$36 sps:$4 sm:$0xff]  }
  0x52   :  { %1480 = vmatpush1.bf16.msra.mxu0 %v5291_v6  ;;  %1566 = vmatpush1.bf16.msra.mxu1 %v5292_v7  ;;  %v5305_v16 = vld [vmem:[#allocation6 + $0x124] ss:$36 sps:$4 sm:$0xff]   ;;  %v5311_v20 = vld [vmem:[#allocation6 + $0x16c] ss:$36 sps:$4 sm:$0xff]   ;;  %v5313_v21 = vld [vmem:[#allocation6 + $0x174] ss:$36 sps:$4 sm:$0xff]  }
  0x53   :  { %1481 = vmatprep.subr.bf16.mxu0 %v5293_v8  ;;  %1567 = vmatprep.subr.bf16.mxu1 %v5295_v9  ;;  %v5309_v18 = vld [vmem:[#allocation6 + $0x120] ss:$36 sps:$4 sm:$0xff]   ;;  %v5310_v19 = vld [vmem:[#allocation6 + $0x128] ss:$36 sps:$4 sm:$0xff]   ;;  %v5316_v23 = vld [vmem:[#allocation6 + $0x170] ss:$36 sps:$4 sm:$0xff]  }
  0x54   :  { %v5315_v22 = vld [vmem:[#allocation6 + $0x168] ss:$36 sps:$4 sm:$0xff]   ;;  %v5317_v24 = vld [vmem:[#allocation6 + $0x1b4] ss:$36 sps:$4 sm:$0xff]   ;;  %v5319_v25 = vld [vmem:[#allocation6 + $0x1bc] ss:$36 sps:$4 sm:$0xff]  }
  0x55   :  { %v5321_v26 = vld [vmem:[#allocation6 + $0x1b0] ss:$36 sps:$4 sm:$0xff]   ;;  %v5322_v27 = vld [vmem:[#allocation6 + $0x1b8] ss:$36 sps:$4 sm:$0xff]   ;;  %v5325_v29 = vld [vmem:[#allocation6 + $0x204] ss:$36 sps:$4 sm:$0xff]  }
  0x56   :  { %1482 = vmatpush1.bf16.msra.mxu0 %v5297_v10  ;;  %1568 = vmatpush1.bf16.msra.mxu1 %v5298_v11  ;;  %v5323_v28 = vld [vmem:[#allocation6 + $0x1fc] ss:$36 sps:$4 sm:$0xff]   ;;  %v5329_v32 = vld [vmem:[#allocation6 + $0x244] ss:$36 sps:$4 sm:$0xff]   ;;  %v5331_v33 = vld [vmem:[#allocation6 + $0x24c] ss:$36 sps:$4 sm:$0xff]  }
  0x57   :  { %1483 = vmatprep.subr.bf16.mxu0 %v5299_v12  ;;  %1569 = vmatprep.subr.bf16.mxu1 %v5301_v13  ;;  %v5327_v30 = vld [vmem:[#allocation6 + $0x1f8] ss:$36 sps:$4 sm:$0xff]   ;;  %v5328_v31 = vld [vmem:[#allocation6 + $0x200] ss:$36 sps:$4 sm:$0xff]   ;;  %v5334_v35 = vld [vmem:[#allocation6 + $0x248] ss:$36 sps:$4 sm:$0xff]  }
  0x58   :  { %v5333_v34 = vld [vmem:[#allocation6 + $0x240] ss:$36 sps:$4 sm:$0xff]   ;;  %v5335_v36 = vld [vmem:[#allocation6 + $0x28c] ss:$36 sps:$4 sm:$0xff]   ;;  %v5337_v37 = vld [vmem:[#allocation6 + $0x294] ss:$36 sps:$4 sm:$0xff]  }
  0x59   :  { %v5339_v38 = vld [vmem:[#allocation6 + $0x288] ss:$36 sps:$4 sm:$0xff]   ;;  %v5340_v39 = vld [vmem:[#allocation6 + $0x290] ss:$36 sps:$4 sm:$0xff]   ;;  %v5343_v41 = vld [vmem:[#allocation6 + $0x2dc] ss:$36 sps:$4 sm:$0xff]  }
  0x5a   :  { %1484 = vmatpush1.bf16.msra.mxu0 %v5303_v14  ;;  %1570 = vmatpush1.bf16.msra.mxu1 %v5304_v15  ;;  %v5341_v40 = vld [vmem:[#allocation6 + $0x2d4] ss:$36 sps:$4 sm:$0xff]   ;;  %v5347_v44 = vld [vmem:[#allocation6 + $0x31c] ss:$36 sps:$4 sm:$0xff]   ;;  %v5349_v45 = vld [vmem:[#allocation6 + $0x324] ss:$36 sps:$4 sm:$0xff]  }
  0x5b   :  { %1485 = vmatprep.subr.bf16.mxu0 %v5305_v16  ;;  %1571 = vmatprep.subr.bf16.mxu1 %v5307_v17  ;;  %v5345_v42 = vld [vmem:[#allocation6 + $0x2d0] ss:$36 sps:$4 sm:$0xff]   ;;  %v5346_v43 = vld [vmem:[#allocation6 + $0x2d8] ss:$36 sps:$4 sm:$0xff]   ;;  %v5352_v49 = vld [vmem:[#allocation6 + $0x320] ss:$36 sps:$4 sm:$0xff]  }
  0x5c   :  { %v76_v46 = vld [vmem:[#allocation3 + $0x8] sm:$0xff]  ;;  %v79_v47 = vld [vmem:[#allocation3 + $0x20] sm:$0xff]  ;;  %v5353_v51 = vld [vmem:[#allocation6 + $0x364] ss:$36 sps:$4 sm:$0xff]   ;;  %v5881_v16 = vmov 0   ;;  %vm5883_vm0 = vmmov 0  }
  0x5d   :  { %v5351_v48 = vld [vmem:[#allocation6 + $0x318] ss:$36 sps:$4 sm:$0xff]   ;;  %v5981_v50 = vpack.c.bf16 %v79_v47, %v76_v46  ;;  %v5355_v52 = vld [vmem:[#allocation6 + $0x36c] ss:$36 sps:$4 sm:$0xff]   ;;  %v5357_v53 = vld [vmem:[#allocation6 + $0x360] ss:$36 sps:$4 sm:$0xff]  }
  0x5e   :  { %1486 = vmatpush1.bf16.msra.mxu0 %v5309_v18  ;;  %1572 = vmatpush1.bf16.msra.mxu1 %v5310_v19  ;;  %v5358_v54 = vld [vmem:[#allocation6 + $0x368] ss:$36 sps:$4 sm:$0xff]   ;;  %v5361_v56 = vld [vmem:[#allocation6 + $0x3b4] ss:$36 sps:$4 sm:$0xff]   ;;  %v5367_v60 = vld [vmem:[#allocation6 + $0x3fc] ss:$36 sps:$4 sm:$0xff]  }
  0x5f   :  { %1487 = vmatprep.subr.bf16.mxu0 %v5311_v20  ;;  %1573 = vmatprep.subr.bf16.mxu1 %v5313_v21  ;;  %v5359_v55 = vld [vmem:[#allocation6 + $0x3ac] ss:$36 sps:$4 sm:$0xff]   ;;  %v5365_v59 = vld [vmem:[#allocation6 + $0x3f4] ss:$36 sps:$4 sm:$0xff]   ;;  %v5371_v63 = vld [vmem:[#allocation6 + $0x43c] ss:$36 sps:$4 sm:$0xff]  }
  0x60   :  { %1509 = vmatprep.mubr.bf16.mxu0 %v5981_v50  ;;  %1595 = vmatprep.mubr.bf16.mxu1 %v5981_v50  ;;  %v5363_v57 = vld [vmem:[#allocation6 + $0x3a8] ss:$36 sps:$4 sm:$0xff]   ;;  %v5364_v58 = vld [vmem:[#allocation6 + $0x3b0] ss:$36 sps:$4 sm:$0xff]   ;;  %v5370_v62 = vld [vmem:[#allocation6 + $0x3f8] ss:$36 sps:$4 sm:$0xff]  }
  0x61   :  { %v5369_v61 = vld [vmem:[#allocation6 + $0x3f0] ss:$36 sps:$4 sm:$0xff]   ;;  %v5373_v0 = vld [vmem:[#allocation6 + $0x444] ss:$36 sps:$4 sm:$0xff]   ;;  %v5375_v1 = vld [vmem:[#allocation6 + $0x438] ss:$36 sps:$4 sm:$0xff]  }
  0x62   :  { %1488 = vmatpush1.bf16.msra.mxu0 %v5315_v22  ;;  %1574 = vmatpush1.bf16.msra.mxu1 %v5316_v23  ;;  %v5376_v2 = vld [vmem:[#allocation6 + $0x440] ss:$36 sps:$4 sm:$0xff]   ;;  %v75_v4 = vld [vmem:[#allocation3] sm:$0xff]  ;;  %v78_v5 = vld [vmem:[#allocation3 + $0x18] sm:$0xff]  ;;  %vm1918_vm1 = vcmask 392192   ;;  %s5884_s3 = smov 80  }
  0x63   :  { %1489 = vmatprep.subr.bf16.mxu0 %v5317_v24  ;;  %1575 = vmatprep.subr.bf16.mxu1 %v5319_v25  ;;  %v5379_v3 = vld [vmem:[#allocation6 + $0x484] ss:$36 sps:$4 sm:$0xff]   ;;  %v5382_v6 = vld [vmem:[#allocation6 + $0x48c] ss:$36 sps:$4 sm:$0xff]   ;;  %v5985_v8 = vpack.c.bf16 %v78_v5, %v75_v4  ;;  %v5388_v11 = vld [vmem:[#allocation6 + $0x4d4] ss:$36 sps:$4 sm:$0xff]  }
  0x64   :  { %v5377_v7 = vld [vmem:[#allocation6 + $0x480] ss:$36 sps:$4 sm:$0xff]   ;;  %v5380_v9 = vld [vmem:[#allocation6 + $0x488] ss:$36 sps:$4 sm:$0xff]   ;;  %v5386_v13 = vld [vmem:[#allocation6 + $0x4d0] ss:$36 sps:$4 sm:$0xff]  }
  0x65   :  { %v5385_v10 = vld [vmem:[#allocation6 + $0x4cc] ss:$36 sps:$4 sm:$0xff]   ;;  %v5391_v14 = vld [vmem:[#allocation6 + $0x514] ss:$36 sps:$4 sm:$0xff]   ;;  %v5394_v15 = vld [vmem:[#allocation6 + $0x51c] ss:$36 sps:$4 sm:$0xff]  }
  0x66   :  { %1490 = vmatpush1.bf16.msra.mxu0 %v5321_v26  ;;  %1576 = vmatpush1.bf16.msra.mxu1 %v5322_v27  ;;  %v5383_v12 = vld [vmem:[#allocation6 + $0x4c8] ss:$36 sps:$4 sm:$0xff]   ;;  %v5389_v17 = vld [vmem:[#allocation6 + $0x510] ss:$36 sps:$4 sm:$0xff]   ;;  %v5392_v18 = vld [vmem:[#allocation6 + $0x518] ss:$36 sps:$4 sm:$0xff]  }
  0x67   :  { %1491 = vmatprep.subr.bf16.mxu0 %v5323_v28  ;;  %1577 = vmatprep.subr.bf16.mxu1 %v5325_v29  ;;  %v5397_v19 = vld [vmem:[#allocation6 + $0x55c] ss:$36 sps:$4 sm:$0xff]   ;;  %v5400_v20 = vld [vmem:[#allocation6 + $0x564] ss:$36 sps:$4 sm:$0xff]   ;;  %v5406_v24 = vld [vmem:[#allocation6 + $0x5ac] ss:$36 sps:$4 sm:$0xff]  }
  0x68   :  { %v5395_v21 = vld [vmem:[#allocation6 + $0x558] ss:$36 sps:$4 sm:$0xff]   ;;  %v5398_v22 = vld [vmem:[#allocation6 + $0x560] ss:$36 sps:$4 sm:$0xff]   ;;  %v5404_v26 = vld [vmem:[#allocation6 + $0x5a8] ss:$36 sps:$4 sm:$0xff]  }
  0x69   :  { %v5403_v23 = vld [vmem:[#allocation6 + $0x5a4] ss:$36 sps:$4 sm:$0xff]   ;;  %v5409_v27 = vld [vmem:[#allocation6 + $0x5ec] ss:$36 sps:$4 sm:$0xff]   ;;  %v5412_v28 = vld [vmem:[#allocation6 + $0x5f4] ss:$36 sps:$4 sm:$0xff]  }
  0x6a   :  { %1492 = vmatpush1.bf16.msra.mxu0 %v5327_v30  ;;  %1578 = vmatpush1.bf16.msra.mxu1 %v5328_v31  ;;  %v5401_v25 = vld [vmem:[#allocation6 + $0x5a0] ss:$36 sps:$4 sm:$0xff]   ;;  %v5407_v29 = vld [vmem:[#allocation6 + $0x5e8] ss:$36 sps:$4 sm:$0xff]   ;;  %v5410_v30 = vld [vmem:[#allocation6 + $0x5f0] ss:$36 sps:$4 sm:$0xff]  }
  0x6b   :  { %1493 = vmatprep.subr.bf16.mxu0 %v5329_v32  ;;  %1579 = vmatprep.subr.bf16.mxu1 %v5331_v33  ;;  %v5415_v31 = vld [vmem:[#allocation6 + $0x634] ss:$36 sps:$4 sm:$0xff]   ;;  %v5418_v32 = vld [vmem:[#allocation6 + $0x63c] ss:$36 sps:$4 sm:$0xff]   ;;  %v5475_v47 = vld [vmem:[#allocation6 + $0x64] ss:$36 sps:$4 sm:$0xff]  }
  0x6c   :  { %v5413_v33 = vld [vmem:[#allocation6 + $0x630] ss:$36 sps:$4 sm:$0xff]   ;;  %v5430_v46 = vld [vmem:[#allocation6 + $0x5c] ss:$36 sps:$4 sm:$0xff]   ;;  %s5885_s21 = smov 32   ;;  %vm1981_vm2 = vcmask 1043456  }
  0x6d   :  { %v5505_v4 = vld [vmem:[#allocation6 + $0x1cc] ss:$36 sps:$4 sm:$0xff]   ;;  %v5443_v5 = vld [vmem:[#allocation6 + $0x1c0] ss:$36 sps:$4 sm:$0xff]   ;;  %s5886_s22 = smov 112   ;;  %s5887_s23 = smov 64  }
  0x6e   :  { %1494 = vmatpush1.bf16.msra.mxu0 %v5333_v34  ;;  %1580 = vmatpush1.bf16.msra.mxu1 %v5334_v35  ;;  %v5416_v34 = vld [vmem:[#allocation6 + $0x638] ss:$36 sps:$4 sm:$0xff]   ;;  %s5888_s24 = smov 16   ;;  %s5889_s25 = smov 96   ;;  %vm1965_vm4 = vcmask 64512   ;;  %vm2153_vm5 = vcmask 261120  }
  0x6f   :  { %1495 = vmatprep.subr.bf16.mxu0 %v5335_v36  ;;  %1581 = vmatprep.subr.bf16.mxu1 %v5337_v37  ;;  %v5421_v35 = vld [vmem:[#allocation6 + $0x67c] ss:$36 sps:$4 sm:$0xff]   ;;  %v5424_v36 = vld [vmem:[#allocation6 + $0x684] ss:$36 sps:$4 sm:$0xff]   ;;  %s5890_s26 = smov 48   ;;  %vm2519_vm6 = vcmask 130048  }
  0x70   :  { %v5419_v37 = vld [vmem:[#allocation6 + $0x678] ss:$36 sps:$4 sm:$0xff]   ;;  %vm2026_vm7 = vcmask 388096   ;;  %vm2991_vm8 = vcmask 392196   ;;  %vm2146_vm9 = vcmask 781696   ;;  %vm2276_vm10 = vcmask 1044224  }
  0x71   :  { %vm2278_vm11 = vcmask 125952   ;;  %vm2395_vm12 = vcmask 519296   ;;  %vm2512_vm13 = vcmask 912896   ;;  %vm2642_vm14 = vcmask 1044352   ;;  %s5892_s29 = smov [#allocation11]  }
  0x72   :  { %1496 = vmatpush1.bf16.msra.mxu0 %v5339_v38  ;;  %1582 = vmatpush1.bf16.msra.mxu1 %v5340_v39  ;;  %v5422_v38 = vld [vmem:[#allocation6 + $0x680] ss:$36 sps:$4 sm:$0xff]   ;;  %vm2644_vm15 = vcmask 257024   ;;  %s4526_s30 = sshll.u32 %s5892_s29, 4  ;;  %s4527_s30 = int_to_ptr.vmem [resolvable:$true] %s4526_s30 }
  0x73   :  { %1497 = vmatprep.subr.bf16.mxu0 %v5341_v40  ;;  %1583 = vmatprep.subr.bf16.mxu1 %v5343_v41  ;;  %v77_v39 = vld [vmem:[#allocation3 + $0x10] sm:$0xff]  ;;  %v80_v40 = vld [vmem:[#allocation3 + $0x28] sm:$0xff]  ;;  %p5846_p5 = scmp.lt.s32.totalorder %s4527_s30, %s4527_s30 }
  0x74   :  { %v5427_v41 = vld [vmem:[#allocation6 + $0x14] ss:$36 sps:$4 sm:$0xff]  }
  0x76   :  { %1498 = vmatpush1.bf16.msra.mxu0 %v5345_v42  ;;  %1584 = vmatpush1.bf16.msra.mxu1 %v5346_v43  ;;  %v5469_v42 = vld [vmem:[#allocation6 + $0x1c] ss:$36 sps:$4 sm:$0xff]   ;;  %v5991_v43 = vpack.c.bf16 %v80_v40, %v77_v39  ;;  %v5478_v40 = vld [vmem:[#allocation6 + $0x44c] ss:$36 sps:$4 sm:$0xff]  }
  0x77   :  { %1499 = vmatprep.subr.bf16.mxu0 %v5347_v44  ;;  %1585 = vmatprep.subr.bf16.mxu1 %v5349_v45  ;;  %v5425_v44 = vld [vmem:[#allocation6 + $0x10] ss:$36 sps:$4 sm:$0xff]   ;;  %v5467_v45 = vld [vmem:[#allocation6 + $0x18] ss:$36 sps:$4 sm:$0xff]   ;;  %v5470_v39 = vld [vmem:[#allocation6 + $0x400] ss:$36 sps:$4 sm:$0xff]  }
  0x7a   :  { %1500 = vmatpush1.bf16.msra.mxu0 %v5351_v48  ;;  %1586 = vmatpush1.bf16.msra.mxu1 %v5352_v49  ;;  %v5428_v48 = vld [vmem:[#allocation6 + $0x58] ss:$36 sps:$4 sm:$0xff]   ;;  %v5473_v49 = vld [vmem:[#allocation6 + $0x60] ss:$36 sps:$4 sm:$0xff]  }
  0x7b   :  { %1501 = vmatprep.subr.bf16.mxu0 %v5353_v51  ;;  %1587 = vmatprep.subr.bf16.mxu1 %v5355_v52  ;;  %v5433_v51 = vld [vmem:[#allocation6 + $0xa4] ss:$36 sps:$4 sm:$0xff]   ;;  %v5481_v52 = vld [vmem:[#allocation6 + $0xac] ss:$36 sps:$4 sm:$0xff]  }
  0x7e   :  { %1502 = vmatpush1.bf16.msra.mxu0 %v5357_v53  ;;  %1588 = vmatpush1.bf16.msra.mxu1 %v5358_v54  ;;  %v5431_v53 = vld [vmem:[#allocation6 + $0xa0] ss:$36 sps:$4 sm:$0xff]   ;;  %v5479_v54 = vld [vmem:[#allocation6 + $0xa8] ss:$36 sps:$4 sm:$0xff]  }
  0x7f   :  { %1503 = vmatprep.subr.bf16.mxu0 %v5359_v55  ;;  %1589 = vmatprep.subr.bf16.mxu1 %v5361_v56  ;;  %v5436_v55 = vld [vmem:[#allocation6 + $0xec] ss:$36 sps:$4 sm:$0xff]   ;;  %v5487_v56 = vld [vmem:[#allocation6 + $0xf4] ss:$36 sps:$4 sm:$0xff]  }
  0x82   :  { %1504 = vmatpush1.bf16.msra.mxu0 %v5363_v57  ;;  %1590 = vmatpush1.bf16.msra.mxu1 %v5364_v58  ;;  %v5434_v57 = vld [vmem:[#allocation6 + $0xe8] ss:$36 sps:$4 sm:$0xff]   ;;  %v5485_v58 = vld [vmem:[#allocation6 + $0xf0] ss:$36 sps:$4 sm:$0xff]  }
  0x83   :  { %1505 = vmatprep.subr.bf16.mxu0 %v5365_v59  ;;  %1591 = vmatprep.subr.bf16.mxu1 %v5367_v60  ;;  %v5439_v59 = vld [vmem:[#allocation6 + $0x134] ss:$36 sps:$4 sm:$0xff]   ;;  %v5493_v60 = vld [vmem:[#allocation6 + $0x13c] ss:$36 sps:$4 sm:$0xff]  }
  0x86   :  { %1506 = vmatpush1.bf16.msra.mxu0 %v5369_v61  ;;  %1592 = vmatpush1.bf16.msra.mxu1 %v5370_v62  ;;  %v5437_v61 = vld [vmem:[#allocation6 + $0x130] ss:$36 sps:$4 sm:$0xff]   ;;  %v5491_v62 = vld [vmem:[#allocation6 + $0x138] ss:$36 sps:$4 sm:$0xff]  }
  0x87   :  { %1507 = vmatprep.subr.bf16.mxu0 %v5371_v63  ;;  %1593 = vmatprep.subr.bf16.mxu1 %v5373_v0  ;;  %v5442_v63 = vld [vmem:[#allocation6 + $0x17c] ss:$36 sps:$4 sm:$0xff]   ;;  %v5499_v0 = vld [vmem:[#allocation6 + $0x184] ss:$36 sps:$4 sm:$0xff]  }
  0x8a   :  { %1508 = vmatpush1.bf16.msra.mxu0 %v5375_v1  ;;  %1594 = vmatpush1.bf16.msra.mxu1 %v5376_v2  ;;  %v5440_v1 = vld [vmem:[#allocation6 + $0x178] ss:$36 sps:$4 sm:$0xff]   ;;  %v5497_v2 = vld [vmem:[#allocation6 + $0x180] ss:$36 sps:$4 sm:$0xff]  }
  0x8b   :  { %1520 = vmatprep.subr.bf16.mxu0 %v5379_v3  ;;  %1606 = vmatprep.subr.bf16.mxu1 %v5382_v6  ;;  %v5445_v3 = vld [vmem:[#allocation6 + $0x1c4] ss:$36 sps:$4 sm:$0xff]  }
  0x8c   :  { %v5503_v6 = vld [vmem:[#allocation6 + $0x1c8] ss:$36 sps:$4 sm:$0xff]  }
  0x8d   :  { %1510 = vmatmul.mubr.bf16.vlgmr.msra.gmra.mrb[0].mxu0 %v5985_v8  ;;  %1596 = vmatmul.mubr.bf16.vlgmr.msra.gmra.mrb[0].mxu1 %v5985_v8 }
  0x8e   :  { %1521 = vmatpush1.bf16.msra.mxu0 %v5377_v7  ;;  %1607 = vmatpush1.bf16.msra.mxu1 %v5380_v9  ;;  %v5448_v7 = vld [vmem:[#allocation6 + $0x20c] ss:$36 sps:$4 sm:$0xff]   ;;  %v5511_v9 = vld [vmem:[#allocation6 + $0x214] ss:$36 sps:$4 sm:$0xff]  }
  0x8f   :  { %1522 = vmatprep.subr.bf16.mxu0 %v5385_v10  ;;  %1608 = vmatprep.subr.bf16.mxu1 %v5388_v11  ;;  %v5446_v10 = vld [vmem:[#allocation6 + $0x208] ss:$36 sps:$4 sm:$0xff]   ;;  %v5509_v11 = vld [vmem:[#allocation6 + $0x210] ss:$36 sps:$4 sm:$0xff]  }
  0x90   :  { %1552 = vmatprep.mubr.bf16.mxu0 %v5881_v16  ;;  %1638 = vmatprep.mubr.bf16.mxu1 %v5881_v16 }
  0x92   :  { %1523 = vmatpush1.bf16.msra.mxu0 %v5383_v12  ;;  %1609 = vmatpush1.bf16.msra.mxu1 %v5386_v13  ;;  %v5451_v12 = vld [vmem:[#allocation6 + $0x254] ss:$36 sps:$4 sm:$0xff]   ;;  %v5517_v13 = vld [vmem:[#allocation6 + $0x25c] ss:$36 sps:$4 sm:$0xff]  }
  0x93   :  { %1524 = vmatprep.subr.bf16.mxu0 %v5391_v14  ;;  %1610 = vmatprep.subr.bf16.mxu1 %v5394_v15  ;;  %v5449_v14 = vld [vmem:[#allocation6 + $0x250] ss:$36 sps:$4 sm:$0xff]   ;;  %v5515_v15 = vld [vmem:[#allocation6 + $0x258] ss:$36 sps:$4 sm:$0xff]  }
  0x96   :  { %1525 = vmatpush1.bf16.msra.mxu0 %v5389_v17  ;;  %1611 = vmatpush1.bf16.msra.mxu1 %v5392_v18  ;;  %v5454_v17 = vld [vmem:[#allocation6 + $0x29c] ss:$36 sps:$4 sm:$0xff]   ;;  %v5523_v18 = vld [vmem:[#allocation6 + $0x2a4] ss:$36 sps:$4 sm:$0xff]  }
  0x97   :  { %1526 = vmatprep.subr.bf16.mxu0 %v5397_v19  ;;  %1612 = vmatprep.subr.bf16.mxu1 %v5400_v20  ;;  %v5452_v19 = vld [vmem:[#allocation6 + $0x298] ss:$36 sps:$4 sm:$0xff]   ;;  %v5457_v20 = vld [vmem:[#allocation6 + $0x2e4] ss:$36 sps:$4 sm:$0xff]  }
  0x9a   :  { %1527 = vmatpush1.bf16.msra.mxu0 %v5395_v21  ;;  %1613 = vmatpush1.bf16.msra.mxu1 %v5398_v22  ;;  %v5521_v21 = vld [vmem:[#allocation6 + $0x2a0] ss:$36 sps:$4 sm:$0xff]   ;;  %v5529_v22 = vld [vmem:[#allocation6 + $0x2ec] ss:$36 sps:$4 sm:$0xff]  }
  0x9b   :  { %1528 = vmatprep.subr.bf16.mxu0 %v5403_v23  ;;  %1614 = vmatprep.subr.bf16.mxu1 %v5406_v24  ;;  %v5455_v23 = vld [vmem:[#allocation6 + $0x2e0] ss:$36 sps:$4 sm:$0xff]   ;;  %v5460_v24 = vld [vmem:[#allocation6 + $0x32c] ss:$36 sps:$4 sm:$0xff]  }
  0x9e   :  { %1529 = vmatpush1.bf16.msra.mxu0 %v5401_v25  ;;  %1615 = vmatpush1.bf16.msra.mxu1 %v5404_v26  ;;  %v5527_v25 = vld [vmem:[#allocation6 + $0x2e8] ss:$36 sps:$4 sm:$0xff]   ;;  %v5532_v26 = vld [vmem:[#allocation6 + $0x334] ss:$36 sps:$4 sm:$0xff]  }
  0x9f   :  { %1530 = vmatprep.subr.bf16.mxu0 %v5409_v27  ;;  %1616 = vmatprep.subr.bf16.mxu1 %v5412_v28  ;;  %v5458_v27 = vld [vmem:[#allocation6 + $0x328] ss:$36 sps:$4 sm:$0xff]   ;;  %v5463_v28 = vld [vmem:[#allocation6 + $0x374] ss:$36 sps:$4 sm:$0xff]  }
  0xa2   :  { %1531 = vmatpush1.bf16.msra.mxu0 %v5407_v29  ;;  %1617 = vmatpush1.bf16.msra.mxu1 %v5410_v30  ;;  %v5530_v29 = vld [vmem:[#allocation6 + $0x330] ss:$36 sps:$4 sm:$0xff]   ;;  %v5535_v30 = vld [vmem:[#allocation6 + $0x37c] ss:$36 sps:$4 sm:$0xff]  }
  0xa3   :  { %1532 = vmatprep.subr.bf16.mxu0 %v5415_v31  ;;  %1618 = vmatprep.subr.bf16.mxu1 %v5418_v32  ;;  %v5461_v31 = vld [vmem:[#allocation6 + $0x370] ss:$36 sps:$4 sm:$0xff]   ;;  %v5466_v32 = vld [vmem:[#allocation6 + $0x3bc] ss:$36 sps:$4 sm:$0xff]  }
  0xa6   :  { %1533 = vmatpush1.bf16.msra.mxu0 %v5413_v33  ;;  %1619 = vmatpush1.bf16.msra.mxu1 %v5416_v34  ;;  %v5533_v33 = vld [vmem:[#allocation6 + $0x378] ss:$36 sps:$4 sm:$0xff]   ;;  %v5538_v34 = vld [vmem:[#allocation6 + $0x3c4] ss:$36 sps:$4 sm:$0xff]  }
  0xa7   :  { %1534 = vmatprep.subr.bf16.mxu0 %v5421_v35  ;;  %1620 = vmatprep.subr.bf16.mxu1 %v5424_v36  ;;  %v5464_v35 = vld [vmem:[#allocation6 + $0x3b8] ss:$36 sps:$4 sm:$0xff]   ;;  %v5472_v36 = vld [vmem:[#allocation6 + $0x404] ss:$36 sps:$4 sm:$0xff]  }
  0xaa   :  { %1535 = vmatpush1.bf16.msra.mxu0 %v5419_v37  ;;  %1621 = vmatpush1.bf16.msra.mxu1 %v5422_v38  ;;  %v5536_v37 = vld [vmem:[#allocation6 + $0x3c0] ss:$36 sps:$4 sm:$0xff]   ;;  %v5541_v38 = vld [vmem:[#allocation6 + $0x40c] ss:$36 sps:$4 sm:$0xff]  }
  0xab   :  { %1649 = vmatprep.subr.bf16.mxu0 %v5427_v41  ;;  %1735 = vmatprep.subr.bf16.mxu1 %v5469_v42  ;;  %v5539_v41 = vld [vmem:[#allocation6 + $0x408] ss:$36 sps:$4 sm:$0xff]   ;;  %v5544_v42 = vld [vmem:[#allocation6 + $0x454] ss:$36 sps:$4 sm:$0xff]  }
  0xad   :  { %1553 = vmatmul.mubr.bf16.vlgmr.msra.gmra.mrb[0].mxu0 %v5991_v43  ;;  %1639 = vmatmul.mubr.bf16.vlgmr.msra.gmra.mrb[0].mxu1 %v5991_v43 }
  0xae   :  { %1650 = vmatpush1.bf16.msra.mxu0 %v5425_v44  ;;  %1736 = vmatpush1.bf16.msra.mxu1 %v5467_v45  ;;  %v5476_v44 = vld [vmem:[#allocation6 + $0x448] ss:$36 sps:$4 sm:$0xff]   ;;  %v5542_v45 = vld [vmem:[#allocation6 + $0x450] ss:$36 sps:$4 sm:$0xff]  }
  0xaf   :  { %1651 = vmatprep.subr.bf16.mxu0 %v5430_v46  ;;  %1737 = vmatprep.subr.bf16.mxu1 %v5475_v47  ;;  %v5484_v46 = vld [vmem:[#allocation6 + $0x494] ss:$36 sps:$4 sm:$0xff]   ;;  %v5547_v47 = vld [vmem:[#allocation6 + $0x49c] ss:$36 sps:$4 sm:$0xff]  }
  0xb0   :  { %1681 = vmatprep.mubr.bf16.mxu0 %v5981_v50  ;;  %1767 = vmatprep.mubr.bf16.mxu1 %v5981_v50 }
  0xb2   :  { %1652 = vmatpush1.bf16.msra.mxu0 %v5428_v48  ;;  %1738 = vmatpush1.bf16.msra.mxu1 %v5473_v49  ;;  %v5482_v48 = vld [vmem:[#allocation6 + $0x490] ss:$36 sps:$4 sm:$0xff]   ;;  %v5490_v49 = vld [vmem:[#allocation6 + $0x4dc] ss:$36 sps:$4 sm:$0xff]  }
  0xb3   :  { %1653 = vmatprep.subr.bf16.mxu0 %v5433_v51  ;;  %1739 = vmatprep.subr.bf16.mxu1 %v5481_v52  ;;  %v5545_v51 = vld [vmem:[#allocation6 + $0x498] ss:$36 sps:$4 sm:$0xff]   ;;  %v5550_v52 = vld [vmem:[#allocation6 + $0x4e4] ss:$36 sps:$4 sm:$0xff]  }
  0xb6   :  { %1654 = vmatpush1.bf16.msra.mxu0 %v5431_v53  ;;  %1740 = vmatpush1.bf16.msra.mxu1 %v5479_v54  ;;  %v5488_v53 = vld [vmem:[#allocation6 + $0x4d8] ss:$36 sps:$4 sm:$0xff]   ;;  %v5496_v54 = vld [vmem:[#allocation6 + $0x524] ss:$36 sps:$4 sm:$0xff]  }
  0xb7   :  { %1655 = vmatprep.subr.bf16.mxu0 %v5436_v55  ;;  %1741 = vmatprep.subr.bf16.mxu1 %v5487_v56  ;;  %v5548_v55 = vld [vmem:[#allocation6 + $0x4e0] ss:$36 sps:$4 sm:$0xff]   ;;  %v5553_v56 = vld [vmem:[#allocation6 + $0x52c] ss:$36 sps:$4 sm:$0xff]  }
  0xba   :  { %1656 = vmatpush1.bf16.msra.mxu0 %v5434_v57  ;;  %1742 = vmatpush1.bf16.msra.mxu1 %v5485_v58  ;;  %v5494_v57 = vld [vmem:[#allocation6 + $0x520] ss:$36 sps:$4 sm:$0xff]   ;;  %v5502_v58 = vld [vmem:[#allocation6 + $0x56c] ss:$36 sps:$4 sm:$0xff]  }
  0xbb   :  { %1657 = vmatprep.subr.bf16.mxu0 %v5439_v59  ;;  %1743 = vmatprep.subr.bf16.mxu1 %v5493_v60  ;;  %v5551_v59 = vld [vmem:[#allocation6 + $0x528] ss:$36 sps:$4 sm:$0xff]   ;;  %v5556_v60 = vld [vmem:[#allocation6 + $0x574] ss:$36 sps:$4 sm:$0xff]  }
  0xbe   :  { %1658 = vmatpush1.bf16.msra.mxu0 %v5437_v61  ;;  %1744 = vmatpush1.bf16.msra.mxu1 %v5491_v62  ;;  %v5500_v61 = vld [vmem:[#allocation6 + $0x568] ss:$36 sps:$4 sm:$0xff]   ;;  %v5508_v62 = vld [vmem:[#allocation6 + $0x5b4] ss:$36 sps:$4 sm:$0xff]  }
  0xbf   :  { %1659 = vmatprep.subr.bf16.mxu0 %v5442_v63  ;;  %1745 = vmatprep.subr.bf16.mxu1 %v5499_v0  ;;  %v5554_v63 = vld [vmem:[#allocation6 + $0x570] ss:$36 sps:$4 sm:$0xff]   ;;  %v5559_v0 = vld [vmem:[#allocation6 + $0x5bc] ss:$36 sps:$4 sm:$0xff]  }
  0xc2   :  { %1660 = vmatpush1.bf16.msra.mxu0 %v5440_v1  ;;  %1746 = vmatpush1.bf16.msra.mxu1 %v5497_v2  ;;  %v5506_v1 = vld [vmem:[#allocation6 + $0x5b0] ss:$36 sps:$4 sm:$0xff]   ;;  %v5514_v2 = vld [vmem:[#allocation6 + $0x5fc] ss:$36 sps:$4 sm:$0xff]  }
  0xc3   :  { %1661 = vmatprep.subr.bf16.mxu0 %v5445_v3  ;;  %1747 = vmatprep.subr.bf16.mxu1 %v5505_v4  ;;  %v5557_v3 = vld [vmem:[#allocation6 + $0x5b8] ss:$36 sps:$4 sm:$0xff]   ;;  %v5562_v4 = vld [vmem:[#allocation6 + $0x604] ss:$36 sps:$4 sm:$0xff]  }
  0xc6   :  { %1662 = vmatpush1.bf16.msra.mxu0 %v5443_v5  ;;  %1748 = vmatpush1.bf16.msra.mxu1 %v5503_v6  ;;  %v5512_v5 = vld [vmem:[#allocation6 + $0x5f8] ss:$36 sps:$4 sm:$0xff]   ;;  %v5520_v6 = vld [vmem:[#allocation6 + $0x644] ss:$36 sps:$4 sm:$0xff]  }
  0xc7   :  { %1663 = vmatprep.subr.bf16.mxu0 %v5448_v7  ;;  %1749 = vmatprep.subr.bf16.mxu1 %v5511_v9  ;;  %v5560_v7 = vld [vmem:[#allocation6 + $0x600] ss:$36 sps:$4 sm:$0xff]   ;;  %v5565_v9 = vld [vmem:[#allocation6 + $0x64c] ss:$36 sps:$4 sm:$0xff]  }
  0xca   :  { %1664 = vmatpush1.bf16.msra.mxu0 %v5446_v10  ;;  %1750 = vmatpush1.bf16.msra.mxu1 %v5509_v11  ;;  %v5518_v10 = vld [vmem:[#allocation6 + $0x640] ss:$36 sps:$4 sm:$0xff]   ;;  %v5526_v11 = vld [vmem:[#allocation6 + $0x68c] ss:$36 sps:$4 sm:$0xff]  }
  0xcb   :  { %1665 = vmatprep.subr.bf16.mxu0 %v5451_v12  ;;  %1751 = vmatprep.subr.bf16.mxu1 %v5517_v13  ;;  %v5563_v12 = vld [vmem:[#allocation6 + $0x648] ss:$36 sps:$4 sm:$0xff]   ;;  %v5568_v13 = vld [vmem:[#allocation6 + $0x694] ss:$36 sps:$4 sm:$0xff]  }
  0xce   :  { %1666 = vmatpush1.bf16.msra.mxu0 %v5449_v14  ;;  %1752 = vmatpush1.bf16.msra.mxu1 %v5515_v15  ;;  %v5524_v14 = vld [vmem:[#allocation6 + $0x688] ss:$36 sps:$4 sm:$0xff]   ;;  %v5566_v15 = vld [vmem:[#allocation6 + $0x690] ss:$36 sps:$4 sm:$0xff]  }
  0xcf   :  { %1667 = vmatprep.subr.bf16.mxu0 %v5454_v17  ;;  %1753 = vmatprep.subr.bf16.mxu1 %v5523_v18  ;;  %v5569_v17 = vld [vmem:[#allocation6 + $0x260] ss:$36 sps:$4 sm:$0xff]  }
  0xd0   :  { %v5570_v18 = vld [vmem:[#allocation6 + $0x20] ss:$36 sps:$4 sm:$0xff]  }
  0xd2   :  { %1668 = vmatpush1.bf16.msra.mxu0 %v5452_v19  ;;  %1754 = vmatpush1.bf16.msra.mxu1 %v5521_v21  ;;  %v5571_v19 = vld [vmem:[#allocation6 + $0x4a0] ss:$36 sps:$4 sm:$0xff]   ;;  %v5882_v21 = vmov 0.0  }
  0xd3   :  { %1669 = vmatprep.subr.bf16.mxu0 %v5457_v20  ;;  %1755 = vmatprep.subr.bf16.mxu1 %v5529_v22  ;;  %v5572_v20 = vld [vmem:[#allocation6 + $0x2a8] ss:$36 sps:$4 sm:$0xff]  }
  0xd4   :  { %v5573_v22 = vld [vmem:[#allocation6 + $0x68] ss:$36 sps:$4 sm:$0xff]  }
  0xd6   :  { %1670 = vmatpush1.bf16.msra.mxu0 %v5455_v23  ;;  %1756 = vmatpush1.bf16.msra.mxu1 %v5527_v25  ;;  %v5574_v23 = vld [vmem:[#allocation6 + $0x4e8] ss:$36 sps:$4 sm:$0xff]   ;;  %v5576_v25 = vld [vmem:[#allocation6 + $0xb0] ss:$36 sps:$4 sm:$0xff]  }
  0xd7   :  { %1671 = vmatprep.subr.bf16.mxu0 %v5460_v24  ;;  %1757 = vmatprep.subr.bf16.mxu1 %v5532_v26  ;;  %v5575_v24 = vld [vmem:[#allocation6 + $0x2f0] ss:$36 sps:$4 sm:$0xff]  }
  0xd8   :  { %v5577_v26 = vld [vmem:[#allocation6 + $0x530] ss:$36 sps:$4 sm:$0xff]  }
  0xda   :  { %1672 = vmatpush1.bf16.msra.mxu0 %v5458_v27  ;;  %1758 = vmatpush1.bf16.msra.mxu1 %v5530_v29  ;;  %v5578_v27 = vld [vmem:[#allocation6 + $0x338] ss:$36 sps:$4 sm:$0xff]  }
  0xdb   :  { %1673 = vmatprep.subr.bf16.mxu0 %v5463_v28  ;;  %1759 = vmatprep.subr.bf16.mxu1 %v5535_v30  ;;  %v5579_v28 = vld [vmem:[#allocation6 + $0xf8] ss:$36 sps:$4 sm:$0xff]   ;;  %v5581_v30 = vld [vmem:[#allocation6 + $0x380] ss:$36 sps:$4 sm:$0xff]  }
  0xdc   :  { %v5580_v29 = vld [vmem:[#allocation6 + $0x578] ss:$36 sps:$4 sm:$0xff]  }
  0xde   :  { %1674 = vmatpush1.bf16.msra.mxu0 %v5461_v31  ;;  %1760 = vmatpush1.bf16.msra.mxu1 %v5533_v33  ;;  %v5583_v31 = vld [vmem:[#allocation6 + $0x5c0] ss:$36 sps:$4 sm:$0xff]   ;;  %v5585_v33 = vld [vmem:[#allocation6 + $0x188] ss:$36 sps:$4 sm:$0xff]  }
  0xdf   :  { %1675 = vmatprep.subr.bf16.mxu0 %v5466_v32  ;;  %1761 = vmatprep.subr.bf16.mxu1 %v5538_v34  ;;  %v5584_v32 = vld [vmem:[#allocation6 + $0x3c8] ss:$36 sps:$4 sm:$0xff]  }
  0xe0   :  { %v5586_v34 = vld [vmem:[#allocation6 + $0x608] ss:$36 sps:$4 sm:$0xff]  }
  0xe2   :  { %1676 = vmatpush1.bf16.msra.mxu0 %v5464_v35  ;;  %1762 = vmatpush1.bf16.msra.mxu1 %v5536_v37  ;;  %v5587_v35 = vld [vmem:[#allocation6 + $0x410] ss:$36 sps:$4 sm:$0xff]  }
  0xe3   :  { %1677 = vmatprep.subr.bf16.mxu0 %v5472_v36  ;;  %1763 = vmatprep.subr.bf16.mxu1 %v5541_v38  ;;  %v5588_v36 = vld [vmem:[#allocation6 + $0x1d0] ss:$36 sps:$4 sm:$0xff]   ;;  %v5590_v38 = vld [vmem:[#allocation6 + $0x458] ss:$36 sps:$4 sm:$0xff]  }
  0xe4   :  { %v5589_v37 = vld [vmem:[#allocation6 + $0x650] ss:$36 sps:$4 sm:$0xff]  }
  0xe6   :  { %1678 = vmatpush1.bf16.msra.mxu0 %v5470_v39  ;;  %1764 = vmatpush1.bf16.msra.mxu1 %v5539_v41  ;;  %v5591_v39 = vld [vmem:[#allocation6 + $0x218] ss:$36 sps:$4 sm:$0xff]   ;;  %v328_v41 = vlaneseq }
  0xe7   :  { %1679 = vmatprep.subr.bf16.mxu0 %v5478_v40  ;;  %1765 = vmatprep.subr.bf16.mxu1 %v5544_v42  ;;  %v5592_v40 = vld [vmem:[#allocation6 + $0x698] ss:$36 sps:$4 sm:$0xff]  }
  0xe8   :  { %v6023_v42 = vshrl.u32 %v328_v41, 7 }
  0xea   :  { %1680 = vmatpush1.bf16.msra.mxu0 %v5476_v44  ;;  %1766 = vmatpush1.bf16.msra.mxu1 %v5542_v45  ;;  %v330_v44 = vsub.s32 0, %v6023_v42  ;;  %v338_v45 = vsub.s32 2, %v6023_v42 }
  0xeb   :  { %1692 = vmatprep.subr.bf16.mxu0 %v5484_v46  ;;  %1778 = vmatprep.subr.bf16.mxu1 %v5547_v47  ;;  %v324_v46 = vld [vmem:[#allocation8] sm:$0xff]  ;;  %v334_v47 = vsub.s32 1, %v6023_v42 }
  0xed   :  { %1682 = vmatmul.mubr.bf16.vlgmr.msra.gmra.mrb[4].mxu0 %v5985_v8  ;;  %1768 = vmatmul.mubr.bf16.vlgmr.msra.gmra.mrb[4].mxu1 %v5985_v8 }
  0xee   :  { %1693 = vmatpush1.bf16.msra.mxu0 %v5482_v48  ;;  %1724 = vmatprep.mubr.bf16.mxu0 %v5881_v16  ;;  %v339_v48 = vrot.slane %v324_v46, %v338_v45 }
  0xef   :  { %1694 = vmatprep.subr.bf16.mxu0 %v5490_v49  ;;  %1779 = vmatpush1.bf16.msra.mxu1 %v5545_v51 }
  0xf0   :  { %1780 = vmatprep.subr.bf16.mxu1 %v5550_v52  ;;  %1810 = vmatprep.mubr.bf16.mxu1 %v5881_v16  ;;  %v335_v52 = vrot.slane %v324_v46, %v334_v47 }
  0xf2   :  { %1695 = vmatpush1.bf16.msra.mxu0 %v5488_v53 }
  0xf3   :  { %1696 = vmatprep.subr.bf16.mxu0 %v5496_v54  ;;  %1781 = vmatpush1.bf16.msra.mxu1 %v5548_v55 }
  0xf4   :  { %1782 = vmatprep.subr.bf16.mxu1 %v5553_v56 }
  0xf6   :  { %1697 = vmatpush1.bf16.msra.mxu0 %v5494_v57 }
  0xf7   :  { %1698 = vmatprep.subr.bf16.mxu0 %v5502_v58  ;;  %1783 = vmatpush1.bf16.msra.mxu1 %v5551_v59 }
  0xf8   :  { %1784 = vmatprep.subr.bf16.mxu1 %v5556_v60 }
  0xfa   :  { %1699 = vmatpush1.bf16.msra.mxu0 %v5500_v61 }
  0xfb   :  { %1700 = vmatprep.subr.bf16.mxu0 %v5508_v62  ;;  %1785 = vmatpush1.bf16.msra.mxu1 %v5554_v63 }
  0xfc   :  { %1786 = vmatprep.subr.bf16.mxu1 %v5559_v0 }
  0xfe   :  { %1701 = vmatpush1.bf16.msra.mxu0 %v5506_v1 }
  0xff   :  { %1702 = vmatprep.subr.bf16.mxu0 %v5514_v2  ;;  %1787 = vmatpush1.bf16.msra.mxu1 %v5557_v3 }
 0x100   :  { %1788 = vmatprep.subr.bf16.mxu1 %v5562_v4 }
 0x102   :  { %1703 = vmatpush1.bf16.msra.mxu0 %v5512_v5 }
 0x103   :  { %1704 = vmatprep.subr.bf16.mxu0 %v5520_v6  ;;  %1789 = vmatpush1.bf16.msra.mxu1 %v5560_v7 }
 0x104   :  { %1790 = vmatprep.subr.bf16.mxu1 %v5565_v9 }
 0x106   :  { %1705 = vmatpush1.bf16.msra.mxu0 %v5518_v10  ;;  %v346_v10 = vsub.s32 4, %v6023_v42 }
 0x107   :  { %1706 = vmatprep.subr.bf16.mxu0 %v5526_v11  ;;  %1791 = vmatpush1.bf16.msra.mxu1 %v5563_v12  ;;  %v350_v11 = vsub.s32 5, %v6023_v42  ;;  %v354_v12 = vsub.s32 6, %v6023_v42 }
 0x108   :  { %1792 = vmatprep.subr.bf16.mxu1 %v5568_v13  ;;  %v358_v13 = vsub.s32 7, %v6023_v42 }
 0x10a   :  { %1707 = vmatpush1.bf16.msra.mxu0 %v5524_v14  ;;  %v347_v14 = vrot.slane %v324_v46, %v346_v10 }
 0x10b   :  { %1793 = vmatpush1.bf16.msra.mxu1 %v5566_v15  ;;  %4861 = vmatprep.subr.bf16.mxu0 %v5569_v17  ;;  %v351_v15 = vrot.slane %v324_v46, %v350_v11  ;;  %v355_v17 = vrot.slane %v324_v46, %v354_v12 }
 0x10c   :  { %4987 = vmatprep.subr.bf16.mxu1 %v5882_v21 }
 0x10d   :  { %1725 = vmatmul.mubr.bf16.vlgmr.msra.gmra.mrb[4].mxu0 %v5991_v43 }
 0x10e   :  { %1811 = vmatmul.mubr.bf16.vlgmr.msra.gmra.mrb[4].mxu1 %v5991_v43  ;;  %4862 = vmatpush3.bf16.msra.mxu0 %v5570_v18  ;;  %v359_v18 = vrot.slane %v324_v46, %v358_v13 }
 0x10f   :  { %4988 = vmatpush3.bf16.msra.mxu1 %v5571_v19  ;;  %4863 = vmatprep.subr.bf16.mxu0 %v5572_v20 }
 0x110   :  { %4989 = vmatprep.subr.bf16.mxu1 %v5882_v21  ;;  %1853 = vmatprep.mubr.bf16.mxu0 %v5981_v50  ;;  %v5582_v50 = vld [vmem:[#allocation6 + $0x140] ss:$36 sps:$4 sm:$0xff]  }
 0x111   :  { %5003 = vmatprep.mubr.msk.bf16.mxu1 %vm5883_vm0, %v5882_v21 }
 0x112   :  { %4864 = vmatpush3.bf16.msra.mxu0 %v5573_v22 }
 0x113   :  { %4990 = vmatpush3.bf16.msra.mxu1 %v5574_v23  ;;  %4865 = vmatprep.subr.bf16.mxu0 %v5575_v24 }
 0x114   :  { %4991 = vmatprep.subr.bf16.mxu1 %v5882_v21 }
 0x116   :  { %4866 = vmatpush3.bf16.msra.mxu0 %v5576_v25 }
 0x117   :  { %4992 = vmatpush3.bf16.msra.mxu1 %v5577_v26  ;;  %4867 = vmatprep.subr.bf16.mxu0 %v5578_v27 }
 0x118   :  { %4993 = vmatprep.subr.bf16.mxu1 %v5882_v21 }
 0x11a   :  { %4868 = vmatpush3.bf16.msra.mxu0 %v5579_v28 }
 0x11b   :  { %4994 = vmatpush3.bf16.msra.mxu1 %v5580_v29  ;;  %4869 = vmatprep.subr.bf16.mxu0 %v5581_v30 }
 0x11c   :  { %4995 = vmatprep.subr.bf16.mxu1 %v5882_v21 }
 0x11e   :  { %4870 = vmatpush3.bf16.msra.mxu0 %v5582_v50 }
 0x11f   :  { %4996 = vmatpush3.bf16.msra.mxu1 %v5583_v31  ;;  %4871 = vmatprep.subr.bf16.mxu0 %v5584_v32 }
 0x120   :  { %4997 = vmatprep.subr.bf16.mxu1 %v5882_v21 }
 0x122   :  { %4872 = vmatpush3.bf16.msra.mxu0 %v5585_v33 }
 0x123   :  { %4998 = vmatpush3.bf16.msra.mxu1 %v5586_v34  ;;  %4873 = vmatprep.subr.bf16.mxu0 %v5587_v35 }
 0x124   :  { %4999 = vmatprep.subr.bf16.mxu1 %v5882_v21 }
 0x126   :  { %4874 = vmatpush3.bf16.msra.mxu0 %v5588_v36 }
 0x127   :  { %5000 = vmatpush3.bf16.msra.mxu1 %v5589_v37  ;;  %4875 = vmatprep.subr.bf16.mxu0 %v5590_v38 }
 0x128   :  { %5001 = vmatprep.subr.bf16.mxu1 %v5882_v21 }
 0x12a   :  { %4876 = vmatpush3.bf16.msra.mxu0 %v5591_v39 }
 0x12b   :  { %5002 = vmatpush3.bf16.msra.mxu1 %v5592_v40  ;;  %5031 = vmatprep.subr.bf16.mxu0 %v5882_v21 }
 0x12c   :  { %5007 = vmatprep.subr.bf16.mxu1 %v5882_v21 }
 0x12d   :  { %1854 = vmatmul.mubr.bf16.vlgmr.msra.gmra.mrb[8].mxu0 %v5985_v8  ;;  %v342_v8 = vsub.s32 3, %v6023_v42 }
 0x12e   :  { %5004 = vmatmul.mubr.bf16.vlgmr.msra.gmra.mrb[8].mxu1 %v5991_v43  ;;  %5033 = vmatprep.mubr.msk.bf16.mxu0 %vm5883_vm0, %v5882_v21  ;;  %v331_v43 = vrot.slane %v324_v46, %v330_v44 }
 0x12f   :  { %5009 = vmatprep.mubr.msk.bf16.mxu1 %vm5883_vm0, %v5882_v21  ;;  %v343_v53 = vrot.slane %v324_v46, %v342_v8 }
 0x180   :  { %v1554_v49 = vpop.f32.mrb[0].mxu0  ;;  %v1640_v51 = vpop.f32.mrb[0].mxu1 }
 0x181   :  { %v1556_v54 = vpop.f32.mrb[1].mxu0  ;;  %v1642_v55 = vpop.f32.mrb[1].mxu1  ;;  %v5219_v58 = vadd.f32 %v1554_v49, %v331_v43  ;;  %v5223_v59 = vadd.f32 %v1640_v51, %v339_v48 }
 0x182   :  { %v1558_v56 = vpop.f32.mrb[2].mxu0  ;;  %v1644_v57 = vpop.f32.mrb[2].mxu1  ;;  %v5220_v0 = vadd.f32 %v1556_v54, %v335_v52  ;;  %v5224_v1 = vadd.f32 %v1642_v55, %v343_v53 }
 0x183   :  { %v5221_v60 = vadd.f32 %v1558_v56, %v331_v43  ;;  %v5225_v61 = vadd.f32 %v1644_v57, %v339_v48  ;;  %v1560_v62 = vpop.f32.mrb[3].mxu0  ;;  %v1646_v63 = vpop.f32.mrb[3].mxu1  ;;  %v4540_v43 = vld [vmem:[#allocation8 + $0x8] ss:$0 sm:$0xff] }
 0x184   :  { %v5222_v2 = vadd.f32 %v1560_v62, %v335_v52  ;;  %v5226_v3 = vadd.f32 %v1646_v63, %v343_v53 }
 0x185   :  { %v6035_v4 = vpack.c.bf16 %v5221_v60, %v5219_v58  ;;  %v6037_v5 = vpack.c.bf16 %v5225_v61, %v5223_v59 }
 0x186   :  { %v6039_v6 = vpack.c.bf16 %v5222_v2, %v5220_v0  ;;  %v1906_v7 = vpack.c.bf16 %v5226_v3, %v5224_v1  ;;  %v1915_v2 = vand.u32 127, %v328_v41  ;;  %v5891_v3 = vmov -1e+30  }
 0x187   :  { %v6086_v62 = vrot.slane %v6035_v4, 4 }
 0x188   :  { %2032 = vrot.lane.b32.xlu1 %v1906_v7, %s5884_s3  ;;  %v1923_v9 = vsel %vm1918_vm1, %v1906_v7, 0  ;;  %v6079_v46 = vrot.slane %v1906_v7, 4  ;;  %v3111_v1 = vrot.slane %v6039_v6, 4  ;;  %vm1916_vm3 = vcmp.le.s32.totalorder %v1915_v2, %v6023_v42 }
 0x189   :  { %5008 = vmatpush3.bf16.xpose.msra.mxu1 %v1923_v9 }
 0x18a   :  { %5013 = vmatprep.subr.bf16.mxu1 %v5882_v21 }
 0x18c   :  { %2156 = vrot.lane.b32.xlu1 %v1906_v7, %s5885_s21 }
 0x190   :  { %2029 = vrot.lane.b32.xlu1 %v6035_v4, %s5884_s3  ;;  %5010 = vmatmul.mubr.msk.bf16.vlgmr.msra.gmra.mrb[12].mxu1 %vm1918_vm1, %v6035_v4 }
 0x191   :  { %5015 = vmatprep.mubr.msk.bf16.mxu1 %vm5883_vm0, %v5882_v21 }
 0x194   :  { %2149 = vrot.lane.b32.xlu1 %v6035_v4, %s5885_s21  ;;  %v6103_v4 = vsel %vm1916_vm3, 0.0, %v5891_v3  ;;  %vm2878_vm3 = vcmask 1044096  }
 0x198   :  { %2151 = vrot.lane.b32.xlu1 %v6039_v6, %s5885_s21 }
 0x1e0   :  { %v1726_v19 = vpop.f32.mrb[4].mxu0 }
 0x1e1   :  { %v5227_v20 = vadd.f32 %v1726_v19, %v347_v14  ;;  %v1728_v22 = vpop.f32.mrb[5].mxu0  ;;  %v1812_v23 = vpop.f32.mrb[4].mxu1 }
 0x1e2   :  { %v5228_v24 = vadd.f32 %v1728_v22, %v351_v15  ;;  %v1730_v25 = vpop.f32.mrb[6].mxu0  ;;  %v5231_v26 = vadd.f32 %v1812_v23, %v355_v17  ;;  %v1814_v27 = vpop.f32.mrb[5].mxu1 }
 0x1e3   :  { %v5229_v28 = vadd.f32 %v1730_v25, %v347_v14  ;;  %v1732_v29 = vpop.f32.mrb[7].mxu0  ;;  %v5232_v30 = vadd.f32 %v1814_v27, %v359_v18  ;;  %v1816_v50 = vpop.f32.mrb[6].mxu1  ;;  %v3479_v25 = vrot.slane %v6037_v5, 4 }
 0x1e4   :  { %v5230_v31 = vadd.f32 %v1732_v29, %v351_v15  ;;  %v5233_v32 = vadd.f32 %v1816_v50, %v355_v17  ;;  %v1818_v33 = vpop.f32.mrb[7].mxu1 }
 0x1e5   :  { %v6059_v34 = vpack.c.bf16 %v5229_v28, %v5227_v20  ;;  %v5234_v35 = vadd.f32 %v1818_v33, %v359_v18 }
 0x1e6   :  { %v1908_v36 = vpack.c.bf16 %v5230_v31, %v5228_v24  ;;  %v6061_v37 = vpack.c.bf16 %v5233_v32, %v5231_v26 }
 0x1e7   :  { %2282 = vrot.lane.b32.xlu1 %v6059_v34, %s5886_s22  ;;  %v6065_v38 = vpack.c.bf16 %v5234_v35, %v5232_v30  ;;  %v3117_v52 = vrot.slane %v6059_v34, 4 }
 0x1e8   :  { %v1983_v39 = vsel %vm1981_vm2, %v6061_v37, 0  ;;  %v3485_v0 = vrot.slane %v1908_v36, 4 }
 0x1e9   :  { %5014 = vmatpush3.bf16.msra.mxu1 %v1983_v39 }
 0x1ea   :  { %5019 = vmatprep.subr.bf16.mxu1 %v5882_v21 }
 0x1eb   :  { %2280 = vrot.lane.b32.xlu1 %v6039_v6, %s5886_s22 }
 0x1ef   :  { %2399 = vrot.lane.b32.xlu1 %v6059_v34, %s5887_s23 }
 0x1f3   :  { %2524 = vrot.lane.b32.xlu1 %v1908_v36, %s5888_s24 }
 0x1f7   :  { %2515 = vrot.lane.b32.xlu1 %v6039_v6, %s5888_s24 }
 0x1fa   :  { %v2033_v19 = vpop.permute.xlu1 %2032 }
 0x1fb   :  { %2648 = vrot.lane.b32.xlu1 %v1908_v36, %s5889_s25 }
 0x1fe   :  { %v2157_v20 = vpop.permute.xlu1 %2156 }
 0x1ff   :  { %2765 = vrot.lane.b32.xlu1 %v1908_v36, %s5890_s26 }
 0x200   :  { %v4877_v40 = vpop.f32.mrb[8].mxu0 }
 0x201   :  { %v4878_v8 = vpop.f32.mrb[9].mxu0  ;;  %v1896_v48 = vpop.f32.mrb[8].mxu1 }
 0x202   :  { %v4879_v49 = vadd.f32 %v4878_v8, %v4877_v40  ;;  %v4880_v51 = vpop.f32.mrb[10].mxu0  ;;  %v5005_v54 = vpop.f32.mrb[9].mxu1 }
 0x203   :  { %2995 = vrot.lane.b32.xlu1 %v6079_v46, %s5884_s3  ;;  %v4881_v53 = vpop.f32.mrb[11].mxu0  ;;  %v1899_v57 = vpop.f32.mrb[10].mxu1 }
 0x204   :  { %v4882_v55 = vadd.f32 %v4881_v53, %v4880_v51  ;;  %v1856_v56 = vadd.f32 %v4879_v49, %v4540_v43  ;;  %v5006_v58 = vpop.f32.mrb[11].mxu1  ;;  %v2030_v22 = vpop.permute.xlu1 %2029 }
 0x206   :  { %v1897_v59 = vadd.f32 %v1896_v48, %v1856_v56  ;;  %v1859_v60 = vadd.f32 %v4882_v55, %v4540_v43  ;;  %v2038_v56 = vsel %vm1918_vm1, %v2033_v19, 0 }
 0x207   :  { %3120 = vrot.lane.b32.xlu1 %v3117_v52, %s5885_s21 }
 0x208   :  { %v1900_v61 = vadd.f32 %v1899_v57, %v1859_v60 }
 0x20a   :  { %v6088_v63 = vpack.c.bf16 %v1900_v61, %v1897_v59 }
 0x20b   :  { %3112 = vrot.lane.b32.xlu1 %v6086_v62, %s5885_s21 }
 0x20f   :  { %3245 = vrot.lane.b32.xlu1 %v3117_v52, %s5886_s22 }
 0x213   :  { %3363 = vrot.lane.b32.xlu1 %v3117_v52, %s5887_s23 }
 0x217   :  { %3488 = vrot.lane.b32.xlu1 %v3485_v0, %s5888_s24 }
 0x21b   :  { %3480 = vrot.lane.b32.xlu1 %v3111_v1, %s5888_s24 }
 0x21f   :  { %3613 = vrot.lane.b32.xlu1 %v3485_v0, %s5889_s25 }
 0x223   :  { %3731 = vrot.lane.b32.xlu1 %v3485_v0, %s5890_s26 }
 0x227   :  { %2093 = vrot.lane.b32.xlu1 %v6061_v37, %s5884_s3 }
 0x263   :  { %v1959_v7 = vpop.f32.mrb[12].mxu1 }
 0x264   :  { %v1960_v9 = vadd.f32 %v1959_v7, %v6103_v4  ;;  %v5011_v10 = vpop.f32.mrb[13].mxu1 }
 0x265   :  { %v1962_v11 = vpop.f32.mrb[14].mxu1 }
 0x266   :  { %v5012_v12 = vpop.f32.mrb[15].mxu1  ;;  %v1966_v13 = vsel %vm1965_vm4, %v1960_v9, -inf }
 0x267   :  { %1967 = vmax.xlane.f32.xlu0 %v1966_v13  ;;  %v2886_v12 = vsel %vm1918_vm1, %v6079_v46, 0 }
 0x2f4   :  { %v1968_v14 = vpop.xlane.xlu0 %1967 }
 0x2f5   :  { %v1969_v15 = vsub.f32 %v1960_v9, %v1968_v14 }
 0x2f7   :  { %v1970_v17 = vmul.f32 1.442695, %v1969_v15 }
 0x2f9   :  { %5689 = vpow2.f32 %v1970_v17 }
 0x303   :  { %v5690_v41 = vpop.eup %5689 }
 0x304   :  { %v1972_v18 = vsel %vm1965_vm4, %v5690_v41, 0.0 }
 0x305   :  { %1973 = vadd.xlane.f32.xlu0 %v1972_v18 }
 0x31b   :  { %2158 = vrot.lane.b32.xlu0 %v6059_v34, %s5885_s21 }
 0x31f   :  { %2522 = vrot.lane.b32.xlu0 %v6059_v34, %s5888_s24 }
 0x323   :  { %2397 = vrot.lane.b32.xlu0 %v6039_v6, %s5887_s23  ;;  %v2150_v6 = vpop.permute.xlu1 %2149 }
 0x327   :  { %2517 = vrot.lane.b32.xlu0 %v6037_v5, %s5888_s24  ;;  %v2152_v23 = vpop.permute.xlu1 %2151 }
 0x32b   :  { %2646 = vrot.lane.b32.xlu0 %v6037_v5, %s5889_s25  ;;  %v2283_v24 = vpop.permute.xlu1 %2282 }
 0x32c   :  { %v2288_v53 = vsel %vm1918_vm1, %v2283_v24, 0 }
 0x32f   :  { %2763 = vrot.lane.b32.xlu0 %v6037_v5, %s5890_s26  ;;  %v2281_v26 = vpop.permute.xlu1 %2280 }
 0x333   :  { %3118 = vrot.lane.b32.xlu0 %v6079_v46, %s5885_s21  ;;  %v2400_v27 = vpop.permute.xlu1 %2399 }
 0x334   :  { %v2405_v58 = vsel %vm1918_vm1, %v2400_v27, 0 }
 0x337   :  { %2993 = vrot.lane.b32.xlu0 %v6086_v62, %s5884_s3  ;;  %v2525_v28 = vpop.permute.xlu1 %2524 }
 0x33b   :  { %3114 = vrot.lane.b32.xlu0 %v3111_v1, %s5885_s21  ;;  %v2516_v29 = vpop.permute.xlu1 %2515 }
 0x33f   :  { %3243 = vrot.lane.b32.xlu0 %v3111_v1, %s5886_s22  ;;  %v2649_v30 = vpop.permute.xlu1 %2648 }
 0x340   :  { %v2654_v7 = vsel %vm1918_vm1, %v2649_v30, 0 }
 0x343   :  { %3486 = vrot.lane.b32.xlu0 %v3117_v52, %s5888_s24  ;;  %v2766_v50 = vpop.permute.xlu1 %2765  ;;  %v2154_v52 = vsel %vm2153_vm5, %v2150_v6, %v2152_v23 }
 0x344   :  { %v2771_v10 = vsel %vm1918_vm1, %v2766_v50, 0 }
 0x347   :  { %3361 = vrot.lane.b32.xlu0 %v3111_v1, %s5887_s23  ;;  %v6134_v31 = vpop.permute.xlu1 %2995 }
 0x348   :  { %v3001_v13 = vsel %vm1918_vm1, %v6134_v31, 0 }
 0x34b   :  { %3482 = vrot.lane.b32.xlu0 %v3479_v25, %s5888_s24  ;;  %v6136_v32 = vpop.permute.xlu1 %3120 }
 0x34f   :  { %3611 = vrot.lane.b32.xlu0 %v3479_v25, %s5889_s25  ;;  %v6138_v5 = vpop.permute.xlu1 %3112 }
 0x353   :  { %3729 = vrot.lane.b32.xlu0 %v3479_v25, %s5890_s26  ;;  %v6140_v33 = vpop.permute.xlu1 %3245 }
 0x354   :  { %v3251_v18 = vsel %vm1918_vm1, %v6140_v33, 0 }
 0x357   :  { %2220 = vrot.lane.b32.xlu0 %v6061_v37, %s5885_s21  ;;  %v6142_v34 = vpop.permute.xlu1 %3363 }
 0x35b   :  { %v6144_v35 = vpop.permute.xlu1 %3488 }
 0x35f   :  { %v6146_v39 = vpop.permute.xlu1 %3480 }
 0x363   :  { %v6151_v48 = vpop.permute.xlu1 %3613 }
 0x364   :  { %v3619_v27 = vsel %vm1918_vm1, %v6151_v48, 0 }
 0x367   :  { %v6156_v55 = vpop.permute.xlu1 %3731 }
 0x36b   :  { %v2094_v57 = vpop.permute.xlu1 %2093 }
 0x36c   :  { %v2099_v60 = vsel %vm1981_vm2, %v2094_v57, 0 }
 0x392   :  { %v1974_v36 = vpop.xlane.xlu0 %1973 }
 0x393   :  { %5691 = vrcp.f32 %v1974_v36 }
 0x396   :  { %v2159_v40 = vpop.permute.xlu0 %2158 }
 0x397   :  { %v2160_v8 = vsel %vm2153_vm5, %v2157_v20, %v2159_v40  ;;  %v3369_v20 = vsel %vm1918_vm1, %v6142_v34, 0 }
 0x398   :  { %v2165_v43 = vsel %vm1918_vm1, %v2160_v8, 0 }
 0x399   :  { %5032 = vmatpush3.bf16.xpose.msra.mxu0 %v2165_v43 }
 0x39a   :  { %5043 = vmatprep.subr.bf16.mxu0 %v5882_v21  ;;  %v2523_v59 = vpop.permute.xlu0 %2522 }
 0x39b   :  { %v2526_v61 = vsel %vm2519_vm6, %v2523_v59, %v2525_v28 }
 0x39c   :  { %v2531_v1 = vsel %vm1918_vm1, %v2526_v61, 0 }
 0x39d   :  { %v5692_v49 = vpop.eup %5691 }
 0x39e   :  { %v1976_v51 = vmul.f32 %v5692_v49, %v5690_v41  ;;  %v2398_v0 = vpop.permute.xlu0 %2397 }
 0x3a0   :  { %5034 = vmatmul.mubr.msk.bf16.vlgmr.msra.gmra.mrb[12].mxu0 %vm1918_vm1, %v2154_v52  ;;  %v1977_v54 = vpack.c.bf16 %v1976_v51, %v1976_v51 }
 0x3a1   :  { %5044 = vmatpush3.bf16.xpose.msra.mxu0 %v2288_v53  ;;  %5045 = vmatprep.mubr.msk.bf16.mxu0 %vm5883_vm0, %v5882_v21 }
 0x3a2   :  { %5016 = vmatmul.mubr.msk.bf16.vlgmr.msra.gmra.mrb[16].mxu1 %vm1965_vm4, %v1977_v54  ;;  %5055 = vmatprep.subr.bf16.mxu0 %v5882_v21  ;;  %v2518_v2 = vpop.permute.xlu0 %2517 }
 0x3a3   :  { %5020 = vmatpush3.bf16.xpose.msra.mxu1 %v2038_v56  ;;  %5021 = vmatprep.mubr.msk.bf16.mxu1 %vm5883_vm0, %v5882_v21  ;;  %v2520_v3 = vsel %vm2519_vm6, %v2516_v29, %v2518_v2  ;;  %v3737_v29 = vsel %vm1918_vm1, %v6156_v55, 0 }
 0x3a4   :  { %5025 = vmatprep.subr.bf16.mxu1 %v5882_v21 }
 0x3a6   :  { %v2647_v9 = vpop.permute.xlu0 %2646 }
 0x3a8   :  { %5046 = vmatmul.mubr.msk.bf16.vlgmr.msra.gmra.mrb[16].mxu0 %vm1918_vm1, %v2281_v26 }
 0x3a9   :  { %5056 = vmatpush3.bf16.xpose.msra.mxu0 %v2405_v58  ;;  %5057 = vmatprep.mubr.msk.bf16.mxu0 %vm5883_vm0, %v5882_v21 }
 0x3aa   :  { %5022 = vmatmul.mubr.msk.bf16.vlgmr.msra.gmra.mrb[20].mxu1 %vm1918_vm1, %v2030_v22  ;;  %5067 = vmatprep.subr.bf16.mxu0 %v5882_v21  ;;  %v2764_v11 = vpop.permute.xlu0 %2763 }
 0x3ab   :  { %5026 = vmatpush3.bf16.msra.mxu1 %v2099_v60  ;;  %5027 = vmatprep.mubr.msk.bf16.mxu1 %vm5883_vm0, %v5882_v21 }
 0x3ac   :  { %5037 = vmatprep.subr.bf16.mxu1 %v5882_v21 }
 0x3ae   :  { %v3119_v14 = vpop.permute.xlu0 %3118 }
 0x3af   :  { %v3122_v46 = vsel %vm2153_vm5, %v3119_v14, %v6136_v32 }
 0x3b0   :  { %5058 = vmatmul.mubr.msk.bf16.vlgmr.msra.gmra.mrb[20].mxu0 %vm1918_vm1, %v2398_v0  ;;  %v3127_v17 = vsel %vm1918_vm1, %v3122_v46, 0 }
 0x3b1   :  { %5068 = vmatpush3.bf16.xpose.msra.mxu0 %v2531_v1  ;;  %5069 = vmatprep.mubr.msk.bf16.mxu0 %vm5883_vm0, %v5882_v21 }
 0x3b2   :  { %5079 = vmatprep.subr.bf16.mxu0 %v5882_v21  ;;  %v2994_v15 = vpop.permute.xlu0 %2993 }
 0x3b8   :  { %5070 = vmatmul.mubr.msk.bf16.vlgmr.msra.gmra.mrb[24].mxu0 %vm1918_vm1, %v2520_v3 }
 0x3b9   :  { %5080 = vmatpush3.bf16.xpose.msra.mxu0 %v2654_v7  ;;  %5081 = vmatprep.mubr.msk.bf16.mxu0 %vm5883_vm0, %v5882_v21 }
 0x3ba   :  { %5091 = vmatprep.subr.bf16.mxu0 %v5882_v21 }
 0x3c0   :  { %5082 = vmatmul.mubr.msk.bf16.vlgmr.msra.gmra.mrb[28].mxu0 %vm1918_vm1, %v2647_v9 }
 0x3c1   :  { %5092 = vmatpush3.bf16.xpose.msra.mxu0 %v2771_v10  ;;  %5093 = vmatprep.mubr.msk.bf16.mxu0 %vm5883_vm0, %v5882_v21 }
 0x3c2   :  { %5103 = vmatprep.subr.bf16.mxu0 %v5882_v21 }
 0x3c8   :  { %5094 = vmatmul.mubr.msk.bf16.vlgmr.msra.gmra.mrb[32].mxu0 %vm1918_vm1, %v2764_v11 }
 0x3c9   :  { %5104 = vmatpush3.bf16.xpose.msra.mxu0 %v2886_v12  ;;  %5105 = vmatprep.mubr.msk.bf16.mxu0 %vm5883_vm0, %v5882_v21 }
 0x3ca   :  { %5115 = vmatprep.subr.bf16.mxu0 %v5882_v21 }
 0x3d0   :  { %5106 = vmatmul.mubr.msk.bf16.vlgmr.msra.gmra.mrb[36].mxu0 %vm1918_vm1, %v6086_v62  ;;  %v3115_v62 = vpop.permute.xlu0 %3114 }
 0x3d1   :  { %5116 = vmatpush3.bf16.xpose.msra.mxu0 %v3001_v13  ;;  %5117 = vmatprep.mubr.msk.bf16.mxu0 %vm5883_vm0, %v5882_v21  ;;  %v3116_v41 = vsel %vm2153_vm5, %v6138_v5, %v3115_v62 }
 0x3d2   :  { %5127 = vmatprep.subr.bf16.mxu0 %v5882_v21 }
 0x3d4   :  { %v3244_v19 = vpop.permute.xlu0 %3243 }
 0x3d8   :  { %5118 = vmatmul.mubr.msk.bf16.vlgmr.msra.gmra.mrb[40].mxu0 %vm1918_vm1, %v2994_v15  ;;  %v3487_v22 = vpop.permute.xlu0 %3486 }
 0x3d9   :  { %5128 = vmatpush3.bf16.xpose.msra.mxu0 %v3127_v17  ;;  %5129 = vmatprep.mubr.msk.bf16.mxu0 %vm5883_vm0, %v5882_v21  ;;  %v3490_v6 = vsel %vm2519_vm6, %v3487_v22, %v6144_v35 }
 0x3da   :  { %5139 = vmatprep.subr.bf16.mxu0 %v5882_v21  ;;  %v3495_v24 = vsel %vm1918_vm1, %v3490_v6, 0 }
 0x3dc   :  { %v3362_v23 = vpop.permute.xlu0 %3361 }
 0x3e0   :  { %5130 = vmatmul.mubr.msk.bf16.vlgmr.msra.gmra.mrb[44].mxu0 %vm1918_vm1, %v3116_v41  ;;  %v3483_v25 = vpop.permute.xlu0 %3482 }
 0x3e1   :  { %5140 = vmatpush3.bf16.xpose.msra.mxu0 %v3251_v18  ;;  %5141 = vmatprep.mubr.msk.bf16.mxu0 %vm5883_vm0, %v5882_v21  ;;  %v3484_v26 = vsel %vm2519_vm6, %v6146_v39, %v3483_v25 }
 0x3e2   :  { %5151 = vmatprep.subr.bf16.mxu0 %v5882_v21 }
 0x3e4   :  { %v3612_v28 = vpop.permute.xlu0 %3611 }
 0x3e8   :  { %5142 = vmatmul.mubr.msk.bf16.vlgmr.msra.gmra.mrb[48].mxu0 %vm1918_vm1, %v3244_v19  ;;  %v3730_v30 = vpop.permute.xlu0 %3729 }
 0x3e9   :  { %5152 = vmatpush3.bf16.xpose.msra.mxu0 %v3369_v20  ;;  %5153 = vmatprep.mubr.msk.bf16.mxu0 %vm5883_vm0, %v5882_v21 }
 0x3ea   :  { %5163 = vmatprep.subr.bf16.mxu0 %v5882_v21 }
 0x3f0   :  { %5154 = vmatmul.mubr.msk.bf16.vlgmr.msra.gmra.mrb[52].mxu0 %vm1918_vm1, %v3362_v23 }
 0x3f1   :  { %5164 = vmatpush3.bf16.xpose.msra.mxu0 %v3495_v24  ;;  %5165 = vmatprep.mubr.msk.bf16.mxu0 %vm5883_vm0, %v5882_v21 }
 0x3f2   :  { %5175 = vmatprep.subr.bf16.mxu0 %v5882_v21 }
 0x3f8   :  { %5166 = vmatmul.mubr.msk.bf16.vlgmr.msra.gmra.mrb[56].mxu0 %vm1918_vm1, %v3484_v26 }
 0x3f9   :  { %5176 = vmatpush3.bf16.xpose.msra.mxu0 %v3619_v27  ;;  %5177 = vmatprep.mubr.msk.bf16.mxu0 %vm5883_vm0, %v5882_v21 }
 0x3fa   :  { %5187 = vmatprep.subr.bf16.mxu0 %v5882_v21 }
 0x400   :  { %5178 = vmatmul.mubr.msk.bf16.vlgmr.msra.gmra.mrb[60].mxu0 %vm1918_vm1, %v3612_v28 }
 0x401   :  { %5188 = vmatpush3.bf16.xpose.msra.mxu0 %v3737_v29  ;;  %5189 = vmatprep.mubr.msk.bf16.mxu0 %vm5883_vm0, %v5882_v21 }
 0x408   :  { %5190 = vmatmul.mubr.msk.bf16.vlgmr.msra.gmra.mrb[64].mxu0 %vm1918_vm1, %v3730_v30  ;;  %vm3109_vm1 = vcmask 785796  }
 0x473   :  { %v2201_v50 = vpop.f32.mrb[12].mxu0 }
 0x474   :  { %v6249_v31 = vadd.f32 %v2201_v50, %v6103_v4  ;;  %v5035_v32 = vpop.f32.mrb[13].mxu0 }
 0x475   :  { %v2019_v5 = vpop.f32.mrb[16].mxu1  ;;  %v2204_v33 = vpop.f32.mrb[14].mxu0 }
 0x476   :  { %v2025_v34 = vpack.c.bf16 %v2019_v5, %v2019_v5  ;;  %v5017_v35 = vpop.f32.mrb[17].mxu1  ;;  %v5036_v36 = vpop.f32.mrb[15].mxu0  ;;  %v2207_v39 = vsel %vm1965_vm4, %v6249_v31, -inf }
 0x477   :  { %2208 = vmax.xlane.f32.xlu0 %v2207_v39  ;;  %v2022_v40 = vpop.f32.mrb[18].mxu1 }
 0x478   :  { %2027 = vst.msk [vmem:[#allocation2] sm:$0xf] %vm2026_vm7, %v2025_v34  ;;  %v5018_v8 = vpop.f32.mrb[19].mxu1  ;;  %vm3477_vm7 = vcmask 916996  }
 0x47b   :  { %v2324_v43 = vpop.f32.mrb[16].mxu0 }
 0x47c   :  { %v6254_v48 = vadd.f32 %v2324_v43, %v6103_v4  ;;  %v5047_v49 = vpop.f32.mrb[17].mxu0 }
 0x47d   :  { %v6256_v51 = vpop.f32.mrb[20].mxu1  ;;  %v2327_v52 = vpop.f32.mrb[18].mxu0 }
 0x47e   :  { %v5023_v53 = vpop.f32.mrb[21].mxu1  ;;  %v5048_v54 = vpop.f32.mrb[19].mxu0  ;;  %v2330_v55 = vsel %vm1965_vm4, %v6254_v48, -inf }
 0x47f   :  { %2331 = vmax.xlane.f32.xlu0 %v2330_v55  ;;  %v2077_v56 = vpop.f32.mrb[22].mxu1 }
 0x480   :  { %v5024_v57 = vpop.f32.mrb[23].mxu1 }
 0x483   :  { %v2441_v58 = vpop.f32.mrb[20].mxu0 }
 0x484   :  { %v6261_v59 = vadd.f32 %v2441_v58, %v6103_v4  ;;  %v5059_v60 = vpop.f32.mrb[21].mxu0 }
 0x485   :  { %v2444_v61 = vpop.f32.mrb[22].mxu0 }
 0x486   :  { %v5060_v0 = vpop.f32.mrb[23].mxu0  ;;  %v2447_v1 = vsel %vm1965_vm4, %v6261_v59, -inf }
 0x487   :  { %2448 = vmax.xlane.f32.xlu1 %v2447_v1 }
 0x48b   :  { %v2567_v2 = vpop.f32.mrb[24].mxu0 }
 0x48c   :  { %v6266_v3 = vadd.f32 %v2567_v2, %v6103_v4  ;;  %v5071_v7 = vpop.f32.mrb[25].mxu0 }
 0x48d   :  { %v2570_v9 = vpop.f32.mrb[26].mxu0 }
 0x48e   :  { %v5072_v10 = vpop.f32.mrb[27].mxu0  ;;  %v2573_v11 = vsel %vm1965_vm4, %v6266_v3, -inf }
 0x48f   :  { %2574 = vmax.xlane.f32.xlu0 %v2573_v11 }
 0x493   :  { %v2690_v12 = vpop.f32.mrb[28].mxu0 }
 0x494   :  { %v6271_v13 = vadd.f32 %v2690_v12, %v6103_v4  ;;  %v5083_v14 = vpop.f32.mrb[29].mxu0 }
 0x495   :  { %v2693_v46 = vpop.f32.mrb[30].mxu0 }
 0x496   :  { %v5084_v15 = vpop.f32.mrb[31].mxu0  ;;  %v2696_v17 = vsel %vm1965_vm4, %v6271_v13, -inf }
 0x497   :  { %2697 = vmax.xlane.f32.xlu1 %v2696_v17 }
 0x49b   :  { %v2807_v62 = vpop.f32.mrb[32].mxu0 }
 0x49c   :  { %v6276_v41 = vadd.f32 %v2807_v62, %v6103_v4  ;;  %v5095_v18 = vpop.f32.mrb[33].mxu0 }
 0x49d   :  { %v2810_v19 = vpop.f32.mrb[34].mxu0 }
 0x49e   :  { %v5096_v20 = vpop.f32.mrb[35].mxu0  ;;  %v2813_v22 = vsel %vm1965_vm4, %v6276_v41, -inf  ;;  %v6310_v19 = vpop.permute.xlu0 %2220 }
 0x49f   :  { %2814 = vmax.xlane.f32.xlu0 %v2813_v22 }
 0x4a3   :  { %v2922_v6 = vpop.f32.mrb[36].mxu0 }
 0x4a4   :  { %v6281_v23 = vadd.f32 %v2922_v6, %v6103_v4  ;;  %v5107_v24 = vpop.f32.mrb[37].mxu0 }
 0x4a5   :  { %v2925_v25 = vpop.f32.mrb[38].mxu0 }
 0x4a6   :  { %v5108_v26 = vpop.f32.mrb[39].mxu0  ;;  %v2928_v27 = vsel %vm1965_vm4, %v6281_v23, -inf }
 0x4a7   :  { %2929 = vmax.xlane.f32.xlu1 %v2928_v27 }
 0x4ab   :  { %v3037_v28 = vpop.f32.mrb[40].mxu0 }
 0x4ac   :  { %v6286_v29 = vadd.f32 %v3037_v28, %v6103_v4  ;;  %v5119_v30 = vpop.f32.mrb[41].mxu0 }
 0x4ad   :  { %v3040_v50 = vpop.f32.mrb[42].mxu0 }
 0x4ae   :  { %v5120_v32 = vpop.f32.mrb[43].mxu0  ;;  %v3043_v5 = vsel %vm1965_vm4, %v6286_v29, -inf }
 0x4af   :  { %3044 = vmax.xlane.f32.xlu0 %v3043_v5 }
 0x4b3   :  { %v3163_v33 = vpop.f32.mrb[44].mxu0 }
 0x4b4   :  { %v6291_v34 = vadd.f32 %v3163_v33, %v6103_v4  ;;  %v5131_v35 = vpop.f32.mrb[45].mxu0 }
 0x4b5   :  { %v3166_v36 = vpop.f32.mrb[46].mxu0 }
 0x4b6   :  { %v5132_v39 = vpop.f32.mrb[47].mxu0  ;;  %v3169_v40 = vsel %vm1965_vm4, %v6291_v34, -inf }
 0x4b7   :  { %3170 = vmax.xlane.f32.xlu1 %v3169_v40 }
 0x4bb   :  { %v3287_v8 = vpop.f32.mrb[48].mxu0 }
 0x4bc   :  { %v6296_v43 = vadd.f32 %v3287_v8, %v6103_v4  ;;  %v5143_v49 = vpop.f32.mrb[49].mxu0 }
 0x4bd   :  { %v3290_v52 = vpop.f32.mrb[50].mxu0 }
 0x4be   :  { %v5144_v53 = vpop.f32.mrb[51].mxu0  ;;  %v3293_v54 = vsel %vm1965_vm4, %v6296_v43, -inf }
 0x4bf   :  { %3294 = vmax.xlane.f32.xlu0 %v3293_v54 }
 0x4c3   :  { %v3405_v55 = vpop.f32.mrb[52].mxu0 }
 0x4c4   :  { %v6301_v56 = vadd.f32 %v3405_v55, %v6103_v4  ;;  %v5155_v57 = vpop.f32.mrb[53].mxu0 }
 0x4c5   :  { %v3408_v58 = vpop.f32.mrb[54].mxu0 }
 0x4c6   :  { %v5156_v60 = vpop.f32.mrb[55].mxu0  ;;  %v3411_v61 = vsel %vm1965_vm4, %v6301_v56, -inf }
 0x4c7   :  { %3412 = vmax.xlane.f32.xlu0 %v3411_v61 }
 0x4cb   :  { %v3531_v0 = vpop.f32.mrb[56].mxu0 }
 0x4cc   :  { %v6306_v1 = vadd.f32 %v3531_v0, %v6103_v4  ;;  %v5167_v2 = vpop.f32.mrb[57].mxu0 }
 0x4cd   :  { %v3534_v7 = vpop.f32.mrb[58].mxu0 }
 0x4ce   :  { %v5168_v9 = vpop.f32.mrb[59].mxu0  ;;  %v3537_v10 = vsel %vm1965_vm4, %v6306_v1, -inf }
 0x4cf   :  { %3538 = vmax.xlane.f32.xlu0 %v3537_v10 }
 0x4d3   :  { %v3655_v11 = vpop.f32.mrb[60].mxu0 }
 0x4d4   :  { %v5179_v12 = vpop.f32.mrb[61].mxu0 }
 0x4d5   :  { %v3658_v14 = vpop.f32.mrb[62].mxu0 }
 0x4d6   :  { %v5180_v46 = vpop.f32.mrb[63].mxu0 }
 0x4db   :  { %v3773_v15 = vpop.f32.mrb[64].mxu0 }
 0x4dc   :  { %v5191_v17 = vpop.f32.mrb[65].mxu0  ;;  %v6354_v61 = vadd.f32 %v3773_v15, %v6103_v4 }
 0x4dd   :  { %v3776_v62 = vpop.f32.mrb[66].mxu0 }
 0x4de   :  { %v5192_v18 = vpop.f32.mrb[67].mxu0  ;;  %v3779_v2 = vsel %vm1965_vm4, %v6354_v61, -inf }
 0x504   :  { %v2209_v20 = vpop.xlane.xlu0 %2208 }
 0x505   :  { %v2210_v22 = vsub.f32 %v6249_v31, %v2209_v20  ;;  %v6323_v31 = vadd.f32 %v6256_v51, %v6103_v4 }
 0x507   :  { %v2211_v6 = vmul.f32 1.442695, %v2210_v22  ;;  %v2080_v33 = vsel %vm1965_vm4, %v6323_v31, -inf }
 0x509   :  { %5693 = vpow2.f32 %v2211_v6 }
 0x50c   :  { %v2332_v24 = vpop.xlane.xlu0 %2331 }
 0x50d   :  { %v2333_v25 = vsub.f32 %v6254_v48, %v2332_v24 }
 0x50f   :  { %v2334_v26 = vmul.f32 1.442695, %v2333_v25 }
 0x511   :  { %5695 = vpow2.f32 %v2334_v26 }
 0x513   :  { %v6314_v27 = vpop.eup %5693 }
 0x514   :  { %v2449_v28 = vpop.xlane.xlu1 %2448  ;;  %v2213_v30 = vsel %vm1965_vm4, %v6314_v27, 0.0 }
 0x515   :  { %v2450_v50 = vsub.f32 %v6261_v59, %v2449_v28  ;;  %2214 = vadd.xlane.f32.xlu1 %v2213_v30  ;;  %v6332_v59 = vadd.f32 %v3655_v11, %v6103_v4 }
 0x517   :  { %v2451_v32 = vmul.f32 1.442695, %v2450_v50  ;;  %v3661_v8 = vsel %vm1965_vm4, %v6332_v59, -inf }
 0x519   :  { %5697 = vpow2.f32 %v2451_v32  ;;  %v6392_v32 = vrot.slane %v6061_v37, 4 }
 0x51b   :  { %v6319_v5 = vpop.eup %5695 }
 0x51c   :  { %v2336_v48 = vsel %vm1965_vm4, %v6319_v5, 0.0  ;;  %v2575_v53 = vpop.xlane.xlu0 %2574 }
 0x51d   :  { %2337 = vadd.xlane.f32.xlu1 %v2336_v48  ;;  %v2576_v54 = vsub.f32 %v6266_v3, %v2575_v53  ;;  %v3181_v48 = vrot.slane %v6065_v38, 4 }
 0x521   :  { %2081 = vmax.xlane.f32.xlu1 %v2080_v33 }
 0x523   :  { %v6329_v35 = vpop.eup %5697 }
 0x524   :  { %v2698_v36 = vpop.xlane.xlu1 %2697  ;;  %v2453_v39 = vsel %vm1965_vm4, %v6329_v35, 0.0 }
 0x525   :  { %v2699_v51 = vsub.f32 %v6271_v13, %v2698_v36  ;;  %2454 = vadd.xlane.f32.xlu0 %v2453_v39  ;;  %v2577_v13 = vmul.f32 1.442695, %v2576_v54 }
 0x527   :  { %v2700_v40 = vmul.f32 1.442695, %v2699_v51 }
 0x529   :  { %5699 = vpow2.f32 %v2700_v40  ;;  %3662 = vmax.xlane.f32.xlu0 %v3661_v8 }
 0x52a   :  { %5701 = vpow2.f32 %v2577_v13 }
 0x52c   :  { %v2815_v55 = vpop.xlane.xlu0 %2814 }
 0x52d   :  { %v2816_v57 = vsub.f32 %v6276_v41, %v2815_v55 }
 0x52f   :  { %v2817_v58 = vmul.f32 1.442695, %v2816_v57 }
 0x531   :  { %5703 = vpow2.f32 %v2817_v58 }
 0x532   :  { %2222 = vrot.lane.b32.xlu1 %v6065_v38, %s5885_s21 }
 0x533   :  { %v6341_v49 = vpop.eup %5699 }
 0x534   :  { %v2702_v52 = vsel %vm1965_vm4, %v6341_v49, 0.0  ;;  %v6351_v60 = vpop.eup %5701  ;;  %v2930_v0 = vpop.xlane.xlu1 %2929 }
 0x535   :  { %2703 = vadd.xlane.f32.xlu0 %v2702_v52  ;;  %v2579_v3 = vsel %vm1965_vm4, %v6351_v60, 0.0  ;;  %v2931_v41 = vsub.f32 %v6281_v23, %v2930_v0 }
 0x537   :  { %v2932_v9 = vmul.f32 1.442695, %v2931_v41 }
 0x539   :  { %5705 = vpow2.f32 %v2932_v9 }
 0x53b   :  { %v6361_v7 = vpop.eup %5703 }
 0x53c   :  { %v2819_v10 = vsel %vm1965_vm4, %v6361_v7, 0.0  ;;  %v3045_v23 = vpop.xlane.xlu0 %3044 }
 0x53d   :  { %v3046_v12 = vsub.f32 %v6286_v29, %v3045_v23 }
 0x53f   :  { %v3047_v46 = vmul.f32 1.442695, %v3046_v12 }
 0x541   :  { %5707 = vpow2.f32 %v3047_v46 }
 0x543   :  { %v6365_v4 = vpop.eup %5705 }
 0x544   :  { %v2934_v11 = vsel %vm1965_vm4, %v6365_v4, 0.0  ;;  %v3171_v14 = vpop.xlane.xlu1 %3170 }
 0x545   :  { %v3172_v15 = vsub.f32 %v6291_v34, %v3171_v14 }
 0x547   :  { %v3173_v17 = vmul.f32 1.442695, %v3172_v15 }
 0x549   :  { %5709 = vpow2.f32 %v3173_v17 }
 0x54b   :  { %2342 = vrot.lane.b32.xlu0 %v6065_v38, %s5886_s22  ;;  %v6378_v22 = vpop.eup %5707 }
 0x54c   :  { %v3295_v62 = vpop.xlane.xlu0 %3294  ;;  %v3049_v29 = vsel %vm1965_vm4, %v6378_v22, 0.0 }
 0x54d   :  { %v3296_v18 = vsub.f32 %v6296_v43, %v3295_v62 }
 0x54f   :  { %2586 = vrot.lane.b32.xlu0 %v6065_v38, %s5888_s24  ;;  %v3297_v20 = vmul.f32 1.442695, %v3296_v18 }
 0x551   :  { %5711 = vpow2.f32 %v3297_v20 }
 0x553   :  { %v6382_v6 = vpop.eup %5709 }
 0x554   :  { %v3175_v24 = vsel %vm1965_vm4, %v6382_v6, 0.0  ;;  %v3413_v39 = vpop.xlane.xlu0 %3412 }
 0x555   :  { %v3414_v8 = vsub.f32 %v6301_v56, %v3413_v39 }
 0x556   :  { %2580 = vadd.xlane.f32.xlu1 %v2579_v3 }
 0x557   :  { %v3415_v53 = vmul.f32 1.442695, %v3414_v8 }
 0x55a   :  { %3780 = vmax.xlane.f32.xlu1 %v3779_v2 }
 0x55b   :  { %v6386_v34 = vpop.eup %5711 }
 0x55c   :  { %v3299_v25 = vsel %vm1965_vm4, %v6386_v34, 0.0  ;;  %v3539_v51 = vpop.xlane.xlu0 %3538 }
 0x55e   :  { %2820 = vadd.xlane.f32.xlu1 %v2819_v10 }
 0x56e   :  { %2935 = vadd.xlane.f32.xlu0 %v2934_v11 }
 0x56f   :  { %2459 = vrot.lane.b32.xlu1 %v6065_v38, %s5887_s23 }
 0x573   :  { %2588 = vrot.lane.b32.xlu1 %v6088_v63, %s5888_s24 }
 0x584   :  { %2708 = vrot.lane.b32.xlu0 %v6088_v63, %s5889_s25 }
 0x597   :  { %3050 = vadd.xlane.f32.xlu1 %v3049_v29 }
 0x59b   :  { %3176 = vadd.xlane.f32.xlu1 %v3175_v24 }
 0x5a2   :  { %v2215_v43 = vpop.xlane.xlu1 %2214 }
 0x5a3   :  { %3300 = vadd.xlane.f32.xlu0 %v3299_v25 }
 0x5aa   :  { %v2338_v26 = vpop.xlane.xlu1 %2337 }
 0x5ae   :  { %v2082_v28 = vpop.xlane.xlu1 %2081 }
 0x5af   :  { %v2083_v30 = vsub.f32 %v6323_v31, %v2082_v28  ;;  %v3540_v31 = vsub.f32 %v6306_v1, %v3539_v51 }
 0x5b1   :  { %v2084_v50 = vmul.f32 1.442695, %v2083_v30  ;;  %v3541_v40 = vmul.f32 1.442695, %v3540_v31 }
 0x5b2   :  { %v2223_v52 = vpop.permute.xlu1 %2222  ;;  %v2455_v3 = vpop.xlane.xlu0 %2454 }
 0x5b3   :  { %5713 = vpow2.f32 %v2084_v50  ;;  %v2224_v62 = vsel %vm2153_vm5, %v6310_v19, %v2223_v52 }
 0x5b4   :  { %5715 = vpow2.f32 %v3541_v40  ;;  %v2229_v24 = vsel %vm1981_vm2, %v2224_v62, 0 }
 0x5b5   :  { %5717 = vpow2.f32 %v3415_v53 }
 0x5b6   :  { %v3663_v41 = vpop.xlane.xlu0 %3662 }
 0x5b7   :  { %v3664_v2 = vsub.f32 %v6332_v59, %v3663_v41 }
 0x5b9   :  { %3055 = vrot.lane.b32.xlu0 %v6392_v32, %s5884_s3  ;;  %v3665_v9 = vmul.f32 1.442695, %v3664_v2 }
 0x5bd   :  { %v5714_v33 = vpop.eup %5713  ;;  %3184 = vrot.lane.b32.xlu0 %v3181_v48, %s5885_s21 }
 0x5be   :  { %v2086_v36 = vsel %vm1965_vm4, %v5714_v33, 0.0  ;;  %v6402_v37 = vpop.eup %5715 }
 0x5bf   :  { %2087 = vadd.xlane.f32.xlu1 %v2086_v36  ;;  %v3543_v38 = vsel %vm1965_vm4, %v6402_v37, 0.0  ;;  %v6408_v57 = vpop.eup %5717 }
 0x5c0   :  { %v3417_v58 = vsel %vm1965_vm4, %v6408_v57, 0.0 }
 0x5c2   :  { %v2704_v29 = vpop.xlane.xlu0 %2703 }
 0x5d0   :  { %2825 = vrot.lane.b32.xlu1 %v6088_v63, %s5890_s26 }
 0x5dc   :  { %3544 = vadd.xlane.f32.xlu0 %v3543_v38 }
 0x5e3   :  { %v2581_v54 = vpop.xlane.xlu1 %2580 }
 0x5e7   :  { %v3781_v13 = vpop.xlane.xlu1 %3780 }
 0x5e8   :  { %v3782_v1 = vsub.f32 %v6354_v61, %v3781_v13  ;;  %v3549_v61 = vrot.slane %v6088_v63, 4 }
 0x5ea   :  { %v3783_v55 = vmul.f32 1.442695, %v3782_v1 }
 0x5eb   :  { %v2821_v10 = vpop.xlane.xlu1 %2820 }
 0x5ec   :  { %5719 = vpow2.f32 %v3783_v55 }
 0x5ed   :  { %5721 = vpow2.f32 %v3665_v9 }
 0x5ef   :  { %v2460_v23 = vpop.permute.xlu1 %2459 }
 0x5f3   :  { %v2589_v12 = vpop.permute.xlu1 %2588 }
 0x5f4   :  { %3418 = vadd.xlane.f32.xlu1 %v3417_v58 }
 0x5f6   :  { %v6412_v0 = vpop.eup %5719 }
 0x5f7   :  { %v3785_v56 = vsel %vm1965_vm4, %v6412_v0, 0.0  ;;  %v6425_v11 = vpop.eup %5721 }
 0x5f8   :  { %3786 = vadd.xlane.f32.xlu0 %v3785_v56  ;;  %v3667_v63 = vsel %vm1965_vm4, %v6425_v11, 0.0 }
 0x605   :  { %3182 = vrot.lane.b32.xlu1 %v6392_v32, %s5885_s21 }
 0x609   :  { %3305 = vrot.lane.b32.xlu1 %v3181_v48, %s5886_s22 }
 0x60d   :  { %3423 = vrot.lane.b32.xlu1 %v3181_v48, %s5887_s23 }
 0x60e   :  { %3673 = vrot.lane.b32.xlu0 %v3549_v61, %s5889_s25 }
 0x611   :  { %3550 = vrot.lane.b32.xlu1 %v3181_v48, %s5888_s24  ;;  %v2465_v48 = vsel %vm1981_vm2, %v2460_v23, 0 }
 0x615   :  { %3552 = vrot.lane.b32.xlu1 %v3549_v61, %s5888_s24 }
 0x624   :  { %v6429_v14 = vpop.xlane.xlu1 %3050 }
 0x628   :  { %v6431_v46 = vpop.xlane.xlu1 %3176 }
 0x639   :  { %3668 = vadd.xlane.f32.xlu1 %v3667_v63 }
 0x64a   :  { %3791 = vrot.lane.b32.xlu1 %v3549_v61, %s5890_s26 }
 0x64c   :  { %v2088_v15 = vpop.xlane.xlu1 %2087 }
 0x64d   :  { %5723 = vrcp.f32 %v2088_v15 }
 0x64e   :  { %5725 = vrcp.f32 %v2215_v43  ;;  %v2343_v43 = vpop.permute.xlu0 %2342 }
 0x64f   :  { %5727 = vrcp.f32 %v2338_v26  ;;  %v2348_v19 = vsel %vm1981_vm2, %v2343_v43, 0 }
 0x650   :  { %5729 = vrcp.f32 %v2455_v3  ;;  %v2945_v3 = vsel %vm1981_vm2, %v6392_v32, 0 }
 0x651   :  { %5731 = vrcp.f32 %v2581_v54 }
 0x652   :  { %v2587_v36 = vpop.permute.xlu0 %2586  ;;  %5733 = vrcp.f32 %v2704_v29 }
 0x653   :  { %5735 = vrcp.f32 %v2821_v10 }
 0x656   :  { %v2936_v31 = vpop.xlane.xlu0 %2935 }
 0x657   :  { %v5724_v59 = vpop.eup %5723  ;;  %5737 = vrcp.f32 %v2936_v31 }
 0x658   :  { %v2090_v17 = vmul.f32 %v5724_v59, %v5714_v33  ;;  %v5726_v20 = vpop.eup %5725  ;;  %5739 = vrcp.f32 %v6429_v14 }
 0x659   :  { %v2217_v25 = vmul.f32 %v5726_v20, %v6314_v27  ;;  %v5728_v28 = vpop.eup %5727  ;;  %5741 = vrcp.f32 %v6431_v46 }
 0x65a   :  { %v2091_v18 = vpack.c.bf16 %v2090_v17, %v2090_v17  ;;  %v2340_v30 = vmul.f32 %v5728_v28, %v6319_v5  ;;  %v5730_v50 = vpop.eup %5729  ;;  %v2590_v5 = vsel %vm2519_vm6, %v2587_v36, %v2589_v12 }
 0x65b   :  { %v2218_v26 = vpack.c.bf16 %v2217_v25, %v2217_v25  ;;  %v2457_v33 = vmul.f32 %v5730_v50, %v6329_v35  ;;  %v5732_v51 = vpop.eup %5731  ;;  %v2595_v40 = vsel %vm1981_vm2, %v2590_v5, 0  ;;  %v2709_v35 = vpop.permute.xlu0 %2708 }
 0x65c   :  { %5028 = vmatmul.mubr.msk.bf16.vlgmr.msra.gmra.mrb[24].mxu1 %vm1965_vm4, %v2091_v18  ;;  %v2341_v27 = vpack.c.bf16 %v2340_v30, %v2340_v30  ;;  %v2583_v38 = vmul.f32 %v5732_v51, %v6351_v60  ;;  %v5734_v52 = vpop.eup %5733  ;;  %v2714_v53 = vsel %vm1981_vm2, %v2709_v35, 0  ;;  %v2826_v60 = vpop.permute.xlu1 %2825 }
 0x65d   :  { %5038 = vmatpush3.bf16.msra.mxu1 %v2229_v24  ;;  %5039 = vmatprep.mubr.msk.bf16.mxu1 %vm5883_vm0, %v5882_v21  ;;  %v2458_v39 = vpack.c.bf16 %v2457_v33, %v2457_v33  ;;  %v2706_v54 = vmul.f32 %v5734_v52, %v6341_v49  ;;  %v5736_v1 = vpop.eup %5735  ;;  %v2831_v55 = vsel %vm1981_vm2, %v2826_v60, 0 }
 0x65e   :  { %5049 = vmatprep.subr.bf16.mxu1 %v5882_v21  ;;  %v2584_v8 = vpack.c.bf16 %v2583_v38, %v2583_v38  ;;  %v2823_v58 = vmul.f32 %v5736_v1, %v6361_v7 }
 0x65f   :  { %v2707_v13 = vpack.c.bf16 %v2706_v54, %v2706_v54  ;;  %v3301_v61 = vpop.xlane.xlu0 %3300 }
 0x660   :  { %v2824_v49 = vpack.c.bf16 %v2823_v58, %v2823_v58  ;;  %5743 = vrcp.f32 %v3301_v61 }
 0x661   :  { %v5738_v56 = vpop.eup %5737 }
 0x662   :  { %v2938_v41 = vmul.f32 %v5738_v56, %v6365_v4  ;;  %v5740_v10 = vpop.eup %5739 }
 0x663   :  { %v3056_v2 = vpop.permute.xlu0 %3055  ;;  %v3053_v32 = vmul.f32 %v5740_v10, %v6378_v22  ;;  %v5742_v46 = vpop.eup %5741  ;;  %v5598_v10 = vld [vmem:[#allocation9 + $0x1c] ss:$12 sps:$4 sm:$0xff]  }
 0x664   :  { %5040 = vmatmul.mubr.msk.bf16.vlgmr.msra.gmra.mrb[28].mxu1 %vm1965_vm4, %v2218_v26  ;;  %v2939_v9 = vpack.c.bf16 %v2938_v41, %v2938_v41  ;;  %v3061_v23 = vsel %vm1981_vm2, %v3056_v2, 0  ;;  %v3179_v22 = vmul.f32 %v5742_v46, %v6382_v6  ;;  %v5593_v2 = vld [vmem:[#allocation9] ss:$12 sps:$4 sm:$0xff]  }
 0x665   :  { %5050 = vmatpush3.bf16.msra.mxu1 %v2348_v19  ;;  %5051 = vmatprep.mubr.msk.bf16.mxu1 %vm5883_vm0, %v5882_v21  ;;  %v3054_v14 = vpack.c.bf16 %v3053_v32, %v3053_v32 }
 0x666   :  { %5061 = vmatprep.subr.bf16.mxu1 %v5882_v21  ;;  %v3180_v62 = vpack.c.bf16 %v3179_v22, %v3179_v22 }
 0x667   :  { %v3185_v4 = vpop.permute.xlu0 %3184 }
 0x66a   :  { %v5744_v18 = vpop.eup %5743 }
 0x66b   :  { %v3303_v29 = vmul.f32 %v5744_v18, %v6386_v34  ;;  %v3545_v24 = vpop.xlane.xlu0 %3544  ;;  %v5602_v18 = vld [vmem:[#allocation9 + $0x48] ss:$12 sps:$4 sm:$0xff]  }
 0x66c   :  { %5052 = vmatmul.mubr.msk.bf16.vlgmr.msra.gmra.mrb[32].mxu1 %vm1965_vm4, %v2341_v27 }
 0x66d   :  { %5062 = vmatpush3.bf16.msra.mxu1 %v2465_v48  ;;  %5063 = vmatprep.mubr.msk.bf16.mxu1 %vm5883_vm0, %v5882_v21  ;;  %v3304_v25 = vpack.c.bf16 %v3303_v29, %v3303_v29  ;;  %v5607_v29 = vld [vmem:[#allocation9 + $0x64] ss:$12 sps:$4 sm:$0xff]  }
 0x66e   :  { %5073 = vmatprep.subr.bf16.mxu1 %v5882_v21 }
 0x674   :  { %5064 = vmatmul.mubr.msk.bf16.vlgmr.msra.gmra.mrb[36].mxu1 %vm1965_vm4, %v2458_v39 }
 0x675   :  { %5074 = vmatpush3.bf16.msra.mxu1 %v2595_v40  ;;  %5075 = vmatprep.mubr.msk.bf16.mxu1 %vm5883_vm0, %v5882_v21 }
 0x676   :  { %5085 = vmatprep.subr.bf16.mxu1 %v5882_v21 }
 0x67c   :  { %5076 = vmatmul.mubr.msk.bf16.vlgmr.msra.gmra.mrb[40].mxu1 %vm1965_vm4, %v2584_v8 }
 0x67d   :  { %5086 = vmatpush3.bf16.msra.mxu1 %v2714_v53  ;;  %5087 = vmatprep.mubr.msk.bf16.mxu1 %vm5883_vm0, %v5882_v21 }
 0x67e   :  { %5097 = vmatprep.subr.bf16.mxu1 %v5882_v21 }
 0x681   :  { %v3419_v7 = vpop.xlane.xlu1 %3418 }
 0x682   :  { %5745 = vrcp.f32 %v3419_v7 }
 0x683   :  { %5747 = vrcp.f32 %v3545_v24 }
 0x684   :  { %5088 = vmatmul.mubr.msk.bf16.vlgmr.msra.gmra.mrb[44].mxu1 %vm1965_vm4, %v2707_v13 }
 0x685   :  { %5098 = vmatpush3.bf16.msra.mxu1 %v2831_v55  ;;  %5099 = vmatprep.mubr.msk.bf16.mxu1 %vm5883_vm0, %v5882_v21  ;;  %v3183_v63 = vpop.permute.xlu1 %3182  ;;  %v3787_v50 = vpop.xlane.xlu0 %3786 }
 0x686   :  { %5109 = vmatprep.subr.bf16.mxu1 %v5882_v21  ;;  %v3186_v12 = vsel %vm2153_vm5, %v3183_v63, %v3185_v4  ;;  %v5596_v4 = vld [vmem:[#allocation9 + $0x18] ss:$12 sps:$4 sm:$0xff]   ;;  %vm3241_vm5 = vcmask 130052  }
 0x687   :  { %v3191_v15 = vsel %vm1981_vm2, %v3186_v12, 0 }
 0x689   :  { %v3306_v59 = vpop.permute.xlu1 %3305 }
 0x68a   :  { %v3311_v20 = vsel %vm1981_vm2, %v3306_v59, 0  ;;  %v5604_v59 = vld [vmem:[#allocation9 + $0x4c] ss:$12 sps:$4 sm:$0xff]  }
 0x68c   :  { %5100 = vmatmul.mubr.msk.bf16.vlgmr.msra.gmra.mrb[48].mxu1 %vm1965_vm4, %v2824_v49  ;;  %v5746_v43 = vpop.eup %5745 }
 0x68d   :  { %5110 = vmatpush3.bf16.msra.mxu1 %v2945_v3  ;;  %5111 = vmatprep.mubr.msk.bf16.mxu1 %vm5883_vm0, %v5882_v21  ;;  %v3424_v17 = vpop.permute.xlu1 %3423  ;;  %v3421_v28 = vmul.f32 %v5746_v43, %v6408_v57  ;;  %v5748_v27 = vpop.eup %5747 }
 0x68e   :  { %5121 = vmatprep.subr.bf16.mxu1 %v5882_v21  ;;  %v3429_v26 = vsel %vm1981_vm2, %v3424_v17, 0  ;;  %v3547_v33 = vmul.f32 %v5748_v27, %v6402_v37  ;;  %v3674_v57 = vpop.permute.xlu0 %3673 }
 0x68f   :  { %v3422_v30 = vpack.c.bf16 %v3421_v28, %v3421_v28  ;;  %v3679_v5 = vsel %vm1981_vm2, %v3674_v57, 0  ;;  %v5608_v28 = vld [vmem:[#allocation9 + $0x78] ss:$12 sps:$4 sm:$0xff]   ;;  %v5611_v57 = vld [vmem:[#allocation9 + $0x90] ss:$12 sps:$4 sm:$0xff]  }
 0x690   :  { %v3548_v36 = vpack.c.bf16 %v3547_v33, %v3547_v33 }
 0x691   :  { %v3551_v6 = vpop.permute.xlu1 %3550 }
 0x694   :  { %5112 = vmatmul.mubr.msk.bf16.vlgmr.msra.gmra.mrb[52].mxu1 %vm1965_vm4, %v2939_v9  ;;  %v5595_v9 = vld [vmem:[#allocation9 + $0x4] ss:$12 sps:$4 sm:$0xff]  }
 0x695   :  { %5122 = vmatpush3.bf16.msra.mxu1 %v3061_v23  ;;  %5123 = vmatprep.mubr.msk.bf16.mxu1 %vm5883_vm0, %v5882_v21  ;;  %v3553_v19 = vpop.permute.xlu1 %3552 }
 0x696   :  { %5133 = vmatprep.subr.bf16.mxu1 %v5882_v21  ;;  %v3554_v34 = vsel %vm2519_vm6, %v3551_v6, %v3553_v19  ;;  %4347 = vmatprep.subr.bf16.mxu0 %v5595_v9  ;;  %v5605_v6 = vld [vmem:[#allocation9 + $0x60] ss:$12 sps:$4 sm:$0xff]   ;;  %vm3359_vm6 = vcmask 523396  }
 0x697   :  { %v3559_v48 = vsel %vm1981_vm2, %v3554_v34, 0  ;;  %4348 = vmatpush1.bf16.msra.mxu0 %v5593_v2 }
 0x698   :  { %4349 = vmatprep.subr.bf16.mxu0 %v5598_v10  ;;  %v5630_v10 = vld [vmem:[#allocation9 + $0xf8] ss:$12 sps:$4 sm:$0xff]  }
 0x69b   :  { %4350 = vmatpush1.bf16.msra.mxu0 %v5596_v4 }
 0x69c   :  { %5124 = vmatmul.mubr.msk.bf16.vlgmr.msra.gmra.mrb[56].mxu1 %vm1965_vm4, %v3054_v14  ;;  %v5601_v14 = vld [vmem:[#allocation9 + $0x34] ss:$12 sps:$4 sm:$0xff]  }
 0x69d   :  { %5134 = vmatpush3.bf16.msra.mxu1 %v3191_v15  ;;  %5135 = vmatprep.mubr.msk.bf16.mxu1 %vm5883_vm0, %v5882_v21  ;;  %v5599_v15 = vld [vmem:[#allocation9 + $0x30] ss:$12 sps:$4 sm:$0xff]  }
 0x69e   :  { %5145 = vmatprep.subr.bf16.mxu1 %v5882_v21  ;;  %4351 = vmatprep.subr.bf16.mxu0 %v5601_v14 }
 0x69f   :  { %4352 = vmatpush1.bf16.msra.mxu0 %v5599_v15  ;;  %v5632_v15 = vld [vmem:[#allocation9 + $0x108] ss:$12 sps:$4 sm:$0xff]  }
 0x6a0   :  { %4353 = vmatprep.subr.bf16.mxu0 %v5604_v59  ;;  %v5636_v59 = vld [vmem:[#allocation9 + $0x50] ss:$12 sps:$4 sm:$0xff]  }
 0x6a3   :  { %4354 = vmatpush1.bf16.msra.mxu0 %v5602_v18 }
 0x6a4   :  { %5136 = vmatmul.mubr.msk.bf16.vlgmr.msra.gmra.mrb[60].mxu1 %vm1965_vm4, %v3180_v62  ;;  %4355 = vmatprep.subr.bf16.mxu0 %v5607_v29  ;;  %v5640_v29 = vld [vmem:[#allocation9 + $0x128] ss:$12 sps:$4 sm:$0xff]  }
 0x6a5   :  { %5146 = vmatpush3.bf16.msra.mxu1 %v3311_v20  ;;  %5147 = vmatprep.mubr.msk.bf16.mxu1 %vm5883_vm0, %v5882_v21 }
 0x6a6   :  { %5157 = vmatprep.subr.bf16.mxu1 %v5882_v21 }
 0x6a7   :  { %4356 = vmatpush1.bf16.msra.mxu0 %v5605_v6 }
 0x6ac   :  { %5148 = vmatmul.mubr.msk.bf16.vlgmr.msra.gmra.mrb[64].mxu1 %vm1965_vm4, %v3304_v25  ;;  %v5610_v25 = vld [vmem:[#allocation9 + $0x7c] ss:$12 sps:$4 sm:$0xff]  }
 0x6ad   :  { %5158 = vmatpush3.bf16.msra.mxu1 %v3429_v26  ;;  %5159 = vmatprep.mubr.msk.bf16.mxu1 %vm5883_vm0, %v5882_v21 }
 0x6ae   :  { %5169 = vmatprep.subr.bf16.mxu1 %v5882_v21  ;;  %4357 = vmatprep.subr.bf16.mxu0 %v5610_v25  ;;  %v5644_v25 = vld [vmem:[#allocation9 + $0x13c] ss:$12 sps:$4 sm:$0xff]  }
 0x6af   :  { %4358 = vmatpush1.bf16.msra.mxu0 %v5608_v28  ;;  %v5645_v28 = vld [vmem:[#allocation9 + $0x140] ss:$12 sps:$4 sm:$0xff]  }
 0x6b4   :  { %5160 = vmatmul.mubr.msk.bf16.vlgmr.msra.gmra.mrb[68].mxu1 %vm1965_vm4, %v3422_v30 }
 0x6b5   :  { %5170 = vmatpush3.bf16.msra.mxu1 %v3559_v48  ;;  %5171 = vmatprep.mubr.msk.bf16.mxu1 %vm5883_vm0, %v5882_v21 }
 0x6b6   :  { %5181 = vmatprep.subr.bf16.mxu1 %v5882_v21 }
 0x6bc   :  { %5172 = vmatmul.mubr.msk.bf16.vlgmr.msra.gmra.mrb[72].mxu1 %vm1965_vm4, %v3548_v36  ;;  %v5613_v36 = vld [vmem:[#allocation9 + $0x94] ss:$12 sps:$4 sm:$0xff]  }
 0x6bd   :  { %5182 = vmatpush3.bf16.msra.mxu1 %v3679_v5  ;;  %5183 = vmatprep.mubr.msk.bf16.mxu1 %vm5883_vm0, %v5882_v21 }
 0x6be   :  { %5193 = vmatprep.subr.bf16.mxu1 %v5882_v21  ;;  %4359 = vmatprep.subr.bf16.mxu0 %v5613_v36  ;;  %v5651_v36 = vld [vmem:[#allocation9 + $0x98] ss:$12 sps:$4 sm:$0xff]  }
 0x6bf   :  { %4360 = vmatpush1.bf16.msra.mxu0 %v5611_v57  ;;  %v5650_v57 = vld [vmem:[#allocation9 + $0x158] ss:$12 sps:$4 sm:$0xff]  }
 0x6c6   :  { %v3669_v39 = vpop.xlane.xlu1 %3668 }
 0x6c7   :  { %5749 = vrcp.f32 %v3669_v39 }
 0x6c8   :  { %5751 = vrcp.f32 %v3787_v50 }
 0x6ca   :  { %v3792_v31 = vpop.permute.xlu1 %3791 }
 0x6cb   :  { %v3797_v35 = vsel %vm1981_vm2, %v3792_v31, 0  ;;  %vm2761_vm2 = vcmask 650496  }
 0x6d1   :  { %v5750_v51 = vpop.eup %5749 }
 0x6d2   :  { %v3671_v37 = vmul.f32 %v5750_v51, %v6425_v11  ;;  %v5752_v38 = vpop.eup %5751 }
 0x6d3   :  { %v3789_v8 = vmul.f32 %v5752_v38, %v6412_v0  ;;  %v5616_v38 = vld [vmem:[#allocation9 + $0xac] ss:$12 sps:$4 sm:$0xff]  }
 0x6d4   :  { %v3672_v40 = vpack.c.bf16 %v3671_v37, %v3671_v37  ;;  %4361 = vmatprep.subr.bf16.mxu0 %v5616_v38  ;;  %v5656_v38 = vld [vmem:[#allocation9 + $0xb0] ss:$12 sps:$4 sm:$0xff]  }
 0x6d5   :  { %v3790_v52 = vpack.c.bf16 %v3789_v8, %v3789_v8  ;;  %v5617_v8 = vld [vmem:[#allocation9 + $0xc0] ss:$12 sps:$4 sm:$0xff]  }
 0x6d6   :  { %5184 = vmatmul.mubr.msk.bf16.vlgmr.msra.gmra.mrb[76].mxu1 %vm1965_vm4, %v3672_v40  ;;  %v5614_v40 = vld [vmem:[#allocation9 + $0xa8] ss:$12 sps:$4 sm:$0xff]  }
 0x6d7   :  { %5194 = vmatpush3.bf16.msra.mxu1 %v3797_v35  ;;  %5195 = vmatprep.mubr.msk.bf16.mxu1 %vm5883_vm0, %v5882_v21 }
 0x6d8   :  { %4362 = vmatpush1.bf16.msra.mxu0 %v5614_v40  ;;  %v5652_v40 = vld [vmem:[#allocation9 + $0x168] ss:$12 sps:$4 sm:$0xff]  }
 0x6de   :  { %5196 = vmatmul.mubr.msk.bf16.vlgmr.msra.gmra.mrb[80].mxu1 %vm1965_vm4, %v3790_v52  ;;  %vm3239_vm4 = vcmask 1048324  }
 0x72f   :  { %v2135_v53 = vpop.f32.mrb[24].mxu1 }
 0x730   :  { %v2141_v54 = vpack.c.bf16 %v2135_v53, %v2135_v53  ;;  %v5029_v60 = vpop.f32.mrb[25].mxu1 }
 0x731   :  { %v2138_v11 = vpop.f32.mrb[26].mxu1  ;;  %v5620_v60 = vld [vmem:[#allocation9 + $0xc8] ss:$12 sps:$4 sm:$0xff]  }
 0x732   :  { %2143 = vrot.lane.b32.xlu1 %v2141_v54, %s5890_s26  ;;  %v5030_v13 = vpop.f32.mrb[27].mxu1  ;;  %v5619_v54 = vld [vmem:[#allocation9 + $0xc4] ss:$12 sps:$4 sm:$0xff]   ;;  %4956 = vmatprep.subr.bf16.mxu1 %v5620_v60 }
 0x733   :  { %v5621_v13 = vld [vmem:[#allocation9 + $0x8] ss:$12 sps:$4 sm:$0xff]   ;;  %4363 = vmatprep.subr.bf16.mxu0 %v5619_v54 }
 0x734   :  { %4364 = vmatpush1.bf16.msra.mxu0 %v5617_v8  ;;  %4957 = vmatpush3.bf16.msra.mxu1 %v5621_v13 }
 0x737   :  { %v2265_v1 = vpop.f32.mrb[28].mxu1 }
 0x738   :  { %v2271_v55 = vpack.c.bf16 %v2265_v1, %v2265_v1  ;;  %v5041_v58 = vpop.f32.mrb[29].mxu1 }
 0x739   :  { %v2268_v49 = vpop.f32.mrb[30].mxu1  ;;  %v5624_v58 = vld [vmem:[#allocation9 + $0xdc] ss:$12 sps:$4 sm:$0xff]  }
 0x73a   :  { %2273 = vrot.lane.b32.xlu0 %v2271_v55, %s5889_s25  ;;  %v5042_v56 = vpop.f32.mrb[31].mxu1  ;;  %v5625_v49 = vld [vmem:[#allocation9 + $0xe0] ss:$12 sps:$4 sm:$0xff]   ;;  %4365 = vmatprep.subr.bf16.mxu0 %v5624_v58 }
 0x73b   :  { %v5622_v56 = vld [vmem:[#allocation9 + $0xd8] ss:$12 sps:$4 sm:$0xff]   ;;  %4958 = vmatprep.subr.bf16.mxu1 %v5625_v49 }
 0x73c   :  { %4366 = vmatpush1.bf16.msra.mxu0 %v5622_v56 }
 0x73f   :  { %v2384_v61 = vpop.f32.mrb[32].mxu1 }
 0x740   :  { %v2390_v3 = vpack.c.bf16 %v2384_v61, %v2384_v61  ;;  %v5053_v0 = vpop.f32.mrb[33].mxu1  ;;  %v5626_v61 = vld [vmem:[#allocation9 + $0x20] ss:$12 sps:$4 sm:$0xff]  }
 0x741   :  { %v2387_v41 = vpop.f32.mrb[34].mxu1  ;;  %4959 = vmatpush3.bf16.msra.mxu1 %v5626_v61 }
 0x742   :  { %2392 = vrot.lane.b32.xlu0 %v2390_v3, %s5888_s24  ;;  %v5054_v7 = vpop.f32.mrb[35].mxu1  ;;  %v5627_v41 = vld [vmem:[#allocation9 + $0xf0] ss:$12 sps:$4 sm:$0xff]   ;;  %4960 = vmatprep.subr.bf16.mxu1 %v5630_v10 }
 0x743   :  { %v5629_v7 = vld [vmem:[#allocation9 + $0xf4] ss:$12 sps:$4 sm:$0xff]  }
 0x744   :  { %4367 = vmatprep.subr.bf16.mxu0 %v5629_v7 }
 0x745   :  { %4368 = vmatpush1.bf16.msra.mxu0 %v5627_v41 }
 0x747   :  { %v2501_v23 = vpop.f32.mrb[36].mxu1 }
 0x748   :  { %v2507_v32 = vpack.c.bf16 %v2501_v23, %v2501_v23  ;;  %v5065_v63 = vpop.f32.mrb[37].mxu1  ;;  %v5631_v23 = vld [vmem:[#allocation9 + $0x38] ss:$12 sps:$4 sm:$0xff]  }
 0x749   :  { %v2504_v12 = vpop.f32.mrb[38].mxu1  ;;  %v5634_v63 = vld [vmem:[#allocation9 + $0x10c] ss:$12 sps:$4 sm:$0xff]   ;;  %4961 = vmatpush3.bf16.msra.mxu1 %v5631_v23 }
 0x74a   :  { %2509 = vrot.lane.b32.xlu1 %v2507_v32, %s5887_s23  ;;  %v5066_v46 = vpop.f32.mrb[39].mxu1  ;;  %4369 = vmatprep.subr.bf16.mxu0 %v5634_v63 }
 0x74b   :  { %v5635_v46 = vld [vmem:[#allocation9 + $0x110] ss:$12 sps:$4 sm:$0xff]   ;;  %4370 = vmatpush1.bf16.msra.mxu0 %v5632_v15 }
 0x74c   :  { %4962 = vmatprep.subr.bf16.mxu1 %v5635_v46 }
 0x74d   :  { %4963 = vmatpush3.bf16.msra.mxu1 %v5636_v59 }
 0x74e   :  { %4964 = vmatprep.subr.bf16.mxu1 %v5640_v29 }
 0x74f   :  { %v2631_v22 = vpop.f32.mrb[40].mxu1 }
 0x750   :  { %v2637_v17 = vpack.c.bf16 %v2631_v22, %v2631_v22  ;;  %v5077_v62 = vpop.f32.mrb[41].mxu1 }
 0x751   :  { %v2634_v20 = vpop.f32.mrb[42].mxu1  ;;  %v5639_v62 = vld [vmem:[#allocation9 + $0x124] ss:$12 sps:$4 sm:$0xff]  }
 0x752   :  { %2639 = vrot.lane.b32.xlu0 %v2637_v17, %s5886_s22  ;;  %v5078_v24 = vpop.f32.mrb[43].mxu1  ;;  %v5637_v17 = vld [vmem:[#allocation9 + $0x120] ss:$12 sps:$4 sm:$0xff]   ;;  %4371 = vmatprep.subr.bf16.mxu0 %v5639_v62  ;;  %v5660_v62 = vld [vmem:[#allocation9 + $0x188] ss:$12 sps:$4 sm:$0xff]  }
 0x753   :  { %v5641_v24 = vld [vmem:[#allocation9 + $0x68] ss:$12 sps:$4 sm:$0xff]   ;;  %4372 = vmatpush1.bf16.msra.mxu0 %v5637_v17  ;;  %v5657_v17 = vld [vmem:[#allocation9 + $0x180] ss:$12 sps:$4 sm:$0xff]  }
 0x754   :  { %4965 = vmatpush3.bf16.msra.mxu1 %v5641_v24  ;;  %4373 = vmatprep.subr.bf16.mxu0 %v5644_v25  ;;  %v5661_v24 = vld [vmem:[#allocation9 + $0x198] ss:$12 sps:$4 sm:$0xff]   ;;  %v5667_v25 = vld [vmem:[#allocation9 + $0x1b4] ss:$12 sps:$4 sm:$0xff]  }
 0x755   :  { %4966 = vmatprep.subr.bf16.mxu1 %v5645_v28  ;;  %v5671_v28 = vld [vmem:[#allocation9 + $0x1cc] ss:$12 sps:$4 sm:$0xff]  }
 0x757   :  { %v2750_v43 = vpop.f32.mrb[44].mxu1 }
 0x758   :  { %v5089_v26 = vpop.f32.mrb[45].mxu1  ;;  %v2756_v3 = vpack.c.bf16 %v2750_v43, %v2750_v43 }
 0x759   :  { %v2753_v19 = vpop.f32.mrb[46].mxu1 }
 0x75a   :  { %v5090_v34 = vpop.f32.mrb[47].mxu1  ;;  %v5642_v19 = vld [vmem:[#allocation9 + $0x138] ss:$12 sps:$4 sm:$0xff]  }
 0x75b   :  { %v5646_v34 = vld [vmem:[#allocation9 + $0x80] ss:$12 sps:$4 sm:$0xff]   ;;  %4374 = vmatpush1.bf16.msra.mxu0 %v5642_v19  ;;  %v5669_v19 = vld [vmem:[#allocation9 + $0x1c8] ss:$12 sps:$4 sm:$0xff]  }
 0x75c   :  { %4967 = vmatpush3.bf16.msra.mxu1 %v5646_v34  ;;  %v5672_v34 = vld [vmem:[#allocation9 + $0x1d0] ss:$12 sps:$4 sm:$0xff]  }
 0x75d   :  { %4968 = vmatprep.subr.bf16.mxu1 %v5650_v57  ;;  %v5680_v57 = vld [vmem:[#allocation9 + $0x200] ss:$12 sps:$4 sm:$0xff]  }
 0x75f   :  { %v6531_v30 = vpop.f32.mrb[48].mxu1 }
 0x760   :  { %v5101_v27 = vpop.f32.mrb[49].mxu1  ;;  %v2873_v4 = vpack.c.bf16 %v6531_v30, %v6531_v30  ;;  %4969 = vmatpush3.bf16.msra.mxu1 %v5651_v36  ;;  %v5683_v36 = vld [vmem:[#allocation9 + $0x214] ss:$12 sps:$4 sm:$0xff]  }
 0x761   :  { %v2870_v50 = vpop.f32.mrb[50].mxu1  ;;  %v5647_v27 = vld [vmem:[#allocation9 + $0x150] ss:$12 sps:$4 sm:$0xff]  }
 0x762   :  { %v5102_v48 = vpop.f32.mrb[51].mxu1  ;;  %v5649_v50 = vld [vmem:[#allocation9 + $0x154] ss:$12 sps:$4 sm:$0xff]  }
 0x763   :  { %4375 = vmatprep.subr.bf16.mxu0 %v5649_v50  ;;  %v5679_v50 = vld [vmem:[#allocation9 + $0x1fc] ss:$12 sps:$4 sm:$0xff]  }
 0x764   :  { %4376 = vmatpush1.bf16.msra.mxu0 %v5647_v27  ;;  %v5676_v27 = vld [vmem:[#allocation9 + $0x1e8] ss:$12 sps:$4 sm:$0xff]  }
 0x767   :  { %v2981_v33 = vpop.f32.mrb[52].mxu1 }
 0x768   :  { %v2987_v5 = vpack.c.bf16 %v2981_v33, %v2981_v33  ;;  %v5113_v39 = vpop.f32.mrb[53].mxu1 }
 0x769   :  { %v2984_v51 = vpop.f32.mrb[54].mxu1  ;;  %v5654_v39 = vld [vmem:[#allocation9 + $0x16c] ss:$12 sps:$4 sm:$0xff]  }
 0x76a   :  { %v2989_v37 = vrot.slane %v2987_v5, 4  ;;  %v5114_v31 = vpop.f32.mrb[55].mxu1  ;;  %4377 = vmatprep.subr.bf16.mxu0 %v5654_v39  ;;  %v5684_v39 = vld [vmem:[#allocation9 + $0x218] ss:$12 sps:$4 sm:$0xff]  }
 0x76b   :  { %v5655_v31 = vld [vmem:[#allocation9 + $0x170] ss:$12 sps:$4 sm:$0xff]   ;;  %4378 = vmatpush1.bf16.msra.mxu0 %v5652_v40 }
 0x76c   :  { %2992 = vst.msk [vmem:[#allocation2] sm:$0xf0] %vm2991_vm8, %v2989_v37  ;;  %4970 = vmatprep.subr.bf16.mxu1 %v5655_v31  ;;  %vm3607_vm8 = vcmask 1048452   ;;  %v5685_v31 = vld [vmem:[#allocation9 + $0x228] ss:$12 sps:$4 sm:$0xff]  }
 0x76d   :  { %4971 = vmatpush3.bf16.msra.mxu1 %v5656_v38  ;;  %v5688_v40 = vld [vmem:[#allocation9 + $0x230] ss:$12 sps:$4 sm:$0xff]  }
 0x76e   :  { %5199 = vmatprep.subr.bf16.mxu1 %v5882_v21 }
 0x76f   :  { %v3097_v35 = vpop.f32.mrb[56].mxu1 }
 0x770   :  { %v3103_v52 = vpack.c.bf16 %v3097_v35, %v3097_v35  ;;  %v5125_v53 = vpop.f32.mrb[57].mxu1 }
 0x771   :  { %v3100_v11 = vpop.f32.mrb[58].mxu1  ;;  %v5659_v53 = vld [vmem:[#allocation9 + $0x184] ss:$12 sps:$4 sm:$0xff]  }
 0x772   :  { %v3105_v1 = vrot.slane %v3103_v52, 4  ;;  %v5126_v55 = vpop.f32.mrb[59].mxu1  ;;  %4390 = vmatprep.subr.bf16.mxu0 %v5659_v53 }
 0x774   :  { %3106 = vrot.lane.b32.xlu1 %v3105_v1, %s5890_s26 }
 0x777   :  { %v3227_v0 = vpop.f32.mrb[60].mxu1 }
 0x778   :  { %v3233_v2 = vpack.c.bf16 %v3227_v0, %v3227_v0  ;;  %2758 = vrot.lane.b32.xlu1 %v2756_v3, %s5885_s21  ;;  %v5137_v9 = vpop.f32.mrb[61].mxu1 }
 0x779   :  { %v3230_v32 = vpop.f32.mrb[62].mxu1 }
 0x77a   :  { %v3235_v12 = vrot.slane %v3233_v2, 4  ;;  %v5138_v14 = vpop.f32.mrb[63].mxu1 }
 0x77c   :  { %2875 = vrot.lane.b32.xlu1 %v2873_v4, %s5884_s3  ;;  %3236 = vrot.lane.b32.xlu0 %v3235_v12, %s5889_s25 }
 0x77f   :  { %v3347_v22 = vpop.f32.mrb[64].mxu1 }
 0x780   :  { %v3353_v18 = vpack.c.bf16 %v3347_v22, %v3347_v22  ;;  %v5149_v20 = vpop.f32.mrb[65].mxu1 }
 0x781   :  { %v3350_v6 = vpop.f32.mrb[66].mxu1  ;;  %v5663_v20 = vld [vmem:[#allocation9 + $0x19c] ss:$12 sps:$4 sm:$0xff]  }
 0x782   :  { %v3355_v43 = vrot.slane %v3353_v18, 4  ;;  %v5150_v26 = vpop.f32.mrb[67].mxu1  ;;  %v5664_v6 = vld [vmem:[#allocation9 + $0x1a0] ss:$12 sps:$4 sm:$0xff]  }
 0x783   :  { %v5668_v26 = vld [vmem:[#allocation9 + $0x1b8] ss:$12 sps:$4 sm:$0xff]  }
 0x784   :  { %3356 = vrot.lane.b32.xlu0 %v3355_v43, %s5888_s24  ;;  %v5665_v43 = vld [vmem:[#allocation9 + $0x1b0] ss:$12 sps:$4 sm:$0xff]  }
 0x787   :  { %v3465_v30 = vpop.f32.mrb[68].mxu1 }
 0x788   :  { %v3471_v48 = vpack.c.bf16 %v3465_v30, %v3465_v30  ;;  %v5161_v33 = vpop.f32.mrb[69].mxu1  ;;  %v5675_v30 = vld [vmem:[#allocation9 + $0x1e4] ss:$12 sps:$4 sm:$0xff]  }
 0x789   :  { %v3468_v5 = vpop.f32.mrb[70].mxu1  ;;  %v5677_v33 = vld [vmem:[#allocation9 + $0x1f8] ss:$12 sps:$4 sm:$0xff]  }
 0x78a   :  { %v3473_v51 = vrot.slane %v3471_v48, 4  ;;  %v5162_v37 = vpop.f32.mrb[71].mxu1  ;;  %v5681_v5 = vld [vmem:[#allocation9 + $0x210] ss:$12 sps:$4 sm:$0xff]  }
 0x78c   :  { %3474 = vrot.lane.b32.xlu0 %v3473_v51, %s5887_s23  ;;  %v5687_v51 = vld [vmem:[#allocation9 + $0x22c] ss:$12 sps:$4 sm:$0xff]  }
 0x78f   :  { %v3595_v35 = vpop.f32.mrb[72].mxu1 }
 0x790   :  { %v3601_v8 = vpack.c.bf16 %v3595_v35, %v3595_v35  ;;  %v5173_v52 = vpop.f32.mrb[73].mxu1 }
 0x791   :  { %v3598_v54 = vpop.f32.mrb[74].mxu1 }
 0x792   :  { %v3603_v60 = vrot.slane %v3601_v8, 4  ;;  %v5174_v11 = vpop.f32.mrb[75].mxu1 }
 0x793   :  { %v3946_v11 = vld [vmem:[%s6583_s4] sm:$0x7]  ;;  %s5841_s4 = scalar_lea.vmem %s4527_s30, 768 }
 0x794   :  { %3604 = vrot.lane.b32.xlu0 %v3603_v60, %s5886_s22  ;;  %p5842_p4 = scmp.ne.s32.totalorder %s4527_s30, %s5841_s4  ;;  %p5847_p6 = scmp.lt.s32.totalorder %s5841_s4, %s5841_s4 }
 0x796   :  { %p5848_p7 = por %p5847_p6, %p5846_p5 }
 0x798   :  { %p5849_p8 = pnand %p5848_p7, %p5842_p4 }
 0x7a4   :  { %v2144_v13 = vpop.permute.xlu1 %2143 }
 0x7a5   :  { %2147 = vst.msk [vmem:[#allocation2] sm:$0xf] %vm2146_vm9, %v2144_v13  ;;  %vm3609_vm9 = vcmask 261124   ;;  %v3959_v13 = vrot.slane %v3946_v11, %v338_v45 }
 0x7a9   :  { %v3715_v1 = vpop.f32.mrb[76].mxu1 }
 0x7aa   :  { %v3721_v55 = vpack.c.bf16 %v3715_v1, %v3715_v1  ;;  %v5185_v58 = vpop.f32.mrb[77].mxu1  ;;  %v3955_v1 = vrot.slane %v3946_v11, %v334_v47 }
 0x7ab   :  { %v3718_v49 = vpop.f32.mrb[78].mxu1 }
 0x7ac   :  { %v3723_v56 = vrot.slane %v3721_v55, 4  ;;  %v2274_v61 = vpop.permute.xlu0 %2273  ;;  %v5186_v3 = vpop.f32.mrb[79].mxu1 }
 0x7ad   :  { %2277 = vst.msk [vmem:[#allocation2] sm:$0xf] %vm2276_vm10, %v2274_v61  ;;  %vm3845_vm10 = vcmask 1048196  }
 0x7ae   :  { %2279 = vst.msk [vmem:[#allocation2 + $0x8] sm:$0xf] %vm2278_vm11, %v2274_v61  ;;  %3724 = vrot.lane.b32.xlu0 %v3723_v56, %s5885_s21 }
 0x7b1   :  { %v3833_v0 = vpop.f32.mrb[80].mxu1 }
 0x7b2   :  { %v3839_v41 = vpack.c.bf16 %v3833_v0, %v3833_v0  ;;  %v5197_v7 = vpop.f32.mrb[81].mxu1 }
 0x7b3   :  { %v3836_v2 = vpop.f32.mrb[82].mxu1 }
 0x7b4   :  { %v3841_v9 = vrot.slane %v3839_v41, 4  ;;  %v2393_v10 = vpop.permute.xlu0 %2392  ;;  %v5198_v23 = vpop.f32.mrb[83].mxu1 }
 0x7b5   :  { %2396 = vst.msk [vmem:[#allocation2 + $0x8] sm:$0xf] %vm2395_vm12, %v2393_v10 }
 0x7b6   :  { %3842 = vrot.lane.b32.xlu0 %v3841_v9, %s5884_s3 }
 0x7bc   :  { %v2510_v32 = vpop.permute.xlu1 %2509 }
 0x7bd   :  { %2513 = vst.msk [vmem:[#allocation2 + $0x8] sm:$0xf] %vm2512_vm13, %v2510_v32 }
 0x7c4   :  { %v2640_v63 = vpop.permute.xlu0 %2639 }
 0x7c5   :  { %2643 = vst.msk [vmem:[#allocation2 + $0x8] sm:$0xf] %vm2642_vm14, %v2640_v63 }
 0x7c6   :  { %2645 = vst.msk [vmem:[#allocation2 + $0x10] sm:$0xf] %vm2644_vm15, %v2640_v63 }
 0x7e6   :  { %v3107_v4 = vpop.permute.xlu1 %3106 }
 0x7e7   :  { %3110 = vst.msk [vmem:[#allocation2] sm:$0xf0] %vm3109_vm1, %v3107_v4 }
 0x7ea   :  { %v2759_v12 = vpop.permute.xlu1 %2758 }
 0x7eb   :  { %2762 = vst.msk [vmem:[#allocation2 + $0x10] sm:$0xf] %vm2761_vm2, %v2759_v12 }
 0x7ee   :  { %v2876_v14 = vpop.permute.xlu1 %2875  ;;  %v3237_v46 = vpop.permute.xlu0 %3236 }
 0x7ef   :  { %2879 = vst.msk [vmem:[#allocation2 + $0x10] sm:$0xf] %vm2878_vm3, %v2876_v14 }
 0x7f0   :  { %3240 = vst.msk [vmem:[#allocation2] sm:$0xf0] %vm3239_vm4, %v3237_v46 }
 0x7f1   :  { %3242 = vst.msk [vmem:[#allocation2 + $0x8] sm:$0xf0] %vm3241_vm5, %v3237_v46 }
 0x7f6   :  { %v3357_v15 = vpop.permute.xlu0 %3356 }
 0x7f7   :  { %3360 = vst.msk [vmem:[#allocation2 + $0x8] sm:$0xf0] %vm3359_vm6, %v3357_v15  ;;  %v3847_v29 = vld [vmem:[#allocation2] sm:$0xff] }
 0x7fe   :  { %v3475_v59 = vpop.permute.xlu0 %3474 }
 0x7ff   :  { %3478 = vst.msk [vmem:[#allocation2 + $0x8] sm:$0xf0] %vm3477_vm7, %v3475_v59 }
 0x806   :  { %v3605_v22 = vpop.permute.xlu0 %3604 }
 0x807   :  { %3608 = vst.msk [vmem:[#allocation2 + $0x8] sm:$0xf0] %vm3607_vm8, %v3605_v22 }
 0x808   :  { %3610 = vst.msk [vmem:[#allocation2 + $0x10] sm:$0xf0] %vm3609_vm9, %v3605_v22 }
 0x80e   :  { %v3848_v18 = vld [vmem:[#allocation2 + $0x8] sm:$0xff] }
 0x80f   :  { %4379 = vmatprep.mubr.bf16.mxu0 %v3848_v18  ;;  %4465 = vmatprep.mubr.bf16.mxu1 %v3848_v18 }
 0x810   :  { %4380 = vmatmul.mubr.bf16.vlgmr.msra.gmra.mrb[68].mxu0 %v3847_v29  ;;  %4466 = vmatmul.mubr.bf16.vlgmr.msra.gmra.mrb[84].mxu1 %v3847_v29 }
 0x811   :  { %4391 = vmatpush1.bf16.msra.mxu0 %v5657_v17  ;;  %5200 = vmatpush3.bf16.msra.mxu1 %v5660_v62 }
 0x812   :  { %4392 = vmatprep.subr.bf16.mxu0 %v5663_v20  ;;  %5201 = vmatprep.subr.bf16.mxu1 %v5882_v21 }
 0x813   :  { %4422 = vmatprep.mubr.bf16.mxu0 %v5881_v16  ;;  %5215 = vmatprep.mubr.msk.bf16.mxu1 %vm5883_vm0, %v5882_v21  ;;  %v5673_v16 = vld [vmem:[#allocation9 + $0x1e0] ss:$12 sps:$4 sm:$0xff]   ;;  %vm3727_vm0 = vcmask 654596  }
 0x815   :  { %4393 = vmatpush1.bf16.msra.mxu0 %v5661_v24  ;;  %5202 = vmatpush3.bf16.msra.mxu1 %v5664_v6 }
 0x816   :  { %4394 = vmatprep.subr.bf16.mxu0 %v5667_v25  ;;  %5203 = vmatprep.subr.bf16.mxu1 %v5882_v21 }
 0x819   :  { %4395 = vmatpush1.bf16.msra.mxu0 %v5665_v43  ;;  %5204 = vmatpush3.bf16.msra.mxu1 %v5668_v26 }
 0x81a   :  { %4396 = vmatprep.subr.bf16.mxu0 %v5671_v28  ;;  %5205 = vmatprep.subr.bf16.mxu1 %v5882_v21 }
 0x81d   :  { %4397 = vmatpush1.bf16.msra.mxu0 %v5669_v19  ;;  %5206 = vmatpush3.bf16.msra.mxu1 %v5672_v34 }
 0x81e   :  { %4398 = vmatprep.subr.bf16.mxu0 %v5675_v30  ;;  %5207 = vmatprep.subr.bf16.mxu1 %v5882_v21 }
 0x820   :  { %v3725_v48 = vpop.permute.xlu0 %3724 }
 0x821   :  { %3728 = vst.msk [vmem:[#allocation2 + $0x10] sm:$0xf0] %vm3727_vm0, %v3725_v48  ;;  %4399 = vmatpush1.bf16.msra.mxu0 %v5673_v16  ;;  %5208 = vmatpush3.bf16.msra.mxu1 %v5676_v27 }
 0x822   :  { %4400 = vmatprep.subr.bf16.mxu0 %v5679_v50  ;;  %5209 = vmatprep.subr.bf16.mxu1 %v5882_v21 }
 0x825   :  { %4401 = vmatpush1.bf16.msra.mxu0 %v5677_v33  ;;  %5210 = vmatpush3.bf16.msra.mxu1 %v5680_v57 }
 0x826   :  { %4402 = vmatprep.subr.bf16.mxu0 %v5683_v36  ;;  %5211 = vmatprep.subr.bf16.mxu1 %v5882_v21 }
 0x828   :  { %v3843_v37 = vpop.permute.xlu0 %3842 }
 0x829   :  { %3846 = vst.msk [vmem:[#allocation2 + $0x10] sm:$0xf0] %vm3845_vm10, %v3843_v37  ;;  %4403 = vmatpush1.bf16.msra.mxu0 %v5681_v5  ;;  %5212 = vmatpush3.bf16.msra.mxu1 %v5684_v39 }
 0x82a   :  { %4404 = vmatprep.subr.bf16.mxu0 %v5687_v51  ;;  %5213 = vmatprep.subr.bf16.mxu1 %v5882_v21  ;;  %v3951_v21 = vrot.slane %v3946_v11, %v330_v44 }
 0x82d   :  { %4405 = vmatpush1.bf16.msra.mxu0 %v5685_v31  ;;  %5214 = vmatpush3.bf16.msra.mxu1 %v5688_v40 }
 0x830   :  { %v3849_v38 = vld [vmem:[#allocation2 + $0x10] sm:$0xff] }
 0x831   :  { %4423 = vmatmul.mubr.bf16.vlgmr.msra.gmra.mrb[68].mxu0 %v3849_v38  ;;  %5216 = vmatmul.mubr.bf16.vlgmr.msra.gmra.mrb[88].mxu1 %v3849_v38 }
 0x8e3   :  { %v4972_v35 = vpop.f32.mrb[84].mxu1 }
 0x8e4   :  { %v4973_v8 = vpop.f32.mrb[85].mxu1 }
 0x8e5   :  { %v4974_v52 = vadd.f32 %v4973_v8, %v4972_v35  ;;  %v4975_v53 = vpop.f32.mrb[86].mxu1 }
 0x8e6   :  { %v4976_v54 = vpop.f32.mrb[87].mxu1 }
 0x8e7   :  { %v4977_v60 = vadd.f32 %v4976_v54, %v4975_v53  ;;  %v4468_v55 = vadd.f32 %v4974_v52, %v3959_v13 }
 0x8e9   :  { %v4471_v41 = vadd.f32 %v4977_v60, %v3959_v13 }
 0x904   :  { %v4424_v58 = vpop.f32.mrb[68].mxu0  ;;  %v4508_v49 = vpop.f32.mrb[88].mxu1 }
 0x905   :  { %v5235_v56 = vadd.f32 %v4424_v58, %v3951_v21  ;;  %v4509_v61 = vadd.f32 %v4508_v49, %v4468_v55  ;;  %v4426_v3 = vpop.f32.mrb[69].mxu0  ;;  %v5217_v0 = vpop.f32.mrb[89].mxu1 }
 0x906   :  { %v5236_v7 = vadd.f32 %v4426_v3, %v3955_v1  ;;  %v4428_v2 = vpop.f32.mrb[70].mxu0  ;;  %v4511_v9 = vpop.f32.mrb[90].mxu1 }
 0x907   :  { %4515 = vst [vmem:[#allocation11] sm:$0xff] %v5235_v56  ;;  %4517 = vst [vmem:[#allocation11 + $0x10] sm:$0xff] %v4509_v61  ;;  %v5237_v45 = vadd.f32 %v4428_v2, %v3951_v21  ;;  %v4512_v44 = vadd.f32 %v4511_v9, %v4471_v41  ;;  %v4430_v10 = vpop.f32.mrb[71].mxu0  ;;  %v5218_v42 = vpop.f32.mrb[91].mxu1 }
 0x908   :  { %4516 = vst [vmem:[#allocation11 + $0x8] sm:$0xff] %v5236_v7  ;;  %v5238_v47 = vadd.f32 %v4430_v10, %v3955_v1 }
 0x909   :  { %4518 = vst [vmem:[#allocation11 + $0x18] sm:$0xff] %v5237_v45  ;;  %4520 = vst [vmem:[#allocation11 + $0x28] sm:$0xff] %v4512_v44 }
 0x90a   :  { %4519 = vst [vmem:[#allocation11 + $0x20] sm:$0xff] %v5238_v47 }
 0x90b   :  { %5852 = shalt.err (!%p5849_p8)
}
 0x90c   :  { %s5853_s7 = scalar_lea.hbm %s6584_s5, 768 }
 0x90d   :  { %p5854_p9 = scmp.ne.s32.totalorder %s6584_s5, %s5853_s7  ;;  %p5857_p10 = scmp.lt.u32.totalorder %s5853_s7, %s6584_s5 }
 0x90f   :  { %p5859_p11 = pnand %p5857_p10, %p5854_p9 }
 0x911   :  { %5862 = shalt.err (!%p5859_p11)
}
 0x912   :  { %4532 = dma.vmem_to_hbm [thread:$0]  %s4527_s30, 768, %s6584_s5, [#allocation5], %s5875_s1, %s5875_s1, %s5876_s17  }
 0x913   :  { %5869 = dma.done.wait [#allocation5], 768  }
 0x914   :  { %5870 = vsyncadd [#allocation5], 4294966528 }
 0x915   :  { %4536 = vsyncpa [#allocation4], 1 }
 0x916   :  { %4537 = vsyncpa [#allocation7], 1 }
 0x917   :  { %4538 = vsyncpa [#allocation10], 1 }
 0x918   :  { %4539 = vsyncpa [#allocation5], 1 }

</bundles_post_ra>
